<compile_context>
chip_gen: v6e
topology: v6e:2x2x1
jax: 0.10.0
libtpu: 0.0.40
codegen_flags: <defaults>
</compile_context>

<pallas_src>
import numpy as np

import jax
import jax.numpy as jnp
from jax import lax
from jax.experimental import pallas as pl
from jax.experimental.pallas import tpu as pltpu

_EPS = 1e-5


# ----------------------------------------------------------------------------
# Fused residual-block kernel
# ----------------------------------------------------------------------------
def _conv3_rows(xin, t_ref, shift_row, rows):
    """3x3 conv as 3 block-Toeplitz matmuls (one per ky) + row alignment."""
    y1 = jnp.dot(xin, t_ref[1], preferred_element_type=jnp.float32)  # ky = 1
    y0 = jnp.dot(xin, t_ref[0], preferred_element_type=jnp.float32)  # ky = 0
    y2 = jnp.dot(xin, t_ref[2], preferred_element_type=jnp.float32)  # ky = 2
    zero = jnp.zeros((1, y1.shape[1]), jnp.float32)
    y = (y1
         + jnp.concatenate([zero, y0[:rows - 1]], axis=0)   # src row h-1
         + jnp.concatenate([y2[1:], zero], axis=0))         # src row h+1
    return y + shift_row


def _make_residual_kernel(rows, cin, pool, upsample, has_skip_mat):
    """Fused: [maxpool] -> conv1+BN+ReLU -> conv2+BN -> (+skip) -> ReLU
       -> [2x nearest upsample + add up1]."""

    def kernel(*refs):
        it = iter(refs)
        x_ref = next(it)
        up1_ref = next(it) if upsample else None
        t1_ref = next(it)
        sh1_ref = next(it)
        t2_ref = next(it)
        sh2_ref = next(it)
        s_ref = next(it) if has_skip_mat else None
        o_ref = next(it)

        if pool:
            # x block is (1, rows, 2, W*Cin): H-pool over the size-2 axis, then
            # W-pool over adjacent Cin lane-blocks (only even blocks are used
            # downstream -- the Toeplitz matrices read the strided layout).
            xh = jnp.maximum(x_ref[0, :, 0, :], x_ref[0, :, 1, :])
            xs = jnp.concatenate([xh[:, cin:], xh[:, :cin]], axis=1)
            xin = jnp.maximum(xh, xs)
        else:
            xin = x_ref[0]                                    # (rows, W*Cin)

        t = jnp.maximum(_conv3_rows(xin, t1_ref, sh1_ref[...], rows), 0.0)
        y = _conv3_rows(t, t2_ref, sh2_ref[...], rows)        # includes skip-BN shift
        if has_skip_mat:
            skip = jnp.dot(xin, s_ref[...], preferred_element_type=jnp.float32)
        else:
            skip = xin                                        # identity skip
        y = jnp.maximum(y + skip, 0.0)

        if upsample:
            # y is already W-upsampled (absorbed into conv2 / skip matrices);
            # duplicate rows (nearest) and add the full-resolution up1 input.
            o_ref[0, :, 0, :] = (y + up1_ref[0, :, 0, :]).astype(o_ref.dtype)
            o_ref[0, :, 1, :] = (y + up1_ref[0, :, 1, :]).astype(o_ref.dtype)
        else:
            o_ref[0] = y.astype(o_ref.dtype)

    return kernel


# ----------------------------------------------------------------------------
# Wrapper: one pallas_call per residual block (grid over batch)
# ----------------------------------------------------------------------------
def residual_block(x, prep, up1=None):
    """x: (N, Hin, Win, Cin) NHWC.  prep: dict from prepare_residual()."""
    N, Hin, Win, Cin = x.shape
    pool = prep['pool']
    upsample = prep['upsample']
    cout = prep['cout']
    rows = Hin // 2 if pool else Hin          # conv-resolution height
    wc = Win // 2 if pool else Win            # conv-resolution width
    k1 = prep['t1'].shape[1]                  # conv1 input lanes (= Win*Cin)
    n1 = prep['t1'].shape[2]                  # conv1 output lanes (= wc*cout)
    n2 = prep['t2'].shape[2]                  # conv2 output lanes (x2 if upsampled)

    if pool:
        xv = x.reshape(N, rows, 2, Win * Cin)                 # no-op view
        x_spec = pl.BlockSpec((1, rows, 2, Win * Cin), lambda n: (n, 0, 0, 0))
    else:
        xv = x.reshape(N, Hin, Win * Cin)                     # no-op view
        x_spec = pl.BlockSpec((1, Hin, Win * Cin), lambda n: (n, 0, 0))

    in_specs = [x_spec]
    args = [xv]
    if upsample:
        up1v = up1.reshape(N, rows, 2, n2)                    # no-op view
        in_specs.append(pl.BlockSpec((1, rows, 2, n2), lambda n: (n, 0, 0, 0)))
        args.append(up1v)

    in_specs += [
        pl.BlockSpec((3, k1, n1), lambda n: (0, 0, 0)),
        pl.BlockSpec((1, n1), lambda n: (0, 0)),
        pl.BlockSpec((3, n1, n2), lambda n: (0, 0, 0)),
        pl.BlockSpec((1, n2), lambda n: (0, 0)),
    ]
    args += [prep['t1'], prep['sh1'], prep['t2'], prep['sh2']]

    has_s = prep['smat'] is not None
    if has_s:
        in_specs.append(pl.BlockSpec((k1, n2), lambda n: (0, 0)))
        args.append(prep['smat'])

    if upsample:
        out_shape = jax.ShapeDtypeStruct((N, rows, 2, n2), jnp.float32)
        out_spec = pl.BlockSpec((1, rows, 2, n2), lambda n: (n, 0, 0, 0))
    else:
        out_shape = jax.ShapeDtypeStruct((N, rows, n2), jnp.float32)
        out_spec = pl.BlockSpec((1, rows, n2), lambda n: (n, 0, 0))

    kernel = _make_residual_kernel(rows, Cin, pool, upsample, has_s)
    out = pl.pallas_call(
        kernel,
        out_shape=out_shape,
        grid=(N,),
        in_specs=in_specs,
        out_specs=out_spec,
        compiler_params=pltpu.CompilerParams(
            dimension_semantics=("parallel",)),
    )(*args)

    if upsample:
        return out.reshape(N, 2 * rows, 2 * wc, cout)
    return out.reshape(N, rows, wc, cout)


# ----------------------------------------------------------------------------
# Hourglass forward (Pallas path)
# ----------------------------------------------------------------------------
def hourglass_forward(x, q):
    if q['pre'] is not None:
        x = residual_block(x, q['pre'])
    up1 = residual_block(x, q['up1'])
    y = residual_block(x, q['low1'])                      # maxpool2x2 fused in
    y = (hourglass_forward(y, q['low2']) if q['low2_is_hg']
         else residual_block(y, q['low2']))
    # TODO(synk): self.features = out.clone() side-effect is not represented.
    return residual_block(y, q['low3'], up1=up1)          # upsample2x + add fused in


# ----------------------------------------------------------------------------
# Parameter init (PyTorch-like raw params)
# ----------------------------------------------------------------------------
def _init_bn(key, c):
    k1, k2, k3, k4 = jax.random.split(key, 4)
    return (1.0 + 0.1 * jax.random.normal(k1, (c,), jnp.float32),
            0.1 * jax.random.normal(k2, (c,), jnp.float32),
            0.1 * jax.random.normal(k3, (c,), jnp.float32),
            jnp.abs(1.0 + 0.1 * jax.random.normal(k4, (c,), jnp.float32)))


def init_residual_raw(key, cin, cout):
    ks = jax.random.split(key, 6)
    p = {'conv1_w': 0.1 * jax.random.normal(ks[0], (cout, cin, 3, 3), jnp.float32),
         'bn1': _init_bn(ks[1], cout),
         'conv2_w': 0.1 * jax.random.normal(ks[2], (cout, cout, 3, 3), jnp.float32),
         'bn2': _init_bn(ks[3], cout)}
    if cin != cout:
        p['skip_w'] = 0.1 * jax.random.normal(ks[4], (cout, cin, 1, 1), jnp.float32)
        p['skip_bn'] = _init_bn(ks[5], cout)
    else:
        p['skip_w'], p['skip_bn'] = None, None
    return p


def init_hourglass_raw(key, in_channels, dims, n=0):
    ks = jax.random.split(key, 5)
    p = {}
    if n == 0:
        p['pre'] = init_residual_raw(ks[0], in_channels, dims[0])
        curr = dims[0]
    else:
        p['pre'] = None
        curr = in_channels
    p['up1'] = init_residual_raw(ks[1], curr, curr)
    p['low1'] = init_residual_raw(ks[2], curr, dims[n])
    if n < len(dims) - 1:
        p['low2'] = init_hourglass_raw(ks[3], dims[n], dims, n + 1)
        p['low2_is_hg'] = True
    else:
        p['low2'] = init_residual_raw(ks[3], dims[n], dims[n])
        p['low2_is_hg'] = False
    p['low3'] = init_residual_raw(ks[4], dims[n], curr)
    return p


# ----------------------------------------------------------------------------
# One-time parameter prep (host side): BN folding + block-Toeplitz weights
# ----------------------------------------------------------------------------
def _fold_bn_np(bn):
    g, b, m, v = [np.asarray(t, np.float32) for t in bn]
    scale = g / np.sqrt(v + _EPS)
    return scale, b - m * scale


def _toeplitz3(w_oihw, scale, wc, in_stride, up):
    """3x3 conv weights -> (3, in_stride*wc*Cin, up*wc*Cout) block-Toeplitz."""
    w = np.asarray(w_oihw, np.float32) * np.asarray(scale, np.float32)[:, None, None, None]
    cout, cin = w.shape[:2]
    T = np.zeros((3, in_stride * wc * cin, up * wc * cout), np.float32)
    for ky in range(3):
        for wo in range(wc):
            for kx in range(3):
                wi = wo + kx - 1
                if 0 <= wi < wc:
                    blk = w[:, :, ky, kx].T                   # (Cin, Cout)
                    r0 = in_stride * wi * cin
                    for u in range(up):
                        c0 = (up * wo + u) * cout
                        T[ky, r0:r0 + cin, c0:c0 + cout] = blk
    return jnp.asarray(T)


def _blockdiag1x1(w_ic, scale, wc, in_stride, up):
    """1x1 conv weights (Cin, Cout) -> block-diagonal (strided/upsampled) matrix."""
    w = np.asarray(w_ic, np.float32) * np.asarray(scale, np.float32)[None, :]
    cin, cout = w.shape
    S = np.zeros((in_stride * wc * cin, up * wc * cout), np.float32)
    for wo in range(wc):
        r0 = in_stride * wo * cin
        for u in range(up):
            c0 = (up * wo + u) * cout
            S[r0:r0 + cin, c0:c0 + cout] = w
    return jnp.asarray(S)


def prepare_residual(p, win, pool=False, upsample=False):
    cout, cin = p['conv1_w'].shape[:2]
    wc = win // 2 if pool else win
    in_stride = 2 if pool else 1          # pooled input kept in wide/strided layout
    up = 2 if upsample else 1             # W-upsampling absorbed into conv2/skip cols

    s1, b1 = _fold_bn_np(p['bn1'])
    s2, b2 = _fold_bn_np(p['bn2'])

    t1 = _toeplitz3(p['conv1_w'], s1, wc, in_stride, 1)
    t2 = _toeplitz3(p['conv2_w'], s2, wc, 1, up)
    sh1 = jnp.asarray(np.tile(b1, wc)[None, :])

    if p['skip_w'] is not None:
        ss, bs = _fold_bn_np(p['skip_bn'])
        w_skip = np.asarray(p['skip_w'], np.float32)[:, :, 0, 0].T   # (Cin, Cout)
    elif pool or upsample:
        # identity skip, but input is strided (pool) and/or output is W-upsampled
        # -> express it as an exact identity-pattern matrix (numerically exact).
        ss, bs = np.ones(cout, np.float32), np.zeros(cout, np.float32)
        w_skip = np.eye(cin, cout, dtype=np.float32)
    else:
        ss, bs, w_skip = None, None, None

    if w_skip is not None:
        smat = _blockdiag1x1(w_skip, ss, wc, in_stride, up)
        sh2 = jnp.asarray(np.tile(b2 + bs, up * wc)[None, :])   # conv2 + skip shifts
    else:
        smat = None
        sh2 = jnp.asarray(np.tile(b2, up * wc)[None, :])

    return {'t1': t1, 'sh1': sh1, 't2': t2, 'sh2': sh2, 'smat': smat,
            'cout': int(cout), 'pool': pool, 'upsample': upsample}


def prepare_hourglass(p, win):
    q = {'low2_is_hg': p['low2_is_hg']}
    q['pre'] = prepare_residual(p['pre'], win) if p['pre'] is not None else None
    q['up1'] = prepare_residual(p['up1'], win)
    q['low1'] = prepare_residual(p['low1'], win, pool=True)        # fused maxpool
    wlow = win // 2
    q['low2'] = (prepare_hourglass(p['low2'], wlow) if p['low2_is_hg']
                 else prepare_residual(p['low2'], wlow))
    q['low3'] = prepare_residual(p['low3'], wlow, upsample=True)   # fused upsample+add
    return q


# ----------------------------------------------------------------------------
# Pure-JAX reference (eval-mode BN), for correctness check
# ----------------------------------------------------------------------------
def _ref_conv(x, w_oihw, padding=1):
    w = jnp.transpose(w_oihw, (2, 3, 1, 0))                  # HWIO
    return lax.conv_general_dilated(
        x, w, (1, 1), [(padding, padding), (padding, padding)],
        dimension_numbers=('NHWC', 'HWIO', 'NHWC'))


def _ref_bn(x, bn):
    g, b, m, v = bn
    return (x - m) / jnp.sqrt(v + _EPS) * g + b


def _ref_residual(x, p):
    t = jax.nn.relu(_ref_bn(_ref_conv(x, p['conv1_w']), p['bn1']))
    t = _ref_bn(_ref_conv(t, p['conv2_w']), p['bn2'])
    s = x if p['skip_w'] is None else _ref_bn(
        _ref_conv(x, p['skip_w'], padding=0), p['skip_bn'])
    return jax.nn.relu(t + s)


def _ref_hourglass(x, p):
    if p['pre'] is not None:
        x = _ref_residual(x, p['pre'])
    up1 = _ref_residual(x, p['up1'])
    y = lax.reduce_window(x, -jnp.inf, lax.max, (1, 2, 2, 1), (1, 2, 2, 1), 'VALID')
    y = _ref_residual(y, p['low1'])
    y = (_ref_hourglass(y, p['low2']) if p['low2_is_hg']
         else _ref_residual(y, p['low2']))
    y = _ref_residual(y, p['low3'])
    up2 = jnp.repeat(jnp.repeat(y, 2, axis=1), 2, axis=2)
    return up1 + up2


# ----------------------------------------------------------------------------
if __name__ == "__main__":
    key = jax.random.PRNGKey(0)
    k_x, k_p = jax.random.split(key)

    N, C, H, W = 2, 4, 16, 16
    dims = [8, 16]

    x_nchw = jax.random.normal(k_x, (N, C, H, W), jnp.float32)
    raw_params = init_hourglass_raw(k_p, C, dims, 0)
    pallas_params = prepare_hourglass(raw_params, W)   # BN folded + Toeplitz built once

    x_nhwc = jnp.transpose(x_nchw, (0, 2, 3, 1))
    fwd = jax.jit(lambda xx: hourglass_forward(xx, pallas_params))
    out_nhwc = jax.block_until_ready(fwd(x_nhwc))
    out = jnp.transpose(out_nhwc, (0, 3, 1, 2))        # back to NCHW like PyTorch

    ref_nhwc = _ref_hourglass(x_nhwc, raw_params)
    ref = jnp.transpose(ref_nhwc, (0, 3, 1, 2))

    assert out.shape == (N, dims[0], H, W), out.shape
    max_err = float(jnp.max(jnp.abs(out - ref)))
    assert jnp.allclose(out, ref, atol=3e-3, rtol=3e-3), (
        f"mismatch vs reference, max abs err = {max_err}")

    print("KERNEL_OK")
</pallas_src>

<mosaic_0001>
module attributes {stable_mosaic.version = 11 : i64} {
  func.func @kernel(%arg0: i32, %arg1: memref<1x8x2x128xf32, #tpu.memory_space<vmem>>, %arg2: memref<3x128x64xf32, #tpu.memory_space<vmem>>, %arg3: memref<1x64xf32, #tpu.memory_space<vmem>>, %arg4: memref<3x64x64xf32, #tpu.memory_space<vmem>>, %arg5: memref<1x64xf32, #tpu.memory_space<vmem>>, %arg6: memref<128x64xf32, #tpu.memory_space<vmem>>, %arg7: memref<1x8x64xf32, #tpu.memory_space<vmem>>) attributes {dimension_semantics = [#tpu.dimension_semantics<parallel>], iteration_bounds = array<i64: 2>, scalar_prefetch = 0 : i64, scratch_operands = 0 : i64, tpu.core_type = #tpu.core_type<tc>, window_params = [{transform_indices = @transform_0, window_bounds = array<i64: 1, 8, 2, 128>}, {pipeline_mode = #tpu.pipeline_mode<synchronous>, transform_indices = @transform_1, window_bounds = array<i64: 3, 128, 64>}, {pipeline_mode = #tpu.pipeline_mode<synchronous>, transform_indices = @transform_2, window_bounds = array<i64: 1, 64>}, {pipeline_mode = #tpu.pipeline_mode<synchronous>, transform_indices = @transform_3, window_bounds = array<i64: 3, 64, 64>}, {pipeline_mode = #tpu.pipeline_mode<synchronous>, transform_indices = @transform_4, window_bounds = array<i64: 1, 64>}, {pipeline_mode = #tpu.pipeline_mode<synchronous>, transform_indices = @transform_5, window_bounds = array<i64: 128, 64>}, {transform_indices = @transform_6, window_bounds = array<i64: 1, 8, 64>}]} {
    %c0 = arith.constant 0 : index
    %c0_0 = arith.constant 0 : index
    %c0_1 = arith.constant 0 : index
    %c0_2 = arith.constant 0 : index
    %0 = vector.load %arg1[%c0, %c0_0, %c0_1, %c0_2] : memref<1x8x2x128xf32, #tpu.memory_space<vmem>>, vector<1x8x1x128xf32>
    %1 = vector.shape_cast %0 : vector<1x8x1x128xf32> to vector<8x128xf32>
    %c0_3 = arith.constant 0 : index
    %c0_4 = arith.constant 0 : index
    %c1 = arith.constant 1 : index
    %c0_5 = arith.constant 0 : index
    %2 = vector.load %arg1[%c0_3, %c0_4, %c1, %c0_5] : memref<1x8x2x128xf32, #tpu.memory_space<vmem>>, vector<1x8x1x128xf32>
    %3 = vector.shape_cast %2 : vector<1x8x1x128xf32> to vector<8x128xf32>
    %4 = arith.maximumf %1, %3 : vector<8x128xf32>
    %5 = vector.extract_strided_slice %4 {offsets = [0, 8], sizes = [8, 120], strides = [1, 1]} : vector<8x128xf32> to vector<8x120xf32>
    %6 = vector.extract_strided_slice %4 {offsets = [0, 0], sizes = [8, 8], strides = [1, 1]} : vector<8x128xf32> to vector<8x8xf32>
    %7 = tpu.concatenate %5, %6 in 1 : vector<8x120xf32>, vector<8x8xf32> -> vector<8x128xf32>
    %8 = arith.maximumf %4, %7 : vector<8x128xf32>
    %c0_6 = arith.constant 0 : index
    %c0_7 = arith.constant 0 : index
    %9 = vector.load %arg3[%c0_6, %c0_7] : memref<1x64xf32, #tpu.memory_space<vmem>>, vector<1x64xf32>
    %c1_8 = arith.constant 1 : index
    %c0_9 = arith.constant 0 : index
    %c0_10 = arith.constant 0 : index
    %10 = vector.load %arg2[%c1_8, %c0_9, %c0_10] : memref<3x128x64xf32, #tpu.memory_space<vmem>>, vector<1x128x64xf32>
    %11 = vector.shape_cast %10 : vector<1x128x64xf32> to vector<128x64xf32>
    %cst = arith.constant dense<0.000000e+00> : vector<8x64xf32>
    %12 = tpu.matmul %8, %11, %cst {dimension_numbers = #tpu.dot_dimension_numbers<[1], [0], [0], [1], [0, 0, 1, 1], [], []>} : vector<8x128xf32>, vector<128x64xf32>, vector<8x64xf32> -> vector<8x64xf32>
    %c0_11 = arith.constant 0 : index
    %c0_12 = arith.constant 0 : index
    %c0_13 = arith.constant 0 : index
    %13 = vector.load %arg2[%c0_11, %c0_12, %c0_13] : memref<3x128x64xf32, #tpu.memory_space<vmem>>, vector<1x128x64xf32>
    %14 = vector.shape_cast %13 : vector<1x128x64xf32> to vector<128x64xf32>
    %cst_14 = arith.constant dense<0.000000e+00> : vector<8x64xf32>
    %15 = tpu.matmul %8, %14, %cst_14 {dimension_numbers = #tpu.dot_dimension_numbers<[1], [0], [0], [1], [0, 0, 1, 1], [], []>} : vector<8x128xf32>, vector<128x64xf32>, vector<8x64xf32> -> vector<8x64xf32>
    %c2 = arith.constant 2 : index
    %c0_15 = arith.constant 0 : index
    %c0_16 = arith.constant 0 : index
    %16 = vector.load %arg2[%c2, %c0_15, %c0_16] : memref<3x128x64xf32, #tpu.memory_space<vmem>>, vector<1x128x64xf32>
    %17 = vector.shape_cast %16 : vector<1x128x64xf32> to vector<128x64xf32>
    %cst_17 = arith.constant dense<0.000000e+00> : vector<8x64xf32>
    %18 = tpu.matmul %8, %17, %cst_17 {dimension_numbers = #tpu.dot_dimension_numbers<[1], [0], [0], [1], [0, 0, 1, 1], [], []>} : vector<8x128xf32>, vector<128x64xf32>, vector<8x64xf32> -> vector<8x64xf32>
    %cst_18 = arith.constant 0.000000e+00 : f32
    %19 = vector.broadcast %cst_18 : f32 to vector<1x64xf32>
    %20 = vector.extract_strided_slice %15 {offsets = [0, 0], sizes = [7, 64], strides = [1, 1]} : vector<8x64xf32> to vector<7x64xf32>
    %21 = tpu.concatenate %19, %20 in 0 : vector<1x64xf32>, vector<7x64xf32> -> vector<8x64xf32>
    %22 = arith.addf %12, %21 : vector<8x64xf32>
    %23 = vector.extract_strided_slice %18 {offsets = [1, 0], sizes = [7, 64], strides = [1, 1]} : vector<8x64xf32> to vector<7x64xf32>
    %24 = tpu.concatenate %23, %19 in 0 : vector<7x64xf32>, vector<1x64xf32> -> vector<8x64xf32>
    %25 = arith.addf %22, %24 : vector<8x64xf32>
    %26 = vector.broadcast %9 : vector<1x64xf32> to vector<8x64xf32>
    %27 = arith.addf %25, %26 : vector<8x64xf32>
    %cst_19 = arith.constant 0.000000e+00 : f32
    %28 = vector.broadcast %cst_19 : f32 to vector<8x64xf32>
    %29 = arith.maximumf %27, %28 : vector<8x64xf32>
    %c0_20 = arith.constant 0 : index
    %c0_21 = arith.constant 0 : index
    %30 = vector.load %arg5[%c0_20, %c0_21] : memref<1x64xf32, #tpu.memory_space<vmem>>, vector<1x64xf32>
    %c1_22 = arith.constant 1 : index
    %c0_23 = arith.constant 0 : index
    %c0_24 = arith.constant 0 : index
    %31 = vector.load %arg4[%c1_22, %c0_23, %c0_24] : memref<3x64x64xf32, #tpu.memory_space<vmem>>, vector<1x64x64xf32>
    %32 = vector.shape_cast %31 : vector<1x64x64xf32> to vector<64x64xf32>
    %cst_25 = arith.constant dense<0.000000e+00> : vector<8x64xf32>
    %33 = tpu.matmul %29, %32, %cst_25 {dimension_numbers = #tpu.dot_dimension_numbers<[1], [0], [0], [1], [0, 0, 1, 1], [], []>} : vector<8x64xf32>, vector<64x64xf32>, vector<8x64xf32> -> vector<8x64xf32>
    %c0_26 = arith.constant 0 : index
    %c0_27 = arith.constant 0 : index
    %c0_28 = arith.constant 0 : index
    %34 = vector.load %arg4[%c0_26, %c0_27, %c0_28] : memref<3x64x64xf32, #tpu.memory_space<vmem>>, vector<1x64x64xf32>
    %35 = vector.shape_cast %34 : vector<1x64x64xf32> to vector<64x64xf32>
    %cst_29 = arith.constant dense<0.000000e+00> : vector<8x64xf32>
    %36 = tpu.matmul %29, %35, %cst_29 {dimension_numbers = #tpu.dot_dimension_numbers<[1], [0], [0], [1], [0, 0, 1, 1], [], []>} : vector<8x64xf32>, vector<64x64xf32>, vector<8x64xf32> -> vector<8x64xf32>
    %c2_30 = arith.constant 2 : index
    %c0_31 = arith.constant 0 : index
    %c0_32 = arith.constant 0 : index
    %37 = vector.load %arg4[%c2_30, %c0_31, %c0_32] : memref<3x64x64xf32, #tpu.memory_space<vmem>>, vector<1x64x64xf32>
    %38 = vector.shape_cast %37 : vector<1x64x64xf32> to vector<64x64xf32>
    %cst_33 = arith.constant dense<0.000000e+00> : vector<8x64xf32>
    %39 = tpu.matmul %29, %38, %cst_33 {dimension_numbers = #tpu.dot_dimension_numbers<[1], [0], [0], [1], [0, 0, 1, 1], [], []>} : vector<8x64xf32>, vector<64x64xf32>, vector<8x64xf32> -> vector<8x64xf32>
    %cst_34 = arith.constant 0.000000e+00 : f32
    %40 = vector.broadcast %cst_34 : f32 to vector<1x64xf32>
    %41 = vector.extract_strided_slice %36 {offsets = [0, 0], sizes = [7, 64], strides = [1, 1]} : vector<8x64xf32> to vector<7x64xf32>
    %42 = tpu.concatenate %40, %41 in 0 : vector<1x64xf32>, vector<7x64xf32> -> vector<8x64xf32>
    %43 = arith.addf %33, %42 : vector<8x64xf32>
    %44 = vector.extract_strided_slice %39 {offsets = [1, 0], sizes = [7, 64], strides = [1, 1]} : vector<8x64xf32> to vector<7x64xf32>
    %45 = tpu.concatenate %44, %40 in 0 : vector<7x64xf32>, vector<1x64xf32> -> vector<8x64xf32>
    %46 = arith.addf %43, %45 : vector<8x64xf32>
    %47 = vector.broadcast %30 : vector<1x64xf32> to vector<8x64xf32>
    %48 = arith.addf %46, %47 : vector<8x64xf32>
    %c0_35 = arith.constant 0 : index
    %c0_36 = arith.constant 0 : index
    %49 = vector.load %arg6[%c0_35, %c0_36] : memref<128x64xf32, #tpu.memory_space<vmem>>, vector<128x64xf32>
    %cst_37 = arith.constant dense<0.000000e+00> : vector<8x64xf32>
    %50 = tpu.matmul %8, %49, %cst_37 {dimension_numbers = #tpu.dot_dimension_numbers<[1], [0], [0], [1], [0, 0, 1, 1], [], []>} : vector<8x128xf32>, vector<128x64xf32>, vector<8x64xf32> -> vector<8x64xf32>
    %51 = arith.addf %48, %50 : vector<8x64xf32>
    %cst_38 = arith.constant 0.000000e+00 : f32
    %52 = vector.broadcast %cst_38 : f32 to vector<8x64xf32>
    %53 = arith.maximumf %51, %52 : vector<8x64xf32>
    %c0_39 = arith.constant 0 : index
    %c0_40 = arith.constant 0 : index
    %c0_41 = arith.constant 0 : index
    %54 = vector.load %arg7[%c0_39, %c0_40, %c0_41] : memref<1x8x64xf32, #tpu.memory_space<vmem>>, vector<1x8x64xf32>
    %55 = vector.shape_cast %54 : vector<1x8x64xf32> to vector<8x64xf32>
    %56 = vector.shape_cast %53 : vector<8x64xf32> to vector<1x8x64xf32>
    tpu.vector_store %arg7[%c0_39, %c0_40, %c0_41], %56 {strides = array<i32>} : memref<1x8x64xf32, #tpu.memory_space<vmem>>, vector<1x8x64xf32>,
    return
  }
  func.func @transform_0(%arg0: i32) -> (i32, i32, i32, i32) {
    %c0_i32 = arith.constant 0 : i32
    %c0_i32_0 = arith.constant 0 : i32
    %c0_i32_1 = arith.constant 0 : i32
    %c0_i32_2 = arith.constant 0 : i32
    return %arg0, %c0_i32, %c0_i32_0, %c0_i32_1 : i32, i32, i32, i32
  }
  func.func @transform_1(%arg0: i32) -> (i32, i32, i32) {
    %c0_i32 = arith.constant 0 : i32
    %c0_i32_0 = arith.constant 0 : i32
    %c0_i32_1 = arith.constant 0 : i32
    %c0_i32_2 = arith.constant 0 : i32
    return %c0_i32, %c0_i32_0, %c0_i32_1 : i32, i32, i32
  }
  func.func @transform_2(%arg0: i32) -> (i32, i32) {
    %c0_i32 = arith.constant 0 : i32
    %c0_i32_0 = arith.constant 0 : i32
    %c0_i32_1 = arith.constant 0 : i32
    return %c0_i32, %c0_i32_0 : i32, i32
  }
  func.func @transform_3(%arg0: i32) -> (i32, i32, i32) {
    %c0_i32 = arith.constant 0 : i32
    %c0_i32_0 = arith.constant 0 : i32
    %c0_i32_1 = arith.constant 0 : i32
    %c0_i32_2 = arith.constant 0 : i32
    return %c0_i32, %c0_i32_0, %c0_i32_1 : i32, i32, i32
  }
  func.func @transform_4(%arg0: i32) -> (i32, i32) {
    %c0_i32 = arith.constant 0 : i32
    %c0_i32_0 = arith.constant 0 : i32
    %c0_i32_1 = arith.constant 0 : i32
    return %c0_i32, %c0_i32_0 : i32, i32
  }
  func.func @transform_5(%arg0: i32) -> (i32, i32) {
    %c0_i32 = arith.constant 0 : i32
    %c0_i32_0 = arith.constant 0 : i32
    %c0_i32_1 = arith.constant 0 : i32
    return %c0_i32, %c0_i32_0 : i32, i32
  }
  func.func @transform_6(%arg0: i32) -> (i32, i32, i32) {
    %c0_i32 = arith.constant 0 : i32
    %c0_i32_0 = arith.constant 0 : i32
    %c0_i32_1 = arith.constant 0 : i32
    return %arg0, %c0_i32, %c0_i32_0 : i32, i32, i32
  }
}

module attributes {stable_mosaic.version = 11 : i64} {
  func.func @kernel(%arg0: i32, %arg1: memref<1x16x64xf32, #tpu.memory_space<vmem>>, %arg2: memref<3x64x128xf32, #tpu.memory_space<vmem>>, %arg3: memref<1x128xf32, #tpu.memory_space<vmem>>, %arg4: memref<3x128x128xf32, #tpu.memory_space<vmem>>, %arg5: memref<1x128xf32, #tpu.memory_space<vmem>>, %arg6: memref<64x128xf32, #tpu.memory_space<vmem>>, %arg7: memref<1x16x128xf32, #tpu.memory_space<vmem>>) attributes {dimension_semantics = [#tpu.dimension_semantics<parallel>], iteration_bounds = array<i64: 2>, scalar_prefetch = 0 : i64, scratch_operands = 0 : i64, tpu.core_type = #tpu.core_type<tc>, window_params = [{transform_indices = @transform_0, window_bounds = array<i64: 1, 16, 64>}, {pipeline_mode = #tpu.pipeline_mode<synchronous>, transform_indices = @transform_1, window_bounds = array<i64: 3, 64, 128>}, {pipeline_mode = #tpu.pipeline_mode<synchronous>, transform_indices = @transform_2, window_bounds = array<i64: 1, 128>}, {pipeline_mode = #tpu.pipeline_mode<synchronous>, transform_indices = @transform_3, window_bounds = array<i64: 3, 128, 128>}, {pipeline_mode = #tpu.pipeline_mode<synchronous>, transform_indices = @transform_4, window_bounds = array<i64: 1, 128>}, {pipeline_mode = #tpu.pipeline_mode<synchronous>, transform_indices = @transform_5, window_bounds = array<i64: 64, 128>}, {transform_indices = @transform_6, window_bounds = array<i64: 1, 16, 128>}]} {
    %c0 = arith.constant 0 : index
    %c0_0 = arith.constant 0 : index
    %c0_1 = arith.constant 0 : index
    %0 = vector.load %arg1[%c0, %c0_0, %c0_1] : memref<1x16x64xf32, #tpu.memory_space<vmem>>, vector<1x16x64xf32>
    %1 = vector.shape_cast %0 : vector<1x16x64xf32> to vector<16x64xf32>
    %c0_2 = arith.constant 0 : index
    %c0_3 = arith.constant 0 : index
    %2 = vector.load %arg3[%c0_2, %c0_3] : memref<1x128xf32, #tpu.memory_space<vmem>>, vector<1x128xf32>
    %c1 = arith.constant 1 : index
    %c0_4 = arith.constant 0 : index
    %c0_5 = arith.constant 0 : index
    %3 = vector.load %arg2[%c1, %c0_4, %c0_5] : memref<3x64x128xf32, #tpu.memory_space<vmem>>, vector<1x64x128xf32>
    %4 = vector.shape_cast %3 : vector<1x64x128xf32> to vector<64x128xf32>
    %cst = arith.constant dense<0.000000e+00> : vector<16x128xf32>
    %5 = tpu.matmul %1, %4, %cst {dimension_numbers = #tpu.dot_dimension_numbers<[1], [0], [0], [1], [0, 0, 1, 1], [], []>} : vector<16x64xf32>, vector<64x128xf32>, vector<16x128xf32> -> vector<16x128xf32>
    %c0_6 = arith.constant 0 : index
    %c0_7 = arith.constant 0 : index
    %c0_8 = arith.constant 0 : index
    %6 = vector.load %arg2[%c0_6, %c0_7, %c0_8] : memref<3x64x128xf32, #tpu.memory_space<vmem>>, vector<1x64x128xf32>
    %7 = vector.shape_cast %6 : vector<1x64x128xf32> to vector<64x128xf32>
    %cst_9 = arith.constant dense<0.000000e+00> : vector<16x128xf32>
    %8 = tpu.matmul %1, %7, %cst_9 {dimension_numbers = #tpu.dot_dimension_numbers<[1], [0], [0], [1], [0, 0, 1, 1], [], []>} : vector<16x64xf32>, vector<64x128xf32>, vector<16x128xf32> -> vector<16x128xf32>
    %c2 = arith.constant 2 : index
    %c0_10 = arith.constant 0 : index
    %c0_11 = arith.constant 0 : index
    %9 = vector.load %arg2[%c2, %c0_10, %c0_11] : memref<3x64x128xf32, #tpu.memory_space<vmem>>, vector<1x64x128xf32>
    %10 = vector.shape_cast %9 : vector<1x64x128xf32> to vector<64x128xf32>
    %cst_12 = arith.constant dense<0.000000e+00> : vector<16x128xf32>
    %11 = tpu.matmul %1, %10, %cst_12 {dimension_numbers = #tpu.dot_dimension_numbers<[1], [0], [0], [1], [0, 0, 1, 1], [], []>} : vector<16x64xf32>, vector<64x128xf32>, vector<16x128xf32> -> vector<16x128xf32>
    %cst_13 = arith.constant 0.000000e+00 : f32
    %12 = vector.broadcast %cst_13 : f32 to vector<1x128xf32>
    %13 = vector.extract_strided_slice %8 {offsets = [0, 0], sizes = [15, 128], strides = [1, 1]} : vector<16x128xf32> to vector<15x128xf32>
    %14 = tpu.concatenate %12, %13 in 0 : vector<1x128xf32>, vector<15x128xf32> -> vector<16x128xf32>
    %15 = arith.addf %5, %14 : vector<16x128xf32>
    %16 = vector.extract_strided_slice %11 {offsets = [1, 0], sizes = [15, 128], strides = [1, 1]} : vector<16x128xf32> to vector<15x128xf32>
    %17 = tpu.concatenate %16, %12 in 0 : vector<15x128xf32>, vector<1x128xf32> -> vector<16x128xf32>
    %18 = arith.addf %15, %17 : vector<16x128xf32>
    %19 = vector.broadcast %2 : vector<1x128xf32> to vector<16x128xf32>
    %20 = arith.addf %18, %19 : vector<16x128xf32>
    %cst_14 = arith.constant 0.000000e+00 : f32
    %21 = vector.broadcast %cst_14 : f32 to vector<16x128xf32>
    %22 = arith.maximumf %20, %21 : vector<16x128xf32>
    %c0_15 = arith.constant 0 : index
    %c0_16 = arith.constant 0 : index
    %23 = vector.load %arg5[%c0_15, %c0_16] : memref<1x128xf32, #tpu.memory_space<vmem>>, vector<1x128xf32>
    %c1_17 = arith.constant 1 : index
    %c0_18 = arith.constant 0 : index
    %c0_19 = arith.constant 0 : index
    %24 = vector.load %arg4[%c1_17, %c0_18, %c0_19] : memref<3x128x128xf32, #tpu.memory_space<vmem>>, vector<1x128x128xf32>
    %25 = vector.shape_cast %24 : vector<1x128x128xf32> to vector<128x128xf32>
    %cst_20 = arith.constant dense<0.000000e+00> : vector<16x128xf32>
    %26 = tpu.matmul %22, %25, %cst_20 {dimension_numbers = #tpu.dot_dimension_numbers<[1], [0], [0], [1], [0, 0, 1, 1], [], []>} : vector<16x128xf32>, vector<128x128xf32>, vector<16x128xf32> -> vector<16x128xf32>
    %c0_21 = arith.constant 0 : index
    %c0_22 = arith.constant 0 : index
    %c0_23 = arith.constant 0 : index
    %27 = vector.load %arg4[%c0_21, %c0_22, %c0_23] : memref<3x128x128xf32, #tpu.memory_space<vmem>>, vector<1x128x128xf32>
    %28 = vector.shape_cast %27 : vector<1x128x128xf32> to vector<128x128xf32>
    %cst_24 = arith.constant dense<0.000000e+00> : vector<16x128xf32>
    %29 = tpu.matmul %22, %28, %cst_24 {dimension_numbers = #tpu.dot_dimension_numbers<[1], [0], [0], [1], [0, 0, 1, 1], [], []>} : vector<16x128xf32>, vector<128x128xf32>, vector<16x128xf32> -> vector<16x128xf32>
    %c2_25 = arith.constant 2 : index
    %c0_26 = arith.constant 0 : index
    %c0_27 = arith.constant 0 : index
    %30 = vector.load %arg4[%c2_25, %c0_26, %c0_27] : memref<3x128x128xf32, #tpu.memory_space<vmem>>, vector<1x128x128xf32>
    %31 = vector.shape_cast %30 : vector<1x128x128xf32> to vector<128x128xf32>
    %cst_28 = arith.constant dense<0.000000e+00> : vector<16x128xf32>
    %32 = tpu.matmul %22, %31, %cst_28 {dimension_numbers = #tpu.dot_dimension_numbers<[1], [0], [0], [1], [0, 0, 1, 1], [], []>} : vector<16x128xf32>, vector<128x128xf32>, vector<16x128xf32> -> vector<16x128xf32>
    %cst_29 = arith.constant 0.000000e+00 : f32
    %33 = vector.broadcast %cst_29 : f32 to vector<1x128xf32>
    %34 = vector.extract_strided_slice %29 {offsets = [0, 0], sizes = [15, 128], strides = [1, 1]} : vector<16x128xf32> to vector<15x128xf32>
    %35 = tpu.concatenate %33, %34 in 0 : vector<1x128xf32>, vector<15x128xf32> -> vector<16x128xf32>
    %36 = arith.addf %26, %35 : vector<16x128xf32>
    %37 = vector.extract_strided_slice %32 {offsets = [1, 0], sizes = [15, 128], strides = [1, 1]} : vector<16x128xf32> to vector<15x128xf32>
    %38 = tpu.concatenate %37, %33 in 0 : vector<15x128xf32>, vector<1x128xf32> -> vector<16x128xf32>
    %39 = arith.addf %36, %38 : vector<16x128xf32>
    %40 = vector.broadcast %23 : vector<1x128xf32> to vector<16x128xf32>
    %41 = arith.addf %39, %40 : vector<16x128xf32>
    %c0_30 = arith.constant 0 : index
    %c0_31 = arith.constant 0 : index
    %42 = vector.load %arg6[%c0_30, %c0_31] : memref<64x128xf32, #tpu.memory_space<vmem>>, vector<64x128xf32>
    %cst_32 = arith.constant dense<0.000000e+00> : vector<16x128xf32>
    %43 = tpu.matmul %1, %42, %cst_32 {dimension_numbers = #tpu.dot_dimension_numbers<[1], [0], [0], [1], [0, 0, 1, 1], [], []>} : vector<16x64xf32>, vector<64x128xf32>, vector<16x128xf32> -> vector<16x128xf32>
    %44 = arith.addf %41, %43 : vector<16x128xf32>
    %cst_33 = arith.constant 0.000000e+00 : f32
    %45 = vector.broadcast %cst_33 : f32 to vector<16x128xf32>
    %46 = arith.maximumf %44, %45 : vector<16x128xf32>
    %c0_34 = arith.constant 0 : index
    %c0_35 = arith.constant 0 : index
    %c0_36 = arith.constant 0 : index
    %47 = vector.load %arg7[%c0_34, %c0_35, %c0_36] : memref<1x16x128xf32, #tpu.memory_space<vmem>>, vector<1x16x128xf32>
    %48 = vector.shape_cast %47 : vector<1x16x128xf32> to vector<16x128xf32>
    %49 = vector.shape_cast %46 : vector<16x128xf32> to vector<1x16x128xf32>
    tpu.vector_store %arg7[%c0_34, %c0_35, %c0_36], %49 {strides = array<i32>} : memref<1x16x128xf32, #tpu.memory_space<vmem>>, vector<1x16x128xf32>,
    return
  }
  func.func @transform_0(%arg0: i32) -> (i32, i32, i32) {
    %c0_i32 = arith.constant 0 : i32
    %c0_i32_0 = arith.constant 0 : i32
    %c0_i32_1 = arith.constant 0 : i32
    return %arg0, %c0_i32, %c0_i32_0 : i32, i32, i32
  }
  func.func @transform_1(%arg0: i32) -> (i32, i32, i32) {
    %c0_i32 = arith.constant 0 : i32
    %c0_i32_0 = arith.constant 0 : i32
    %c0_i32_1 = arith.constant 0 : i32
    %c0_i32_2 = arith.constant 0 : i32
    return %c0_i32, %c0_i32_0, %c0_i32_1 : i32, i32, i32
  }
  func.func @transform_2(%arg0: i32) -> (i32, i32) {
    %c0_i32 = arith.constant 0 : i32
    %c0_i32_0 = arith.constant 0 : i32
    %c0_i32_1 = arith.constant 0 : i32
    return %c0_i32, %c0_i32_0 : i32, i32
  }
  func.func @transform_3(%arg0: i32) -> (i32, i32, i32) {
    %c0_i32 = arith.constant 0 : i32
    %c0_i32_0 = arith.constant 0 : i32
    %c0_i32_1 = arith.constant 0 : i32
    %c0_i32_2 = arith.constant 0 : i32
    return %c0_i32, %c0_i32_0, %c0_i32_1 : i32, i32, i32
  }
  func.func @transform_4(%arg0: i32) -> (i32, i32) {
    %c0_i32 = arith.constant 0 : i32
    %c0_i32_0 = arith.constant 0 : i32
    %c0_i32_1 = arith.constant 0 : i32
    return %c0_i32, %c0_i32_0 : i32, i32
  }
  func.func @transform_5(%arg0: i32) -> (i32, i32) {
    %c0_i32 = arith.constant 0 : i32
    %c0_i32_0 = arith.constant 0 : i32
    %c0_i32_1 = arith.constant 0 : i32
    return %c0_i32, %c0_i32_0 : i32, i32
  }
  func.func @transform_6(%arg0: i32) -> (i32, i32, i32) {
    %c0_i32 = arith.constant 0 : i32
    %c0_i32_0 = arith.constant 0 : i32
    %c0_i32_1 = arith.constant 0 : i32
    return %arg0, %c0_i32, %c0_i32_0 : i32, i32, i32
  }
}

module attributes {stable_mosaic.version = 11 : i64} {
  func.func @kernel(%arg0: i32, %arg1: memref<1x4x64xf32, #tpu.memory_space<vmem>>, %arg2: memref<3x64x64xf32, #tpu.memory_space<vmem>>, %arg3: memref<1x64xf32, #tpu.memory_space<vmem>>, %arg4: memref<3x64x64xf32, #tpu.memory_space<vmem>>, %arg5: memref<1x64xf32, #tpu.memory_space<vmem>>, %arg6: memref<1x4x64xf32, #tpu.memory_space<vmem>>) attributes {dimension_semantics = [#tpu.dimension_semantics<parallel>], iteration_bounds = array<i64: 2>, scalar_prefetch = 0 : i64, scratch_operands = 0 : i64, tpu.core_type = #tpu.core_type<tc>, window_params = [{transform_indices = @transform_0, window_bounds = array<i64: 1, 4, 64>}, {pipeline_mode = #tpu.pipeline_mode<synchronous>, transform_indices = @transform_1, window_bounds = array<i64: 3, 64, 64>}, {pipeline_mode = #tpu.pipeline_mode<synchronous>, transform_indices = @transform_2, window_bounds = array<i64: 1, 64>}, {pipeline_mode = #tpu.pipeline_mode<synchronous>, transform_indices = @transform_3, window_bounds = array<i64: 3, 64, 64>}, {pipeline_mode = #tpu.pipeline_mode<synchronous>, transform_indices = @transform_4, window_bounds = array<i64: 1, 64>}, {transform_indices = @transform_5, window_bounds = array<i64: 1, 4, 64>}]} {
    %c0 = arith.constant 0 : index
    %c0_0 = arith.constant 0 : index
    %c0_1 = arith.constant 0 : index
    %0 = vector.load %arg1[%c0, %c0_0, %c0_1] : memref<1x4x64xf32, #tpu.memory_space<vmem>>, vector<1x4x64xf32>
    %1 = vector.shape_cast %0 : vector<1x4x64xf32> to vector<4x64xf32>
    %c0_2 = arith.constant 0 : index
    %c0_3 = arith.constant 0 : index
    %2 = vector.load %arg3[%c0_2, %c0_3] : memref<1x64xf32, #tpu.memory_space<vmem>>, vector<1x64xf32>
    %c1 = arith.constant 1 : index
    %c0_4 = arith.constant 0 : index
    %c0_5 = arith.constant 0 : index
    %3 = vector.load %arg2[%c1, %c0_4, %c0_5] : memref<3x64x64xf32, #tpu.memory_space<vmem>>, vector<1x64x64xf32>
    %4 = vector.shape_cast %3 : vector<1x64x64xf32> to vector<64x64xf32>
    %cst = arith.constant dense<0.000000e+00> : vector<4x64xf32>
    %5 = tpu.matmul %1, %4, %cst {dimension_numbers = #tpu.dot_dimension_numbers<[1], [0], [0], [1], [0, 0, 1, 1], [], []>} : vector<4x64xf32>, vector<64x64xf32>, vector<4x64xf32> -> vector<4x64xf32>
    %c0_6 = arith.constant 0 : index
    %c0_7 = arith.constant 0 : index
    %c0_8 = arith.constant 0 : index
    %6 = vector.load %arg2[%c0_6, %c0_7, %c0_8] : memref<3x64x64xf32, #tpu.memory_space<vmem>>, vector<1x64x64xf32>
    %7 = vector.shape_cast %6 : vector<1x64x64xf32> to vector<64x64xf32>
    %cst_9 = arith.constant dense<0.000000e+00> : vector<4x64xf32>
    %8 = tpu.matmul %1, %7, %cst_9 {dimension_numbers = #tpu.dot_dimension_numbers<[1], [0], [0], [1], [0, 0, 1, 1], [], []>} : vector<4x64xf32>, vector<64x64xf32>, vector<4x64xf32> -> vector<4x64xf32>
    %c2 = arith.constant 2 : index
    %c0_10 = arith.constant 0 : index
    %c0_11 = arith.constant 0 : index
    %9 = vector.load %arg2[%c2, %c0_10, %c0_11] : memref<3x64x64xf32, #tpu.memory_space<vmem>>, vector<1x64x64xf32>
    %10 = vector.shape_cast %9 : vector<1x64x64xf32> to vector<64x64xf32>
    %cst_12 = arith.constant dense<0.000000e+00> : vector<4x64xf32>
    %11 = tpu.matmul %1, %10, %cst_12 {dimension_numbers = #tpu.dot_dimension_numbers<[1], [0], [0], [1], [0, 0, 1, 1], [], []>} : vector<4x64xf32>, vector<64x64xf32>, vector<4x64xf32> -> vector<4x64xf32>
    %cst_13 = arith.constant 0.000000e+00 : f32
    %12 = vector.broadcast %cst_13 : f32 to vector<1x64xf32>
    %13 = vector.extract_strided_slice %8 {offsets = [0, 0], sizes = [3, 64], strides = [1, 1]} : vector<4x64xf32> to vector<3x64xf32>
    %14 = tpu.concatenate %12, %13 in 0 : vector<1x64xf32>, vector<3x64xf32> -> vector<4x64xf32>
    %15 = arith.addf %5, %14 : vector<4x64xf32>
    %16 = vector.extract_strided_slice %11 {offsets = [1, 0], sizes = [3, 64], strides = [1, 1]} : vector<4x64xf32> to vector<3x64xf32>
    %17 = tpu.concatenate %16, %12 in 0 : vector<3x64xf32>, vector<1x64xf32> -> vector<4x64xf32>
    %18 = arith.addf %15, %17 : vector<4x64xf32>
    %19 = vector.broadcast %2 : vector<1x64xf32> to vector<4x64xf32>
    %20 = arith.addf %18, %19 : vector<4x64xf32>
    %cst_14 = arith.constant 0.000000e+00 : f32
    %21 = vector.broadcast %cst_14 : f32 to vector<4x64xf32>
    %22 = arith.maximumf %20, %21 : vector<4x64xf32>
    %c0_15 = arith.constant 0 : index
    %c0_16 = arith.constant 0 : index
    %23 = vector.load %arg5[%c0_15, %c0_16] : memref<1x64xf32, #tpu.memory_space<vmem>>, vector<1x64xf32>
    %c1_17 = arith.constant 1 : index
    %c0_18 = arith.constant 0 : index
    %c0_19 = arith.constant 0 : index
    %24 = vector.load %arg4[%c1_17, %c0_18, %c0_19] : memref<3x64x64xf32, #tpu.memory_space<vmem>>, vector<1x64x64xf32>
    %25 = vector.shape_cast %24 : vector<1x64x64xf32> to vector<64x64xf32>
    %cst_20 = arith.constant dense<0.000000e+00> : vector<4x64xf32>
    %26 = tpu.matmul %22, %25, %cst_20 {dimension_numbers = #tpu.dot_dimension_numbers<[1], [0], [0], [1], [0, 0, 1, 1], [], []>} : vector<4x64xf32>, vector<64x64xf32>, vector<4x64xf32> -> vector<4x64xf32>
    %c0_21 = arith.constant 0 : index
    %c0_22 = arith.constant 0 : index
    %c0_23 = arith.constant 0 : index
    %27 = vector.load %arg4[%c0_21, %c0_22, %c0_23] : memref<3x64x64xf32, #tpu.memory_space<vmem>>, vector<1x64x64xf32>
    %28 = vector.shape_cast %27 : vector<1x64x64xf32> to vector<64x64xf32>
    %cst_24 = arith.constant dense<0.000000e+00> : vector<4x64xf32>
    %29 = tpu.matmul %22, %28, %cst_24 {dimension_numbers = #tpu.dot_dimension_numbers<[1], [0], [0], [1], [0, 0, 1, 1], [], []>} : vector<4x64xf32>, vector<64x64xf32>, vector<4x64xf32> -> vector<4x64xf32>
    %c2_25 = arith.constant 2 : index
    %c0_26 = arith.constant 0 : index
    %c0_27 = arith.constant 0 : index
    %30 = vector.load %arg4[%c2_25, %c0_26, %c0_27] : memref<3x64x64xf32, #tpu.memory_space<vmem>>, vector<1x64x64xf32>
    %31 = vector.shape_cast %30 : vector<1x64x64xf32> to vector<64x64xf32>
    %cst_28 = arith.constant dense<0.000000e+00> : vector<4x64xf32>
    %32 = tpu.matmul %22, %31, %cst_28 {dimension_numbers = #tpu.dot_dimension_numbers<[1], [0], [0], [1], [0, 0, 1, 1], [], []>} : vector<4x64xf32>, vector<64x64xf32>, vector<4x64xf32> -> vector<4x64xf32>
    %cst_29 = arith.constant 0.000000e+00 : f32
    %33 = vector.broadcast %cst_29 : f32 to vector<1x64xf32>
    %34 = vector.extract_strided_slice %29 {offsets = [0, 0], sizes = [3, 64], strides = [1, 1]} : vector<4x64xf32> to vector<3x64xf32>
    %35 = tpu.concatenate %33, %34 in 0 : vector<1x64xf32>, vector<3x64xf32> -> vector<4x64xf32>
    %36 = arith.addf %26, %35 : vector<4x64xf32>
    %37 = vector.extract_strided_slice %32 {offsets = [1, 0], sizes = [3, 64], strides = [1, 1]} : vector<4x64xf32> to vector<3x64xf32>
    %38 = tpu.concatenate %37, %33 in 0 : vector<3x64xf32>, vector<1x64xf32> -> vector<4x64xf32>
    %39 = arith.addf %36, %38 : vector<4x64xf32>
    %40 = vector.broadcast %23 : vector<1x64xf32> to vector<4x64xf32>
    %41 = arith.addf %39, %40 : vector<4x64xf32>
    %42 = arith.addf %41, %1 : vector<4x64xf32>
    %cst_30 = arith.constant 0.000000e+00 : f32
    %43 = vector.broadcast %cst_30 : f32 to vector<4x64xf32>
    %44 = arith.maximumf %42, %43 : vector<4x64xf32>
    %c0_31 = arith.constant 0 : index
    %c0_32 = arith.constant 0 : index
    %c0_33 = arith.constant 0 : index
    %45 = vector.load %arg6[%c0_31, %c0_32, %c0_33] : memref<1x4x64xf32, #tpu.memory_space<vmem>>, vector<1x4x64xf32>
    %46 = vector.shape_cast %45 : vector<1x4x64xf32> to vector<4x64xf32>
    %47 = vector.shape_cast %44 : vector<4x64xf32> to vector<1x4x64xf32>
    tpu.vector_store %arg6[%c0_31, %c0_32, %c0_33], %47 {strides = array<i32>} : memref<1x4x64xf32, #tpu.memory_space<vmem>>, vector<1x4x64xf32>,
    return
  }
  func.func @transform_0(%arg0: i32) -> (i32, i32, i32) {
    %c0_i32 = arith.constant 0 : i32
    %c0_i32_0 = arith.constant 0 : i32
    %c0_i32_1 = arith.constant 0 : i32
    return %arg0, %c0_i32, %c0_i32_0 : i32, i32, i32
  }
  func.func @transform_1(%arg0: i32) -> (i32, i32, i32) {
    %c0_i32 = arith.constant 0 : i32
    %c0_i32_0 = arith.constant 0 : i32
    %c0_i32_1 = arith.constant 0 : i32
    %c0_i32_2 = arith.constant 0 : i32
    return %c0_i32, %c0_i32_0, %c0_i32_1 : i32, i32, i32
  }
  func.func @transform_2(%arg0: i32) -> (i32, i32) {
    %c0_i32 = arith.constant 0 : i32
    %c0_i32_0 = arith.constant 0 : i32
    %c0_i32_1 = arith.constant 0 : i32
    return %c0_i32, %c0_i32_0 : i32, i32
  }
  func.func @transform_3(%arg0: i32) -> (i32, i32, i32) {
    %c0_i32 = arith.constant 0 : i32
    %c0_i32_0 = arith.constant 0 : i32
    %c0_i32_1 = arith.constant 0 : i32
    %c0_i32_2 = arith.constant 0 : i32
    return %c0_i32, %c0_i32_0, %c0_i32_1 : i32, i32, i32
  }
  func.func @transform_4(%arg0: i32) -> (i32, i32) {
    %c0_i32 = arith.constant 0 : i32
    %c0_i32_0 = arith.constant 0 : i32
    %c0_i32_1 = arith.constant 0 : i32
    return %c0_i32, %c0_i32_0 : i32, i32
  }
  func.func @transform_5(%arg0: i32) -> (i32, i32, i32) {
    %c0_i32 = arith.constant 0 : i32
    %c0_i32_0 = arith.constant 0 : i32
    %c0_i32_1 = arith.constant 0 : i32
    return %arg0, %c0_i32, %c0_i32_0 : i32, i32, i32
  }
}

module attributes {stable_mosaic.version = 11 : i64} {
  func.func @kernel(%arg0: i32, %arg1: memref<1x4x2x64xf32, #tpu.memory_space<vmem>>, %arg2: memref<3x64x64xf32, #tpu.memory_space<vmem>>, %arg3: memref<1x64xf32, #tpu.memory_space<vmem>>, %arg4: memref<3x64x64xf32, #tpu.memory_space<vmem>>, %arg5: memref<1x64xf32, #tpu.memory_space<vmem>>, %arg6: memref<64x64xf32, #tpu.memory_space<vmem>>, %arg7: memref<1x4x64xf32, #tpu.memory_space<vmem>>) attributes {dimension_semantics = [#tpu.dimension_semantics<parallel>], iteration_bounds = array<i64: 2>, scalar_prefetch = 0 : i64, scratch_operands = 0 : i64, tpu.core_type = #tpu.core_type<tc>, window_params = [{transform_indices = @transform_0, window_bounds = array<i64: 1, 4, 2, 64>}, {pipeline_mode = #tpu.pipeline_mode<synchronous>, transform_indices = @transform_1, window_bounds = array<i64: 3, 64, 64>}, {pipeline_mode = #tpu.pipeline_mode<synchronous>, transform_indices = @transform_2, window_bounds = array<i64: 1, 64>}, {pipeline_mode = #tpu.pipeline_mode<synchronous>, transform_indices = @transform_3, window_bounds = array<i64: 3, 64, 64>}, {pipeline_mode = #tpu.pipeline_mode<synchronous>, transform_indices = @transform_4, window_bounds = array<i64: 1, 64>}, {pipeline_mode = #tpu.pipeline_mode<synchronous>, transform_indices = @transform_5, window_bounds = array<i64: 64, 64>}, {transform_indices = @transform_6, window_bounds = array<i64: 1, 4, 64>}]} {
    %c0 = arith.constant 0 : index
    %c0_0 = arith.constant 0 : index
    %c0_1 = arith.constant 0 : index
    %c0_2 = arith.constant 0 : index
    %0 = vector.load %arg1[%c0, %c0_0, %c0_1, %c0_2] : memref<1x4x2x64xf32, #tpu.memory_space<vmem>>, vector<1x4x1x64xf32>
    %1 = vector.shape_cast %0 : vector<1x4x1x64xf32> to vector<4x64xf32>
    %c0_3 = arith.constant 0 : index
    %c0_4 = arith.constant 0 : index
    %c1 = arith.constant 1 : index
    %c0_5 = arith.constant 0 : index
    %2 = vector.load %arg1[%c0_3, %c0_4, %c1, %c0_5] : memref<1x4x2x64xf32, #tpu.memory_space<vmem>>, vector<1x4x1x64xf32>
    %3 = vector.shape_cast %2 : vector<1x4x1x64xf32> to vector<4x64xf32>
    %4 = arith.maximumf %1, %3 : vector<4x64xf32>
    %5 = vector.extract_strided_slice %4 {offsets = [0, 8], sizes = [4, 56], strides = [1, 1]} : vector<4x64xf32> to vector<4x56xf32>
    %6 = vector.extract_strided_slice %4 {offsets = [0, 0], sizes = [4, 8], strides = [1, 1]} : vector<4x64xf32> to vector<4x8xf32>
    %7 = tpu.concatenate %5, %6 in 1 : vector<4x56xf32>, vector<4x8xf32> -> vector<4x64xf32>
    %8 = arith.maximumf %4, %7 : vector<4x64xf32>
    %c0_6 = arith.constant 0 : index
    %c0_7 = arith.constant 0 : index
    %9 = vector.load %arg3[%c0_6, %c0_7] : memref<1x64xf32, #tpu.memory_space<vmem>>, vector<1x64xf32>
    %c1_8 = arith.constant 1 : index
    %c0_9 = arith.constant 0 : index
    %c0_10 = arith.constant 0 : index
    %10 = vector.load %arg2[%c1_8, %c0_9, %c0_10] : memref<3x64x64xf32, #tpu.memory_space<vmem>>, vector<1x64x64xf32>
    %11 = vector.shape_cast %10 : vector<1x64x64xf32> to vector<64x64xf32>
    %cst = arith.constant dense<0.000000e+00> : vector<4x64xf32>
    %12 = tpu.matmul %8, %11, %cst {dimension_numbers = #tpu.dot_dimension_numbers<[1], [0], [0], [1], [0, 0, 1, 1], [], []>} : vector<4x64xf32>, vector<64x64xf32>, vector<4x64xf32> -> vector<4x64xf32>
    %c0_11 = arith.constant 0 : index
    %c0_12 = arith.constant 0 : index
    %c0_13 = arith.constant 0 : index
    %13 = vector.load %arg2[%c0_11, %c0_12, %c0_13] : memref<3x64x64xf32, #tpu.memory_space<vmem>>, vector<1x64x64xf32>
    %14 = vector.shape_cast %13 : vector<1x64x64xf32> to vector<64x64xf32>
    %cst_14 = arith.constant dense<0.000000e+00> : vector<4x64xf32>
    %15 = tpu.matmul %8, %14, %cst_14 {dimension_numbers = #tpu.dot_dimension_numbers<[1], [0], [0], [1], [0, 0, 1, 1], [], []>} : vector<4x64xf32>, vector<64x64xf32>, vector<4x64xf32> -> vector<4x64xf32>
    %c2 = arith.constant 2 : index
    %c0_15 = arith.constant 0 : index
    %c0_16 = arith.constant 0 : index
    %16 = vector.load %arg2[%c2, %c0_15, %c0_16] : memref<3x64x64xf32, #tpu.memory_space<vmem>>, vector<1x64x64xf32>
    %17 = vector.shape_cast %16 : vector<1x64x64xf32> to vector<64x64xf32>
    %cst_17 = arith.constant dense<0.000000e+00> : vector<4x64xf32>
    %18 = tpu.matmul %8, %17, %cst_17 {dimension_numbers = #tpu.dot_dimension_numbers<[1], [0], [0], [1], [0, 0, 1, 1], [], []>} : vector<4x64xf32>, vector<64x64xf32>, vector<4x64xf32> -> vector<4x64xf32>
    %cst_18 = arith.constant 0.000000e+00 : f32
    %19 = vector.broadcast %cst_18 : f32 to vector<1x64xf32>
    %20 = vector.extract_strided_slice %15 {offsets = [0, 0], sizes = [3, 64], strides = [1, 1]} : vector<4x64xf32> to vector<3x64xf32>
    %21 = tpu.concatenate %19, %20 in 0 : vector<1x64xf32>, vector<3x64xf32> -> vector<4x64xf32>
    %22 = arith.addf %12, %21 : vector<4x64xf32>
    %23 = vector.extract_strided_slice %18 {offsets = [1, 0], sizes = [3, 64], strides = [1, 1]} : vector<4x64xf32> to vector<3x64xf32>
    %24 = tpu.concatenate %23, %19 in 0 : vector<3x64xf32>, vector<1x64xf32> -> vector<4x64xf32>
    %25 = arith.addf %22, %24 : vector<4x64xf32>
    %26 = vector.broadcast %9 : vector<1x64xf32> to vector<4x64xf32>
    %27 = arith.addf %25, %26 : vector<4x64xf32>
    %cst_19 = arith.constant 0.000000e+00 : f32
    %28 = vector.broadcast %cst_19 : f32 to vector<4x64xf32>
    %29 = arith.maximumf %27, %28 : vector<4x64xf32>
    %c0_20 = arith.constant 0 : index
    %c0_21 = arith.constant 0 : index
    %30 = vector.load %arg5[%c0_20, %c0_21] : memref<1x64xf32, #tpu.memory_space<vmem>>, vector<1x64xf32>
    %c1_22 = arith.constant 1 : index
    %c0_23 = arith.constant 0 : index
    %c0_24 = arith.constant 0 : index
    %31 = vector.load %arg4[%c1_22, %c0_23, %c0_24] : memref<3x64x64xf32, #tpu.memory_space<vmem>>, vector<1x64x64xf32>
    %32 = vector.shape_cast %31 : vector<1x64x64xf32> to vector<64x64xf32>
    %cst_25 = arith.constant dense<0.000000e+00> : vector<4x64xf32>
    %33 = tpu.matmul %29, %32, %cst_25 {dimension_numbers = #tpu.dot_dimension_numbers<[1], [0], [0], [1], [0, 0, 1, 1], [], []>} : vector<4x64xf32>, vector<64x64xf32>, vector<4x64xf32> -> vector<4x64xf32>
    %c0_26 = arith.constant 0 : index
    %c0_27 = arith.constant 0 : index
    %c0_28 = arith.constant 0 : index
    %34 = vector.load %arg4[%c0_26, %c0_27, %c0_28] : memref<3x64x64xf32, #tpu.memory_space<vmem>>, vector<1x64x64xf32>
    %35 = vector.shape_cast %34 : vector<1x64x64xf32> to vector<64x64xf32>
    %cst_29 = arith.constant dense<0.000000e+00> : vector<4x64xf32>
    %36 = tpu.matmul %29, %35, %cst_29 {dimension_numbers = #tpu.dot_dimension_numbers<[1], [0], [0], [1], [0, 0, 1, 1], [], []>} : vector<4x64xf32>, vector<64x64xf32>, vector<4x64xf32> -> vector<4x64xf32>
    %c2_30 = arith.constant 2 : index
    %c0_31 = arith.constant 0 : index
    %c0_32 = arith.constant 0 : index
    %37 = vector.load %arg4[%c2_30, %c0_31, %c0_32] : memref<3x64x64xf32, #tpu.memory_space<vmem>>, vector<1x64x64xf32>
    %38 = vector.shape_cast %37 : vector<1x64x64xf32> to vector<64x64xf32>
    %cst_33 = arith.constant dense<0.000000e+00> : vector<4x64xf32>
    %39 = tpu.matmul %29, %38, %cst_33 {dimension_numbers = #tpu.dot_dimension_numbers<[1], [0], [0], [1], [0, 0, 1, 1], [], []>} : vector<4x64xf32>, vector<64x64xf32>, vector<4x64xf32> -> vector<4x64xf32>
    %cst_34 = arith.constant 0.000000e+00 : f32
    %40 = vector.broadcast %cst_34 : f32 to vector<1x64xf32>
    %41 = vector.extract_strided_slice %36 {offsets = [0, 0], sizes = [3, 64], strides = [1, 1]} : vector<4x64xf32> to vector<3x64xf32>
    %42 = tpu.concatenate %40, %41 in 0 : vector<1x64xf32>, vector<3x64xf32> -> vector<4x64xf32>
    %43 = arith.addf %33, %42 : vector<4x64xf32>
    %44 = vector.extract_strided_slice %39 {offsets = [1, 0], sizes = [3, 64], strides = [1, 1]} : vector<4x64xf32> to vector<3x64xf32>
    %45 = tpu.concatenate %44, %40 in 0 : vector<3x64xf32>, vector<1x64xf32> -> vector<4x64xf32>
    %46 = arith.addf %43, %45 : vector<4x64xf32>
    %47 = vector.broadcast %30 : vector<1x64xf32> to vector<4x64xf32>
    %48 = arith.addf %46, %47 : vector<4x64xf32>
    %c0_35 = arith.constant 0 : index
    %c0_36 = arith.constant 0 : index
    %49 = vector.load %arg6[%c0_35, %c0_36] : memref<64x64xf32, #tpu.memory_space<vmem>>, vector<64x64xf32>
    %cst_37 = arith.constant dense<0.000000e+00> : vector<4x64xf32>
    %50 = tpu.matmul %8, %49, %cst_37 {dimension_numbers = #tpu.dot_dimension_numbers<[1], [0], [0], [1], [0, 0, 1, 1], [], []>} : vector<4x64xf32>, vector<64x64xf32>, vector<4x64xf32> -> vector<4x64xf32>
    %51 = arith.addf %48, %50 : vector<4x64xf32>
    %cst_38 = arith.constant 0.000000e+00 : f32
    %52 = vector.broadcast %cst_38 : f32 to vector<4x64xf32>
    %53 = arith.maximumf %51, %52 : vector<4x64xf32>
    %c0_39 = arith.constant 0 : index
    %c0_40 = arith.constant 0 : index
    %c0_41 = arith.constant 0 : index
    %54 = vector.load %arg7[%c0_39, %c0_40, %c0_41] : memref<1x4x64xf32, #tpu.memory_space<vmem>>, vector<1x4x64xf32>
    %55 = vector.shape_cast %54 : vector<1x4x64xf32> to vector<4x64xf32>
    %56 = vector.shape_cast %53 : vector<4x64xf32> to vector<1x4x64xf32>
    tpu.vector_store %arg7[%c0_39, %c0_40, %c0_41], %56 {strides = array<i32>} : memref<1x4x64xf32, #tpu.memory_space<vmem>>, vector<1x4x64xf32>,
    return
  }
  func.func @transform_0(%arg0: i32) -> (i32, i32, i32, i32) {
    %c0_i32 = arith.constant 0 : i32
    %c0_i32_0 = arith.constant 0 : i32
    %c0_i32_1 = arith.constant 0 : i32
    %c0_i32_2 = arith.constant 0 : i32
    return %arg0, %c0_i32, %c0_i32_0, %c0_i32_1 : i32, i32, i32, i32
  }
  func.func @transform_1(%arg0: i32) -> (i32, i32, i32) {
    %c0_i32 = arith.constant 0 : i32
    %c0_i32_0 = arith.constant 0 : i32
    %c0_i32_1 = arith.constant 0 : i32
    %c0_i32_2 = arith.constant 0 : i32
    return %c0_i32, %c0_i32_0, %c0_i32_1 : i32, i32, i32
  }
  func.func @transform_2(%arg0: i32) -> (i32, i32) {
    %c0_i32 = arith.constant 0 : i32
    %c0_i32_0 = arith.constant 0 : i32
    %c0_i32_1 = arith.constant 0 : i32
    return %c0_i32, %c0_i32_0 : i32, i32
  }
  func.func @transform_3(%arg0: i32) -> (i32, i32, i32) {
    %c0_i32 = arith.constant 0 : i32
    %c0_i32_0 = arith.constant 0 : i32
    %c0_i32_1 = arith.constant 0 : i32
    %c0_i32_2 = arith.constant 0 : i32
    return %c0_i32, %c0_i32_0, %c0_i32_1 : i32, i32, i32
  }
  func.func @transform_4(%arg0: i32) -> (i32, i32) {
    %c0_i32 = arith.constant 0 : i32
    %c0_i32_0 = arith.constant 0 : i32
    %c0_i32_1 = arith.constant 0 : i32
    return %c0_i32, %c0_i32_0 : i32, i32
  }
  func.func @transform_5(%arg0: i32) -> (i32, i32) {
    %c0_i32 = arith.constant 0 : i32
    %c0_i32_0 = arith.constant 0 : i32
    %c0_i32_1 = arith.constant 0 : i32
    return %c0_i32, %c0_i32_0 : i32, i32
  }
  func.func @transform_6(%arg0: i32) -> (i32, i32, i32) {
    %c0_i32 = arith.constant 0 : i32
    %c0_i32_0 = arith.constant 0 : i32
    %c0_i32_1 = arith.constant 0 : i32
    return %arg0, %c0_i32, %c0_i32_0 : i32, i32, i32
  }
}

module attributes {stable_mosaic.version = 11 : i64} {
  func.func @kernel(%arg0: i32, %arg1: memref<1x8x64xf32, #tpu.memory_space<vmem>>, %arg2: memref<3x64x64xf32, #tpu.memory_space<vmem>>, %arg3: memref<1x64xf32, #tpu.memory_space<vmem>>, %arg4: memref<3x64x64xf32, #tpu.memory_space<vmem>>, %arg5: memref<1x64xf32, #tpu.memory_space<vmem>>, %arg6: memref<1x8x64xf32, #tpu.memory_space<vmem>>) attributes {dimension_semantics = [#tpu.dimension_semantics<parallel>], iteration_bounds = array<i64: 2>, scalar_prefetch = 0 : i64, scratch_operands = 0 : i64, tpu.core_type = #tpu.core_type<tc>, window_params = [{transform_indices = @transform_0, window_bounds = array<i64: 1, 8, 64>}, {pipeline_mode = #tpu.pipeline_mode<synchronous>, transform_indices = @transform_1, window_bounds = array<i64: 3, 64, 64>}, {pipeline_mode = #tpu.pipeline_mode<synchronous>, transform_indices = @transform_2, window_bounds = array<i64: 1, 64>}, {pipeline_mode = #tpu.pipeline_mode<synchronous>, transform_indices = @transform_3, window_bounds = array<i64: 3, 64, 64>}, {pipeline_mode = #tpu.pipeline_mode<synchronous>, transform_indices = @transform_4, window_bounds = array<i64: 1, 64>}, {transform_indices = @transform_5, window_bounds = array<i64: 1, 8, 64>}]} {
    %c0 = arith.constant 0 : index
    %c0_0 = arith.constant 0 : index
    %c0_1 = arith.constant 0 : index
    %0 = vector.load %arg1[%c0, %c0_0, %c0_1] : memref<1x8x64xf32, #tpu.memory_space<vmem>>, vector<1x8x64xf32>
    %1 = vector.shape_cast %0 : vector<1x8x64xf32> to vector<8x64xf32>
    %c0_2 = arith.constant 0 : index
    %c0_3 = arith.constant 0 : index
    %2 = vector.load %arg3[%c0_2, %c0_3] : memref<1x64xf32, #tpu.memory_space<vmem>>, vector<1x64xf32>
    %c1 = arith.constant 1 : index
    %c0_4 = arith.constant 0 : index
    %c0_5 = arith.constant 0 : index
    %3 = vector.load %arg2[%c1, %c0_4, %c0_5] : memref<3x64x64xf32, #tpu.memory_space<vmem>>, vector<1x64x64xf32>
    %4 = vector.shape_cast %3 : vector<1x64x64xf32> to vector<64x64xf32>
    %cst = arith.constant dense<0.000000e+00> : vector<8x64xf32>
    %5 = tpu.matmul %1, %4, %cst {dimension_numbers = #tpu.dot_dimension_numbers<[1], [0], [0], [1], [0, 0, 1, 1], [], []>} : vector<8x64xf32>, vector<64x64xf32>, vector<8x64xf32> -> vector<8x64xf32>
    %c0_6 = arith.constant 0 : index
    %c0_7 = arith.constant 0 : index
    %c0_8 = arith.constant 0 : index
    %6 = vector.load %arg2[%c0_6, %c0_7, %c0_8] : memref<3x64x64xf32, #tpu.memory_space<vmem>>, vector<1x64x64xf32>
    %7 = vector.shape_cast %6 : vector<1x64x64xf32> to vector<64x64xf32>
    %cst_9 = arith.constant dense<0.000000e+00> : vector<8x64xf32>
    %8 = tpu.matmul %1, %7, %cst_9 {dimension_numbers = #tpu.dot_dimension_numbers<[1], [0], [0], [1], [0, 0, 1, 1], [], []>} : vector<8x64xf32>, vector<64x64xf32>, vector<8x64xf32> -> vector<8x64xf32>
    %c2 = arith.constant 2 : index
    %c0_10 = arith.constant 0 : index
    %c0_11 = arith.constant 0 : index
    %9 = vector.load %arg2[%c2, %c0_10, %c0_11] : memref<3x64x64xf32, #tpu.memory_space<vmem>>, vector<1x64x64xf32>
    %10 = vector.shape_cast %9 : vector<1x64x64xf32> to vector<64x64xf32>
    %cst_12 = arith.constant dense<0.000000e+00> : vector<8x64xf32>
    %11 = tpu.matmul %1, %10, %cst_12 {dimension_numbers = #tpu.dot_dimension_numbers<[1], [0], [0], [1], [0, 0, 1, 1], [], []>} : vector<8x64xf32>, vector<64x64xf32>, vector<8x64xf32> -> vector<8x64xf32>
    %cst_13 = arith.constant 0.000000e+00 : f32
    %12 = vector.broadcast %cst_13 : f32 to vector<1x64xf32>
    %13 = vector.extract_strided_slice %8 {offsets = [0, 0], sizes = [7, 64], strides = [1, 1]} : vector<8x64xf32> to vector<7x64xf32>
    %14 = tpu.concatenate %12, %13 in 0 : vector<1x64xf32>, vector<7x64xf32> -> vector<8x64xf32>
    %15 = arith.addf %5, %14 : vector<8x64xf32>
    %16 = vector.extract_strided_slice %11 {offsets = [1, 0], sizes = [7, 64], strides = [1, 1]} : vector<8x64xf32> to vector<7x64xf32>
    %17 = tpu.concatenate %16, %12 in 0 : vector<7x64xf32>, vector<1x64xf32> -> vector<8x64xf32>
    %18 = arith.addf %15, %17 : vector<8x64xf32>
    %19 = vector.broadcast %2 : vector<1x64xf32> to vector<8x64xf32>
    %20 = arith.addf %18, %19 : vector<8x64xf32>
    %cst_14 = arith.constant 0.000000e+00 : f32
    %21 = vector.broadcast %cst_14 : f32 to vector<8x64xf32>
    %22 = arith.maximumf %20, %21 : vector<8x64xf32>
    %c0_15 = arith.constant 0 : index
    %c0_16 = arith.constant 0 : index
    %23 = vector.load %arg5[%c0_15, %c0_16] : memref<1x64xf32, #tpu.memory_space<vmem>>, vector<1x64xf32>
    %c1_17 = arith.constant 1 : index
    %c0_18 = arith.constant 0 : index
    %c0_19 = arith.constant 0 : index
    %24 = vector.load %arg4[%c1_17, %c0_18, %c0_19] : memref<3x64x64xf32, #tpu.memory_space<vmem>>, vector<1x64x64xf32>
    %25 = vector.shape_cast %24 : vector<1x64x64xf32> to vector<64x64xf32>
    %cst_20 = arith.constant dense<0.000000e+00> : vector<8x64xf32>
    %26 = tpu.matmul %22, %25, %cst_20 {dimension_numbers = #tpu.dot_dimension_numbers<[1], [0], [0], [1], [0, 0, 1, 1], [], []>} : vector<8x64xf32>, vector<64x64xf32>, vector<8x64xf32> -> vector<8x64xf32>
    %c0_21 = arith.constant 0 : index
    %c0_22 = arith.constant 0 : index
    %c0_23 = arith.constant 0 : index
    %27 = vector.load %arg4[%c0_21, %c0_22, %c0_23] : memref<3x64x64xf32, #tpu.memory_space<vmem>>, vector<1x64x64xf32>
    %28 = vector.shape_cast %27 : vector<1x64x64xf32> to vector<64x64xf32>
    %cst_24 = arith.constant dense<0.000000e+00> : vector<8x64xf32>
    %29 = tpu.matmul %22, %28, %cst_24 {dimension_numbers = #tpu.dot_dimension_numbers<[1], [0], [0], [1], [0, 0, 1, 1], [], []>} : vector<8x64xf32>, vector<64x64xf32>, vector<8x64xf32> -> vector<8x64xf32>
    %c2_25 = arith.constant 2 : index
    %c0_26 = arith.constant 0 : index
    %c0_27 = arith.constant 0 : index
    %30 = vector.load %arg4[%c2_25, %c0_26, %c0_27] : memref<3x64x64xf32, #tpu.memory_space<vmem>>, vector<1x64x64xf32>
    %31 = vector.shape_cast %30 : vector<1x64x64xf32> to vector<64x64xf32>
    %cst_28 = arith.constant dense<0.000000e+00> : vector<8x64xf32>
    %32 = tpu.matmul %22, %31, %cst_28 {dimension_numbers = #tpu.dot_dimension_numbers<[1], [0], [0], [1], [0, 0, 1, 1], [], []>} : vector<8x64xf32>, vector<64x64xf32>, vector<8x64xf32> -> vector<8x64xf32>
    %cst_29 = arith.constant 0.000000e+00 : f32
    %33 = vector.broadcast %cst_29 : f32 to vector<1x64xf32>
    %34 = vector.extract_strided_slice %29 {offsets = [0, 0], sizes = [7, 64], strides = [1, 1]} : vector<8x64xf32> to vector<7x64xf32>
    %35 = tpu.concatenate %33, %34 in 0 : vector<1x64xf32>, vector<7x64xf32> -> vector<8x64xf32>
    %36 = arith.addf %26, %35 : vector<8x64xf32>
    %37 = vector.extract_strided_slice %32 {offsets = [1, 0], sizes = [7, 64], strides = [1, 1]} : vector<8x64xf32> to vector<7x64xf32>
    %38 = tpu.concatenate %37, %33 in 0 : vector<7x64xf32>, vector<1x64xf32> -> vector<8x64xf32>
    %39 = arith.addf %36, %38 : vector<8x64xf32>
    %40 = vector.broadcast %23 : vector<1x64xf32> to vector<8x64xf32>
    %41 = arith.addf %39, %40 : vector<8x64xf32>
    %42 = arith.addf %41, %1 : vector<8x64xf32>
    %cst_30 = arith.constant 0.000000e+00 : f32
    %43 = vector.broadcast %cst_30 : f32 to vector<8x64xf32>
    %44 = arith.maximumf %42, %43 : vector<8x64xf32>
    %c0_31 = arith.constant 0 : index
    %c0_32 = arith.constant 0 : index
    %c0_33 = arith.constant 0 : index
    %45 = vector.load %arg6[%c0_31, %c0_32, %c0_33] : memref<1x8x64xf32, #tpu.memory_space<vmem>>, vector<1x8x64xf32>
    %46 = vector.shape_cast %45 : vector<1x8x64xf32> to vector<8x64xf32>
    %47 = vector.shape_cast %44 : vector<8x64xf32> to vector<1x8x64xf32>
    tpu.vector_store %arg6[%c0_31, %c0_32, %c0_33], %47 {strides = array<i32>} : memref<1x8x64xf32, #tpu.memory_space<vmem>>, vector<1x8x64xf32>,
    return
  }
  func.func @transform_0(%arg0: i32) -> (i32, i32, i32) {
    %c0_i32 = arith.constant 0 : i32
    %c0_i32_0 = arith.constant 0 : i32
    %c0_i32_1 = arith.constant 0 : i32
    return %arg0, %c0_i32, %c0_i32_0 : i32, i32, i32
  }
  func.func @transform_1(%arg0: i32) -> (i32, i32, i32) {
    %c0_i32 = arith.constant 0 : i32
    %c0_i32_0 = arith.constant 0 : i32
    %c0_i32_1 = arith.constant 0 : i32
    %c0_i32_2 = arith.constant 0 : i32
    return %c0_i32, %c0_i32_0, %c0_i32_1 : i32, i32, i32
  }
  func.func @transform_2(%arg0: i32) -> (i32, i32) {
    %c0_i32 = arith.constant 0 : i32
    %c0_i32_0 = arith.constant 0 : i32
    %c0_i32_1 = arith.constant 0 : i32
    return %c0_i32, %c0_i32_0 : i32, i32
  }
  func.func @transform_3(%arg0: i32) -> (i32, i32, i32) {
    %c0_i32 = arith.constant 0 : i32
    %c0_i32_0 = arith.constant 0 : i32
    %c0_i32_1 = arith.constant 0 : i32
    %c0_i32_2 = arith.constant 0 : i32
    return %c0_i32, %c0_i32_0, %c0_i32_1 : i32, i32, i32
  }
  func.func @transform_4(%arg0: i32) -> (i32, i32) {
    %c0_i32 = arith.constant 0 : i32
    %c0_i32_0 = arith.constant 0 : i32
    %c0_i32_1 = arith.constant 0 : i32
    return %c0_i32, %c0_i32_0 : i32, i32
  }
  func.func @transform_5(%arg0: i32) -> (i32, i32, i32) {
    %c0_i32 = arith.constant 0 : i32
    %c0_i32_0 = arith.constant 0 : i32
    %c0_i32_1 = arith.constant 0 : i32
    return %arg0, %c0_i32, %c0_i32_0 : i32, i32, i32
  }
}

module attributes {stable_mosaic.version = 11 : i64} {
  func.func @kernel(%arg0: i32, %arg1: memref<1x16x128xf32, #tpu.memory_space<vmem>>, %arg2: memref<3x128x128xf32, #tpu.memory_space<vmem>>, %arg3: memref<1x128xf32, #tpu.memory_space<vmem>>, %arg4: memref<3x128x128xf32, #tpu.memory_space<vmem>>, %arg5: memref<1x128xf32, #tpu.memory_space<vmem>>, %arg6: memref<1x16x128xf32, #tpu.memory_space<vmem>>) attributes {dimension_semantics = [#tpu.dimension_semantics<parallel>], iteration_bounds = array<i64: 2>, scalar_prefetch = 0 : i64, scratch_operands = 0 : i64, tpu.core_type = #tpu.core_type<tc>, window_params = [{transform_indices = @transform_0, window_bounds = array<i64: 1, 16, 128>}, {pipeline_mode = #tpu.pipeline_mode<synchronous>, transform_indices = @transform_1, window_bounds = array<i64: 3, 128, 128>}, {pipeline_mode = #tpu.pipeline_mode<synchronous>, transform_indices = @transform_2, window_bounds = array<i64: 1, 128>}, {pipeline_mode = #tpu.pipeline_mode<synchronous>, transform_indices = @transform_3, window_bounds = array<i64: 3, 128, 128>}, {pipeline_mode = #tpu.pipeline_mode<synchronous>, transform_indices = @transform_4, window_bounds = array<i64: 1, 128>}, {transform_indices = @transform_5, window_bounds = array<i64: 1, 16, 128>}]} {
    %c0 = arith.constant 0 : index
    %c0_0 = arith.constant 0 : index
    %c0_1 = arith.constant 0 : index
    %0 = vector.load %arg1[%c0, %c0_0, %c0_1] : memref<1x16x128xf32, #tpu.memory_space<vmem>>, vector<1x16x128xf32>
    %1 = vector.shape_cast %0 : vector<1x16x128xf32> to vector<16x128xf32>
    %c0_2 = arith.constant 0 : index
    %c0_3 = arith.constant 0 : index
    %2 = vector.load %arg3[%c0_2, %c0_3] : memref<1x128xf32, #tpu.memory_space<vmem>>, vector<1x128xf32>
    %c1 = arith.constant 1 : index
    %c0_4 = arith.constant 0 : index
    %c0_5 = arith.constant 0 : index
    %3 = vector.load %arg2[%c1, %c0_4, %c0_5] : memref<3x128x128xf32, #tpu.memory_space<vmem>>, vector<1x128x128xf32>
    %4 = vector.shape_cast %3 : vector<1x128x128xf32> to vector<128x128xf32>
    %cst = arith.constant dense<0.000000e+00> : vector<16x128xf32>
    %5 = tpu.matmul %1, %4, %cst {dimension_numbers = #tpu.dot_dimension_numbers<[1], [0], [0], [1], [0, 0, 1, 1], [], []>} : vector<16x128xf32>, vector<128x128xf32>, vector<16x128xf32> -> vector<16x128xf32>
    %c0_6 = arith.constant 0 : index
    %c0_7 = arith.constant 0 : index
    %c0_8 = arith.constant 0 : index
    %6 = vector.load %arg2[%c0_6, %c0_7, %c0_8] : memref<3x128x128xf32, #tpu.memory_space<vmem>>, vector<1x128x128xf32>
    %7 = vector.shape_cast %6 : vector<1x128x128xf32> to vector<128x128xf32>
    %cst_9 = arith.constant dense<0.000000e+00> : vector<16x128xf32>
    %8 = tpu.matmul %1, %7, %cst_9 {dimension_numbers = #tpu.dot_dimension_numbers<[1], [0], [0], [1], [0, 0, 1, 1], [], []>} : vector<16x128xf32>, vector<128x128xf32>, vector<16x128xf32> -> vector<16x128xf32>
    %c2 = arith.constant 2 : index
    %c0_10 = arith.constant 0 : index
    %c0_11 = arith.constant 0 : index
    %9 = vector.load %arg2[%c2, %c0_10, %c0_11] : memref<3x128x128xf32, #tpu.memory_space<vmem>>, vector<1x128x128xf32>
    %10 = vector.shape_cast %9 : vector<1x128x128xf32> to vector<128x128xf32>
    %cst_12 = arith.constant dense<0.000000e+00> : vector<16x128xf32>
    %11 = tpu.matmul %1, %10, %cst_12 {dimension_numbers = #tpu.dot_dimension_numbers<[1], [0], [0], [1], [0, 0, 1, 1], [], []>} : vector<16x128xf32>, vector<128x128xf32>, vector<16x128xf32> -> vector<16x128xf32>
    %cst_13 = arith.constant 0.000000e+00 : f32
    %12 = vector.broadcast %cst_13 : f32 to vector<1x128xf32>
    %13 = vector.extract_strided_slice %8 {offsets = [0, 0], sizes = [15, 128], strides = [1, 1]} : vector<16x128xf32> to vector<15x128xf32>
    %14 = tpu.concatenate %12, %13 in 0 : vector<1x128xf32>, vector<15x128xf32> -> vector<16x128xf32>
    %15 = arith.addf %5, %14 : vector<16x128xf32>
    %16 = vector.extract_strided_slice %11 {offsets = [1, 0], sizes = [15, 128], strides = [1, 1]} : vector<16x128xf32> to vector<15x128xf32>
    %17 = tpu.concatenate %16, %12 in 0 : vector<15x128xf32>, vector<1x128xf32> -> vector<16x128xf32>
    %18 = arith.addf %15, %17 : vector<16x128xf32>
    %19 = vector.broadcast %2 : vector<1x128xf32> to vector<16x128xf32>
    %20 = arith.addf %18, %19 : vector<16x128xf32>
    %cst_14 = arith.constant 0.000000e+00 : f32
    %21 = vector.broadcast %cst_14 : f32 to vector<16x128xf32>
    %22 = arith.maximumf %20, %21 : vector<16x128xf32>
    %c0_15 = arith.constant 0 : index
    %c0_16 = arith.constant 0 : index
    %23 = vector.load %arg5[%c0_15, %c0_16] : memref<1x128xf32, #tpu.memory_space<vmem>>, vector<1x128xf32>
    %c1_17 = arith.constant 1 : index
    %c0_18 = arith.constant 0 : index
    %c0_19 = arith.constant 0 : index
    %24 = vector.load %arg4[%c1_17, %c0_18, %c0_19] : memref<3x128x128xf32, #tpu.memory_space<vmem>>, vector<1x128x128xf32>
    %25 = vector.shape_cast %24 : vector<1x128x128xf32> to vector<128x128xf32>
    %cst_20 = arith.constant dense<0.000000e+00> : vector<16x128xf32>
    %26 = tpu.matmul %22, %25, %cst_20 {dimension_numbers = #tpu.dot_dimension_numbers<[1], [0], [0], [1], [0, 0, 1, 1], [], []>} : vector<16x128xf32>, vector<128x128xf32>, vector<16x128xf32> -> vector<16x128xf32>
    %c0_21 = arith.constant 0 : index
    %c0_22 = arith.constant 0 : index
    %c0_23 = arith.constant 0 : index
    %27 = vector.load %arg4[%c0_21, %c0_22, %c0_23] : memref<3x128x128xf32, #tpu.memory_space<vmem>>, vector<1x128x128xf32>
    %28 = vector.shape_cast %27 : vector<1x128x128xf32> to vector<128x128xf32>
    %cst_24 = arith.constant dense<0.000000e+00> : vector<16x128xf32>
    %29 = tpu.matmul %22, %28, %cst_24 {dimension_numbers = #tpu.dot_dimension_numbers<[1], [0], [0], [1], [0, 0, 1, 1], [], []>} : vector<16x128xf32>, vector<128x128xf32>, vector<16x128xf32> -> vector<16x128xf32>
    %c2_25 = arith.constant 2 : index
    %c0_26 = arith.constant 0 : index
    %c0_27 = arith.constant 0 : index
    %30 = vector.load %arg4[%c2_25, %c0_26, %c0_27] : memref<3x128x128xf32, #tpu.memory_space<vmem>>, vector<1x128x128xf32>
    %31 = vector.shape_cast %30 : vector<1x128x128xf32> to vector<128x128xf32>
    %cst_28 = arith.constant dense<0.000000e+00> : vector<16x128xf32>
    %32 = tpu.matmul %22, %31, %cst_28 {dimension_numbers = #tpu.dot_dimension_numbers<[1], [0], [0], [1], [0, 0, 1, 1], [], []>} : vector<16x128xf32>, vector<128x128xf32>, vector<16x128xf32> -> vector<16x128xf32>
    %cst_29 = arith.constant 0.000000e+00 : f32
    %33 = vector.broadcast %cst_29 : f32 to vector<1x128xf32>
    %34 = vector.extract_strided_slice %29 {offsets = [0, 0], sizes = [15, 128], strides = [1, 1]} : vector<16x128xf32> to vector<15x128xf32>
    %35 = tpu.concatenate %33, %34 in 0 : vector<1x128xf32>, vector<15x128xf32> -> vector<16x128xf32>
    %36 = arith.addf %26, %35 : vector<16x128xf32>
    %37 = vector.extract_strided_slice %32 {offsets = [1, 0], sizes = [15, 128], strides = [1, 1]} : vector<16x128xf32> to vector<15x128xf32>
    %38 = tpu.concatenate %37, %33 in 0 : vector<15x128xf32>, vector<1x128xf32> -> vector<16x128xf32>
    %39 = arith.addf %36, %38 : vector<16x128xf32>
    %40 = vector.broadcast %23 : vector<1x128xf32> to vector<16x128xf32>
    %41 = arith.addf %39, %40 : vector<16x128xf32>
    %42 = arith.addf %41, %1 : vector<16x128xf32>
    %cst_30 = arith.constant 0.000000e+00 : f32
    %43 = vector.broadcast %cst_30 : f32 to vector<16x128xf32>
    %44 = arith.maximumf %42, %43 : vector<16x128xf32>
    %c0_31 = arith.constant 0 : index
    %c0_32 = arith.constant 0 : index
    %c0_33 = arith.constant 0 : index
    %45 = vector.load %arg6[%c0_31, %c0_32, %c0_33] : memref<1x16x128xf32, #tpu.memory_space<vmem>>, vector<1x16x128xf32>
    %46 = vector.shape_cast %45 : vector<1x16x128xf32> to vector<16x128xf32>
    %47 = vector.shape_cast %44 : vector<16x128xf32> to vector<1x16x128xf32>
    tpu.vector_store %arg6[%c0_31, %c0_32, %c0_33], %47 {strides = array<i32>} : memref<1x16x128xf32, #tpu.memory_space<vmem>>, vector<1x16x128xf32>,
    return
  }
  func.func @transform_0(%arg0: i32) -> (i32, i32, i32) {
    %c0_i32 = arith.constant 0 : i32
    %c0_i32_0 = arith.constant 0 : i32
    %c0_i32_1 = arith.constant 0 : i32
    return %arg0, %c0_i32, %c0_i32_0 : i32, i32, i32
  }
  func.func @transform_1(%arg0: i32) -> (i32, i32, i32) {
    %c0_i32 = arith.constant 0 : i32
    %c0_i32_0 = arith.constant 0 : i32
    %c0_i32_1 = arith.constant 0 : i32
    %c0_i32_2 = arith.constant 0 : i32
    return %c0_i32, %c0_i32_0, %c0_i32_1 : i32, i32, i32
  }
  func.func @transform_2(%arg0: i32) -> (i32, i32) {
    %c0_i32 = arith.constant 0 : i32
    %c0_i32_0 = arith.constant 0 : i32
    %c0_i32_1 = arith.constant 0 : i32
    return %c0_i32, %c0_i32_0 : i32, i32
  }
  func.func @transform_3(%arg0: i32) -> (i32, i32, i32) {
    %c0_i32 = arith.constant 0 : i32
    %c0_i32_0 = arith.constant 0 : i32
    %c0_i32_1 = arith.constant 0 : i32
    %c0_i32_2 = arith.constant 0 : i32
    return %c0_i32, %c0_i32_0, %c0_i32_1 : i32, i32, i32
  }
  func.func @transform_4(%arg0: i32) -> (i32, i32) {
    %c0_i32 = arith.constant 0 : i32
    %c0_i32_0 = arith.constant 0 : i32
    %c0_i32_1 = arith.constant 0 : i32
    return %c0_i32, %c0_i32_0 : i32, i32
  }
  func.func @transform_5(%arg0: i32) -> (i32, i32, i32) {
    %c0_i32 = arith.constant 0 : i32
    %c0_i32_0 = arith.constant 0 : i32
    %c0_i32_1 = arith.constant 0 : i32
    return %arg0, %c0_i32, %c0_i32_0 : i32, i32, i32
  }
}

module attributes {stable_mosaic.version = 11 : i64} {
  func.func @kernel(%arg0: i32, %arg1: memref<1x8x64xf32, #tpu.memory_space<vmem>>, %arg2: memref<1x8x2x128xf32, #tpu.memory_space<vmem>>, %arg3: memref<3x64x64xf32, #tpu.memory_space<vmem>>, %arg4: memref<1x64xf32, #tpu.memory_space<vmem>>, %arg5: memref<3x64x128xf32, #tpu.memory_space<vmem>>, %arg6: memref<1x128xf32, #tpu.memory_space<vmem>>, %arg7: memref<64x128xf32, #tpu.memory_space<vmem>>, %arg8: memref<1x8x2x128xf32, #tpu.memory_space<vmem>>) attributes {dimension_semantics = [#tpu.dimension_semantics<parallel>], iteration_bounds = array<i64: 2>, scalar_prefetch = 0 : i64, scratch_operands = 0 : i64, tpu.core_type = #tpu.core_type<tc>, window_params = [{transform_indices = @transform_0, window_bounds = array<i64: 1, 8, 64>}, {transform_indices = @transform_1, window_bounds = array<i64: 1, 8, 2, 128>}, {pipeline_mode = #tpu.pipeline_mode<synchronous>, transform_indices = @transform_2, window_bounds = array<i64: 3, 64, 64>}, {pipeline_mode = #tpu.pipeline_mode<synchronous>, transform_indices = @transform_3, window_bounds = array<i64: 1, 64>}, {pipeline_mode = #tpu.pipeline_mode<synchronous>, transform_indices = @transform_4, window_bounds = array<i64: 3, 64, 128>}, {pipeline_mode = #tpu.pipeline_mode<synchronous>, transform_indices = @transform_5, window_bounds = array<i64: 1, 128>}, {pipeline_mode = #tpu.pipeline_mode<synchronous>, transform_indices = @transform_6, window_bounds = array<i64: 64, 128>}, {transform_indices = @transform_7, window_bounds = array<i64: 1, 8, 2, 128>}]} {
    %c0 = arith.constant 0 : index
    %c0_0 = arith.constant 0 : index
    %c0_1 = arith.constant 0 : index
    %0 = vector.load %arg1[%c0, %c0_0, %c0_1] : memref<1x8x64xf32, #tpu.memory_space<vmem>>, vector<1x8x64xf32>
    %1 = vector.shape_cast %0 : vector<1x8x64xf32> to vector<8x64xf32>
    %c0_2 = arith.constant 0 : index
    %c0_3 = arith.constant 0 : index
    %2 = vector.load %arg4[%c0_2, %c0_3] : memref<1x64xf32, #tpu.memory_space<vmem>>, vector<1x64xf32>
    %c1 = arith.constant 1 : index
    %c0_4 = arith.constant 0 : index
    %c0_5 = arith.constant 0 : index
    %3 = vector.load %arg3[%c1, %c0_4, %c0_5] : memref<3x64x64xf32, #tpu.memory_space<vmem>>, vector<1x64x64xf32>
    %4 = vector.shape_cast %3 : vector<1x64x64xf32> to vector<64x64xf32>
    %cst = arith.constant dense<0.000000e+00> : vector<8x64xf32>
    %5 = tpu.matmul %1, %4, %cst {dimension_numbers = #tpu.dot_dimension_numbers<[1], [0], [0], [1], [0, 0, 1, 1], [], []>} : vector<8x64xf32>, vector<64x64xf32>, vector<8x64xf32> -> vector<8x64xf32>
    %c0_6 = arith.constant 0 : index
    %c0_7 = arith.constant 0 : index
    %c0_8 = arith.constant 0 : index
    %6 = vector.load %arg3[%c0_6, %c0_7, %c0_8] : memref<3x64x64xf32, #tpu.memory_space<vmem>>, vector<1x64x64xf32>
    %7 = vector.shape_cast %6 : vector<1x64x64xf32> to vector<64x64xf32>
    %cst_9 = arith.constant dense<0.000000e+00> : vector<8x64xf32>
    %8 = tpu.matmul %1, %7, %cst_9 {dimension_numbers = #tpu.dot_dimension_numbers<[1], [0], [0], [1], [0, 0, 1, 1], [], []>} : vector<8x64xf32>, vector<64x64xf32>, vector<8x64xf32> -> vector<8x64xf32>
    %c2 = arith.constant 2 : index
    %c0_10 = arith.constant 0 : index
    %c0_11 = arith.constant 0 : index
    %9 = vector.load %arg3[%c2, %c0_10, %c0_11] : memref<3x64x64xf32, #tpu.memory_space<vmem>>, vector<1x64x64xf32>
    %10 = vector.shape_cast %9 : vector<1x64x64xf32> to vector<64x64xf32>
    %cst_12 = arith.constant dense<0.000000e+00> : vector<8x64xf32>
    %11 = tpu.matmul %1, %10, %cst_12 {dimension_numbers = #tpu.dot_dimension_numbers<[1], [0], [0], [1], [0, 0, 1, 1], [], []>} : vector<8x64xf32>, vector<64x64xf32>, vector<8x64xf32> -> vector<8x64xf32>
    %cst_13 = arith.constant 0.000000e+00 : f32
    %12 = vector.broadcast %cst_13 : f32 to vector<1x64xf32>
    %13 = vector.extract_strided_slice %8 {offsets = [0, 0], sizes = [7, 64], strides = [1, 1]} : vector<8x64xf32> to vector<7x64xf32>
    %14 = tpu.concatenate %12, %13 in 0 : vector<1x64xf32>, vector<7x64xf32> -> vector<8x64xf32>
    %15 = arith.addf %5, %14 : vector<8x64xf32>
    %16 = vector.extract_strided_slice %11 {offsets = [1, 0], sizes = [7, 64], strides = [1, 1]} : vector<8x64xf32> to vector<7x64xf32>
    %17 = tpu.concatenate %16, %12 in 0 : vector<7x64xf32>, vector<1x64xf32> -> vector<8x64xf32>
    %18 = arith.addf %15, %17 : vector<8x64xf32>
    %19 = vector.broadcast %2 : vector<1x64xf32> to vector<8x64xf32>
    %20 = arith.addf %18, %19 : vector<8x64xf32>
    %cst_14 = arith.constant 0.000000e+00 : f32
    %21 = vector.broadcast %cst_14 : f32 to vector<8x64xf32>
    %22 = arith.maximumf %20, %21 : vector<8x64xf32>
    %c0_15 = arith.constant 0 : index
    %c0_16 = arith.constant 0 : index
    %23 = vector.load %arg6[%c0_15, %c0_16] : memref<1x128xf32, #tpu.memory_space<vmem>>, vector<1x128xf32>
    %c1_17 = arith.constant 1 : index
    %c0_18 = arith.constant 0 : index
    %c0_19 = arith.constant 0 : index
    %24 = vector.load %arg5[%c1_17, %c0_18, %c0_19] : memref<3x64x128xf32, #tpu.memory_space<vmem>>, vector<1x64x128xf32>
    %25 = vector.shape_cast %24 : vector<1x64x128xf32> to vector<64x128xf32>
    %cst_20 = arith.constant dense<0.000000e+00> : vector<8x128xf32>
    %26 = tpu.matmul %22, %25, %cst_20 {dimension_numbers = #tpu.dot_dimension_numbers<[1], [0], [0], [1], [0, 0, 1, 1], [], []>} : vector<8x64xf32>, vector<64x128xf32>, vector<8x128xf32> -> vector<8x128xf32>
    %c0_21 = arith.constant 0 : index
    %c0_22 = arith.constant 0 : index
    %c0_23 = arith.constant 0 : index
    %27 = vector.load %arg5[%c0_21, %c0_22, %c0_23] : memref<3x64x128xf32, #tpu.memory_space<vmem>>, vector<1x64x128xf32>
    %28 = vector.shape_cast %27 : vector<1x64x128xf32> to vector<64x128xf32>
    %cst_24 = arith.constant dense<0.000000e+00> : vector<8x128xf32>
    %29 = tpu.matmul %22, %28, %cst_24 {dimension_numbers = #tpu.dot_dimension_numbers<[1], [0], [0], [1], [0, 0, 1, 1], [], []>} : vector<8x64xf32>, vector<64x128xf32>, vector<8x128xf32> -> vector<8x128xf32>
    %c2_25 = arith.constant 2 : index
    %c0_26 = arith.constant 0 : index
    %c0_27 = arith.constant 0 : index
    %30 = vector.load %arg5[%c2_25, %c0_26, %c0_27] : memref<3x64x128xf32, #tpu.memory_space<vmem>>, vector<1x64x128xf32>
    %31 = vector.shape_cast %30 : vector<1x64x128xf32> to vector<64x128xf32>
    %cst_28 = arith.constant dense<0.000000e+00> : vector<8x128xf32>
    %32 = tpu.matmul %22, %31, %cst_28 {dimension_numbers = #tpu.dot_dimension_numbers<[1], [0], [0], [1], [0, 0, 1, 1], [], []>} : vector<8x64xf32>, vector<64x128xf32>, vector<8x128xf32> -> vector<8x128xf32>
    %cst_29 = arith.constant 0.000000e+00 : f32
    %33 = vector.broadcast %cst_29 : f32 to vector<1x128xf32>
    %34 = vector.extract_strided_slice %29 {offsets = [0, 0], sizes = [7, 128], strides = [1, 1]} : vector<8x128xf32> to vector<7x128xf32>
    %35 = tpu.concatenate %33, %34 in 0 : vector<1x128xf32>, vector<7x128xf32> -> vector<8x128xf32>
    %36 = arith.addf %26, %35 : vector<8x128xf32>
    %37 = vector.extract_strided_slice %32 {offsets = [1, 0], sizes = [7, 128], strides = [1, 1]} : vector<8x128xf32> to vector<7x128xf32>
    %38 = tpu.concatenate %37, %33 in 0 : vector<7x128xf32>, vector<1x128xf32> -> vector<8x128xf32>
    %39 = arith.addf %36, %38 : vector<8x128xf32>
    %40 = vector.broadcast %23 : vector<1x128xf32> to vector<8x128xf32>
    %41 = arith.addf %39, %40 : vector<8x128xf32>
    %c0_30 = arith.constant 0 : index
    %c0_31 = arith.constant 0 : index
    %42 = vector.load %arg7[%c0_30, %c0_31] : memref<64x128xf32, #tpu.memory_space<vmem>>, vector<64x128xf32>
    %cst_32 = arith.constant dense<0.000000e+00> : vector<8x128xf32>
    %43 = tpu.matmul %1, %42, %cst_32 {dimension_numbers = #tpu.dot_dimension_numbers<[1], [0], [0], [1], [0, 0, 1, 1], [], []>} : vector<8x64xf32>, vector<64x128xf32>, vector<8x128xf32> -> vector<8x128xf32>
    %44 = arith.addf %41, %43 : vector<8x128xf32>
    %cst_33 = arith.constant 0.000000e+00 : f32
    %45 = vector.broadcast %cst_33 : f32 to vector<8x128xf32>
    %46 = arith.maximumf %44, %45 : vector<8x128xf32>
    %c0_34 = arith.constant 0 : index
    %c0_35 = arith.constant 0 : index
    %c0_36 = arith.constant 0 : index
    %c0_37 = arith.constant 0 : index
    %47 = vector.load %arg2[%c0_34, %c0_35, %c0_36, %c0_37] : memref<1x8x2x128xf32, #tpu.memory_space<vmem>>, vector<1x8x1x128xf32>
    %48 = vector.shape_cast %47 : vector<1x8x1x128xf32> to vector<8x128xf32>
    %49 = arith.addf %46, %48 : vector<8x128xf32>
    %c0_38 = arith.constant 0 : index
    %c0_39 = arith.constant 0 : index
    %c0_40 = arith.constant 0 : index
    %c0_41 = arith.constant 0 : index
    %50 = vector.load %arg8[%c0_38, %c0_39, %c0_40, %c0_41] : memref<1x8x2x128xf32, #tpu.memory_space<vmem>>, vector<1x8x1x128xf32>
    %51 = vector.shape_cast %50 : vector<1x8x1x128xf32> to vector<8x128xf32>
    %52 = vector.shape_cast %49 : vector<8x128xf32> to vector<1x8x1x128xf32>
    tpu.vector_store %arg8[%c0_38, %c0_39, %c0_40, %c0_41], %52 {strides = array<i32>} : memref<1x8x2x128xf32, #tpu.memory_space<vmem>>, vector<1x8x1x128xf32>,
    %c0_42 = arith.constant 0 : index
    %c0_43 = arith.constant 0 : index
    %c1_44 = arith.constant 1 : index
    %c0_45 = arith.constant 0 : index
    %53 = vector.load %arg2[%c0_42, %c0_43, %c1_44, %c0_45] : memref<1x8x2x128xf32, #tpu.memory_space<vmem>>, vector<1x8x1x128xf32>
    %54 = vector.shape_cast %53 : vector<1x8x1x128xf32> to vector<8x128xf32>
    %55 = arith.addf %46, %54 : vector<8x128xf32>
    %c0_46 = arith.constant 0 : index
    %c0_47 = arith.constant 0 : index
    %c1_48 = arith.constant 1 : index
    %c0_49 = arith.constant 0 : index
    %56 = vector.load %arg8[%c0_46, %c0_47, %c1_48, %c0_49] : memref<1x8x2x128xf32, #tpu.memory_space<vmem>>, vector<1x8x1x128xf32>
    %57 = vector.shape_cast %56 : vector<1x8x1x128xf32> to vector<8x128xf32>
    %58 = vector.shape_cast %55 : vector<8x128xf32> to vector<1x8x1x128xf32>
    tpu.vector_store %arg8[%c0_46, %c0_47, %c1_48, %c0_49], %58 {strides = array<i32>} : memref<1x8x2x128xf32, #tpu.memory_space<vmem>>, vector<1x8x1x128xf32>,
    return
  }
  func.func @transform_0(%arg0: i32) -> (i32, i32, i32) {
    %c0_i32 = arith.constant 0 : i32
    %c0_i32_0 = arith.constant 0 : i32
    %c0_i32_1 = arith.constant 0 : i32
    return %arg0, %c0_i32, %c0_i32_0 : i32, i32, i32
  }
  func.func @transform_1(%arg0: i32) -> (i32, i32, i32, i32) {
    %c0_i32 = arith.constant 0 : i32
    %c0_i32_0 = arith.constant 0 : i32
    %c0_i32_1 = arith.constant 0 : i32
    %c0_i32_2 = arith.constant 0 : i32
    return %arg0, %c0_i32, %c0_i32_0, %c0_i32_1 : i32, i32, i32, i32
  }
  func.func @transform_2(%arg0: i32) -> (i32, i32, i32) {
    %c0_i32 = arith.constant 0 : i32
    %c0_i32_0 = arith.constant 0 : i32
    %c0_i32_1 = arith.constant 0 : i32
    %c0_i32_2 = arith.constant 0 : i32
    return %c0_i32, %c0_i32_0, %c0_i32_1 : i32, i32, i32
  }
  func.func @transform_3(%arg0: i32) -> (i32, i32) {
    %c0_i32 = arith.constant 0 : i32
    %c0_i32_0 = arith.constant 0 : i32
    %c0_i32_1 = arith.constant 0 : i32
    return %c0_i32, %c0_i32_0 : i32, i32
  }
  func.func @transform_4(%arg0: i32) -> (i32, i32, i32) {
    %c0_i32 = arith.constant 0 : i32
    %c0_i32_0 = arith.constant 0 : i32
    %c0_i32_1 = arith.constant 0 : i32
    %c0_i32_2 = arith.constant 0 : i32
    return %c0_i32, %c0_i32_0, %c0_i32_1 : i32, i32, i32
  }
  func.func @transform_5(%arg0: i32) -> (i32, i32) {
    %c0_i32 = arith.constant 0 : i32
    %c0_i32_0 = arith.constant 0 : i32
    %c0_i32_1 = arith.constant 0 : i32
    return %c0_i32, %c0_i32_0 : i32, i32
  }
  func.func @transform_6(%arg0: i32) -> (i32, i32) {
    %c0_i32 = arith.constant 0 : i32
    %c0_i32_0 = arith.constant 0 : i32
    %c0_i32_1 = arith.constant 0 : i32
    return %c0_i32, %c0_i32_0 : i32, i32
  }
  func.func @transform_7(%arg0: i32) -> (i32, i32, i32, i32) {
    %c0_i32 = arith.constant 0 : i32
    %c0_i32_0 = arith.constant 0 : i32
    %c0_i32_1 = arith.constant 0 : i32
    %c0_i32_2 = arith.constant 0 : i32
    return %arg0, %c0_i32, %c0_i32_0, %c0_i32_1 : i32, i32, i32, i32
  }
}

module attributes {stable_mosaic.version = 11 : i64} {
  func.func @kernel(%arg0: i32, %arg1: memref<1x4x64xf32, #tpu.memory_space<vmem>>, %arg2: memref<1x4x2x64xf32, #tpu.memory_space<vmem>>, %arg3: memref<3x64x32xf32, #tpu.memory_space<vmem>>, %arg4: memref<1x32xf32, #tpu.memory_space<vmem>>, %arg5: memref<3x32x64xf32, #tpu.memory_space<vmem>>, %arg6: memref<1x64xf32, #tpu.memory_space<vmem>>, %arg7: memref<64x64xf32, #tpu.memory_space<vmem>>, %arg8: memref<1x4x2x64xf32, #tpu.memory_space<vmem>>) attributes {dimension_semantics = [#tpu.dimension_semantics<parallel>], iteration_bounds = array<i64: 2>, scalar_prefetch = 0 : i64, scratch_operands = 0 : i64, tpu.core_type = #tpu.core_type<tc>, window_params = [{transform_indices = @transform_0, window_bounds = array<i64: 1, 4, 64>}, {transform_indices = @transform_1, window_bounds = array<i64: 1, 4, 2, 64>}, {pipeline_mode = #tpu.pipeline_mode<synchronous>, transform_indices = @transform_2, window_bounds = array<i64: 3, 64, 32>}, {pipeline_mode = #tpu.pipeline_mode<synchronous>, transform_indices = @transform_3, window_bounds = array<i64: 1, 32>}, {pipeline_mode = #tpu.pipeline_mode<synchronous>, transform_indices = @transform_4, window_bounds = array<i64: 3, 32, 64>}, {pipeline_mode = #tpu.pipeline_mode<synchronous>, transform_indices = @transform_5, window_bounds = array<i64: 1, 64>}, {pipeline_mode = #tpu.pipeline_mode<synchronous>, transform_indices = @transform_6, window_bounds = array<i64: 64, 64>}, {transform_indices = @transform_7, window_bounds = array<i64: 1, 4, 2, 64>}]} {
    %c0 = arith.constant 0 : index
    %c0_0 = arith.constant 0 : index
    %c0_1 = arith.constant 0 : index
    %0 = vector.load %arg1[%c0, %c0_0, %c0_1] : memref<1x4x64xf32, #tpu.memory_space<vmem>>, vector<1x4x64xf32>
    %1 = vector.shape_cast %0 : vector<1x4x64xf32> to vector<4x64xf32>
    %c0_2 = arith.constant 0 : index
    %c0_3 = arith.constant 0 : index
    %2 = vector.load %arg4[%c0_2, %c0_3] : memref<1x32xf32, #tpu.memory_space<vmem>>, vector<1x32xf32>
    %c1 = arith.constant 1 : index
    %c0_4 = arith.constant 0 : index
    %c0_5 = arith.constant 0 : index
    %3 = vector.load %arg3[%c1, %c0_4, %c0_5] : memref<3x64x32xf32, #tpu.memory_space<vmem>>, vector<1x64x32xf32>
    %4 = vector.shape_cast %3 : vector<1x64x32xf32> to vector<64x32xf32>
    %cst = arith.constant dense<0.000000e+00> : vector<4x32xf32>
    %5 = tpu.matmul %1, %4, %cst {dimension_numbers = #tpu.dot_dimension_numbers<[1], [0], [0], [1], [0, 0, 1, 1], [], []>} : vector<4x64xf32>, vector<64x32xf32>, vector<4x32xf32> -> vector<4x32xf32>
    %c0_6 = arith.constant 0 : index
    %c0_7 = arith.constant 0 : index
    %c0_8 = arith.constant 0 : index
    %6 = vector.load %arg3[%c0_6, %c0_7, %c0_8] : memref<3x64x32xf32, #tpu.memory_space<vmem>>, vector<1x64x32xf32>
    %7 = vector.shape_cast %6 : vector<1x64x32xf32> to vector<64x32xf32>
    %cst_9 = arith.constant dense<0.000000e+00> : vector<4x32xf32>
    %8 = tpu.matmul %1, %7, %cst_9 {dimension_numbers = #tpu.dot_dimension_numbers<[1], [0], [0], [1], [0, 0, 1, 1], [], []>} : vector<4x64xf32>, vector<64x32xf32>, vector<4x32xf32> -> vector<4x32xf32>
    %c2 = arith.constant 2 : index
    %c0_10 = arith.constant 0 : index
    %c0_11 = arith.constant 0 : index
    %9 = vector.load %arg3[%c2, %c0_10, %c0_11] : memref<3x64x32xf32, #tpu.memory_space<vmem>>, vector<1x64x32xf32>
    %10 = vector.shape_cast %9 : vector<1x64x32xf32> to vector<64x32xf32>
    %cst_12 = arith.constant dense<0.000000e+00> : vector<4x32xf32>
    %11 = tpu.matmul %1, %10, %cst_12 {dimension_numbers = #tpu.dot_dimension_numbers<[1], [0], [0], [1], [0, 0, 1, 1], [], []>} : vector<4x64xf32>, vector<64x32xf32>, vector<4x32xf32> -> vector<4x32xf32>
    %cst_13 = arith.constant 0.000000e+00 : f32
    %12 = vector.broadcast %cst_13 : f32 to vector<1x32xf32>
    %13 = vector.extract_strided_slice %8 {offsets = [0, 0], sizes = [3, 32], strides = [1, 1]} : vector<4x32xf32> to vector<3x32xf32>
    %14 = tpu.concatenate %12, %13 in 0 : vector<1x32xf32>, vector<3x32xf32> -> vector<4x32xf32>
    %15 = arith.addf %5, %14 : vector<4x32xf32>
    %16 = vector.extract_strided_slice %11 {offsets = [1, 0], sizes = [3, 32], strides = [1, 1]} : vector<4x32xf32> to vector<3x32xf32>
    %17 = tpu.concatenate %16, %12 in 0 : vector<3x32xf32>, vector<1x32xf32> -> vector<4x32xf32>
    %18 = arith.addf %15, %17 : vector<4x32xf32>
    %19 = vector.broadcast %2 : vector<1x32xf32> to vector<4x32xf32>
    %20 = arith.addf %18, %19 : vector<4x32xf32>
    %cst_14 = arith.constant 0.000000e+00 : f32
    %21 = vector.broadcast %cst_14 : f32 to vector<4x32xf32>
    %22 = arith.maximumf %20, %21 : vector<4x32xf32>
    %c0_15 = arith.constant 0 : index
    %c0_16 = arith.constant 0 : index
    %23 = vector.load %arg6[%c0_15, %c0_16] : memref<1x64xf32, #tpu.memory_space<vmem>>, vector<1x64xf32>
    %c1_17 = arith.constant 1 : index
    %c0_18 = arith.constant 0 : index
    %c0_19 = arith.constant 0 : index
    %24 = vector.load %arg5[%c1_17, %c0_18, %c0_19] : memref<3x32x64xf32, #tpu.memory_space<vmem>>, vector<1x32x64xf32>
    %25 = vector.shape_cast %24 : vector<1x32x64xf32> to vector<32x64xf32>
    %cst_20 = arith.constant dense<0.000000e+00> : vector<4x64xf32>
    %26 = tpu.matmul %22, %25, %cst_20 {dimension_numbers = #tpu.dot_dimension_numbers<[1], [0], [0], [1], [0, 0, 1, 1], [], []>} : vector<4x32xf32>, vector<32x64xf32>, vector<4x64xf32> -> vector<4x64xf32>
    %c0_21 = arith.constant 0 : index
    %c0_22 = arith.constant 0 : index
    %c0_23 = arith.constant 0 : index
    %27 = vector.load %arg5[%c0_21, %c0_22, %c0_23] : memref<3x32x64xf32, #tpu.memory_space<vmem>>, vector<1x32x64xf32>
    %28 = vector.shape_cast %27 : vector<1x32x64xf32> to vector<32x64xf32>
    %cst_24 = arith.constant dense<0.000000e+00> : vector<4x64xf32>
    %29 = tpu.matmul %22, %28, %cst_24 {dimension_numbers = #tpu.dot_dimension_numbers<[1], [0], [0], [1], [0, 0, 1, 1], [], []>} : vector<4x32xf32>, vector<32x64xf32>, vector<4x64xf32> -> vector<4x64xf32>
    %c2_25 = arith.constant 2 : index
    %c0_26 = arith.constant 0 : index
    %c0_27 = arith.constant 0 : index
    %30 = vector.load %arg5[%c2_25, %c0_26, %c0_27] : memref<3x32x64xf32, #tpu.memory_space<vmem>>, vector<1x32x64xf32>
    %31 = vector.shape_cast %30 : vector<1x32x64xf32> to vector<32x64xf32>
    %cst_28 = arith.constant dense<0.000000e+00> : vector<4x64xf32>
    %32 = tpu.matmul %22, %31, %cst_28 {dimension_numbers = #tpu.dot_dimension_numbers<[1], [0], [0], [1], [0, 0, 1, 1], [], []>} : vector<4x32xf32>, vector<32x64xf32>, vector<4x64xf32> -> vector<4x64xf32>
    %cst_29 = arith.constant 0.000000e+00 : f32
    %33 = vector.broadcast %cst_29 : f32 to vector<1x64xf32>
    %34 = vector.extract_strided_slice %29 {offsets = [0, 0], sizes = [3, 64], strides = [1, 1]} : vector<4x64xf32> to vector<3x64xf32>
    %35 = tpu.concatenate %33, %34 in 0 : vector<1x64xf32>, vector<3x64xf32> -> vector<4x64xf32>
    %36 = arith.addf %26, %35 : vector<4x64xf32>
    %37 = vector.extract_strided_slice %32 {offsets = [1, 0], sizes = [3, 64], strides = [1, 1]} : vector<4x64xf32> to vector<3x64xf32>
    %38 = tpu.concatenate %37, %33 in 0 : vector<3x64xf32>, vector<1x64xf32> -> vector<4x64xf32>
    %39 = arith.addf %36, %38 : vector<4x64xf32>
    %40 = vector.broadcast %23 : vector<1x64xf32> to vector<4x64xf32>
    %41 = arith.addf %39, %40 : vector<4x64xf32>
    %c0_30 = arith.constant 0 : index
    %c0_31 = arith.constant 0 : index
    %42 = vector.load %arg7[%c0_30, %c0_31] : memref<64x64xf32, #tpu.memory_space<vmem>>, vector<64x64xf32>
    %cst_32 = arith.constant dense<0.000000e+00> : vector<4x64xf32>
    %43 = tpu.matmul %1, %42, %cst_32 {dimension_numbers = #tpu.dot_dimension_numbers<[1], [0], [0], [1], [0, 0, 1, 1], [], []>} : vector<4x64xf32>, vector<64x64xf32>, vector<4x64xf32> -> vector<4x64xf32>
    %44 = arith.addf %41, %43 : vector<4x64xf32>
    %cst_33 = arith.constant 0.000000e+00 : f32
    %45 = vector.broadcast %cst_33 : f32 to vector<4x64xf32>
    %46 = arith.maximumf %44, %45 : vector<4x64xf32>
    %c0_34 = arith.constant 0 : index
    %c0_35 = arith.constant 0 : index
    %c0_36 = arith.constant 0 : index
    %c0_37 = arith.constant 0 : index
    %47 = vector.load %arg2[%c0_34, %c0_35, %c0_36, %c0_37] : memref<1x4x2x64xf32, #tpu.memory_space<vmem>>, vector<1x4x1x64xf32>
    %48 = vector.shape_cast %47 : vector<1x4x1x64xf32> to vector<4x64xf32>
    %49 = arith.addf %46, %48 : vector<4x64xf32>
    %c0_38 = arith.constant 0 : index
    %c0_39 = arith.constant 0 : index
    %c0_40 = arith.constant 0 : index
    %c0_41 = arith.constant 0 : index
    %50 = vector.load %arg8[%c0_38, %c0_39, %c0_40, %c0_41] : memref<1x4x2x64xf32, #tpu.memory_space<vmem>>, vector<1x4x1x64xf32>
    %51 = vector.shape_cast %50 : vector<1x4x1x64xf32> to vector<4x64xf32>
    %52 = vector.shape_cast %49 : vector<4x64xf32> to vector<1x4x1x64xf32>
    tpu.vector_store %arg8[%c0_38, %c0_39, %c0_40, %c0_41], %52 {strides = array<i32>} : memref<1x4x2x64xf32, #tpu.memory_space<vmem>>, vector<1x4x1x64xf32>,
    %c0_42 = arith.constant 0 : index
    %c0_43 = arith.constant 0 : index
    %c1_44 = arith.constant 1 : index
    %c0_45 = arith.constant 0 : index
    %53 = vector.load %arg2[%c0_42, %c0_43, %c1_44, %c0_45] : memref<1x4x2x64xf32, #tpu.memory_space<vmem>>, vector<1x4x1x64xf32>
    %54 = vector.shape_cast %53 : vector<1x4x1x64xf32> to vector<4x64xf32>
    %55 = arith.addf %46, %54 : vector<4x64xf32>
    %c0_46 = arith.constant 0 : index
    %c0_47 = arith.constant 0 : index
    %c1_48 = arith.constant 1 : index
    %c0_49 = arith.constant 0 : index
    %56 = vector.load %arg8[%c0_46, %c0_47, %c1_48, %c0_49] : memref<1x4x2x64xf32, #tpu.memory_space<vmem>>, vector<1x4x1x64xf32>
    %57 = vector.shape_cast %56 : vector<1x4x1x64xf32> to vector<4x64xf32>
    %58 = vector.shape_cast %55 : vector<4x64xf32> to vector<1x4x1x64xf32>
    tpu.vector_store %arg8[%c0_46, %c0_47, %c1_48, %c0_49], %58 {strides = array<i32>} : memref<1x4x2x64xf32, #tpu.memory_space<vmem>>, vector<1x4x1x64xf32>,
    return
  }
  func.func @transform_0(%arg0: i32) -> (i32, i32, i32) {
    %c0_i32 = arith.constant 0 : i32
    %c0_i32_0 = arith.constant 0 : i32
    %c0_i32_1 = arith.constant 0 : i32
    return %arg0, %c0_i32, %c0_i32_0 : i32, i32, i32
  }
  func.func @transform_1(%arg0: i32) -> (i32, i32, i32, i32) {
    %c0_i32 = arith.constant 0 : i32
    %c0_i32_0 = arith.constant 0 : i32
    %c0_i32_1 = arith.constant 0 : i32
    %c0_i32_2 = arith.constant 0 : i32
    return %arg0, %c0_i32, %c0_i32_0, %c0_i32_1 : i32, i32, i32, i32
  }
  func.func @transform_2(%arg0: i32) -> (i32, i32, i32) {
    %c0_i32 = arith.constant 0 : i32
    %c0_i32_0 = arith.constant 0 : i32
    %c0_i32_1 = arith.constant 0 : i32
    %c0_i32_2 = arith.constant 0 : i32
    return %c0_i32, %c0_i32_0, %c0_i32_1 : i32, i32, i32
  }
  func.func @transform_3(%arg0: i32) -> (i32, i32) {
    %c0_i32 = arith.constant 0 : i32
    %c0_i32_0 = arith.constant 0 : i32
    %c0_i32_1 = arith.constant 0 : i32
    return %c0_i32, %c0_i32_0 : i32, i32
  }
  func.func @transform_4(%arg0: i32) -> (i32, i32, i32) {
    %c0_i32 = arith.constant 0 : i32
    %c0_i32_0 = arith.constant 0 : i32
    %c0_i32_1 = arith.constant 0 : i32
    %c0_i32_2 = arith.constant 0 : i32
    return %c0_i32, %c0_i32_0, %c0_i32_1 : i32, i32, i32
  }
  func.func @transform_5(%arg0: i32) -> (i32, i32) {
    %c0_i32 = arith.constant 0 : i32
    %c0_i32_0 = arith.constant 0 : i32
    %c0_i32_1 = arith.constant 0 : i32
    return %c0_i32, %c0_i32_0 : i32, i32
  }
  func.func @transform_6(%arg0: i32) -> (i32, i32) {
    %c0_i32 = arith.constant 0 : i32
    %c0_i32_0 = arith.constant 0 : i32
    %c0_i32_1 = arith.constant 0 : i32
    return %c0_i32, %c0_i32_0 : i32, i32
  }
  func.func @transform_7(%arg0: i32) -> (i32, i32, i32, i32) {
    %c0_i32 = arith.constant 0 : i32
    %c0_i32_0 = arith.constant 0 : i32
    %c0_i32_1 = arith.constant 0 : i32
    %c0_i32_2 = arith.constant 0 : i32
    return %arg0, %c0_i32, %c0_i32_0, %c0_i32_1 : i32, i32, i32, i32
  }
}

</mosaic_0001>

<bundles_post_ra>
// kernel: _lambda_.10
= control target key start
LH: loop header
LB: loop body
LE: loop exit
PB: predicated region body
PF: predicated region fallthrough
CT: control target
= control target key end

     0   :  { %s1445_s21 = smov 0   ;;  %s1916_s0 = inlined_call_operand.vmem [shape: f32[2,8,2,128], index: 0, kind: input, shape index: {}]   ;;  %s1917_s1 = inlined_call_operand.vmem [shape: f32[3,128,64], index: 1, kind: input, shape index: {}]   ;;  %s1918_s2 = inlined_call_operand.vmem [shape: f32[1,64], index: 2, kind: input, shape index: {}]   ;;  %s1919_s3 = inlined_call_operand.vmem [shape: f32[3,64,64], index: 3, kind: input, shape index: {}]   ;;  %s1920_s4 = inlined_call_operand.vmem [shape: f32[1,64], index: 4, kind: input, shape index: {}]   ;;  %s1921_s5 = inlined_call_operand.vmem [shape: f32[128,64], index: 5, kind: input, shape index: {}]   ;;  %s1922_s6 = inlined_call_operand.vmem [shape: f32[2,8,64], index: 6, kind: output, shape index: {}]  }
   0x1 LB: > { %s1032_s22 = sadd.s32 4294967295, %s1405_s21   ;;  %p1036_p0 = scmp.ge.s32.totalorder %s1405_s21, 1  ;;  %s1405_s21 = sphi %s1445_s21, %s16_s21  }
   0x2   : > { %p212_p1 = scmp.lt.s32.totalorder %s1405_s21, 3 }
   0x4   : > { %p213_p2 = pnand %p1036_p0, %p212_p1 }
   0x5   : > { %p241_p3 = scmp.lt.s32.totalorder (!%p213_p2), %s1032_s22, 1  ;;  %s1408_s25 = smov (!%p213_p2), 120  }
   0x6   : > { %216 = sbr.rel (%p213_p2) target bundleno = 638 (0x27e), region = 44 }
   0xb   : > { %v363_v0 = vld [vmem:[%s1917_s1 + $0x78] sm:$0xff]  ;;  %s1924_s22 = smov (!%p241_p3, %s1032_s22), 1  ;;  %v1407_v2 = vmov 0.0   ;;  %v362_v3 = vld [vmem:[%s1917_s1 + $0x70] sm:$0xff]  ;;  %v361_v5 = vld [vmem:[%s1917_s1 + $0x68] sm:$0xff]  ;;  %vm283_vm0 = vcmask 1041409  }
   0xc   : > { %v1071_v1 = vld [vmem:[%s1917_s1 + $0x178] sm:$0xff]  ;;  %1191 = vmatprep.subr.mxu0 %v1407_v2  ;;  %1226 = vmatprep.subr.mxu1 %v1407_v2  ;;  %v1070_v4 = vld [vmem:[%s1917_s1 + $0x170] sm:$0xff]  ;;  %s1095_s7 = sshll.u32 %s1924_s22, 4  ;;  %v1069_v6 = vld [vmem:[%s1917_s1 + $0x168] sm:$0xff]  ;;  %vm286_vm1 = vcmask 1042434   ;;  %vm289_vm2 = vcmask 1043459  }
   0xd   : > { %1192 = vmatpush3.msra.mxu0 %v363_v0  ;;  %1227 = vmatpush3.msra.mxu1 %v1071_v1  ;;  %s1481_s14 = scalar_lea.vmem %s1916_s0, %s1095_s7  ;;  %v360_v7 = vld [vmem:[%s1917_s1 + $0x60] sm:$0xff]  ;;  %v359_v12 = vld [vmem:[%s1917_s1 + $0x58] sm:$0xff]  ;;  %v358_v20 = vld [vmem:[%s1917_s1 + $0x50] sm:$0xff]  ;;  %vm292_vm3 = vcmask 1044484   ;;  %vm295_vm4 = vcmask 1045509   ;;  %vm298_vm5 = vcmask 1046534  }
   0xe   : > { %1193 = vmatprep.subr.mxu0 %v1407_v2  ;;  %1228 = vmatprep.subr.mxu1 %v1407_v2  ;;  %v1068_v8 = vld [vmem:[%s1917_s1 + $0x160] sm:$0xff]  ;;  %v1067_v13 = vld [vmem:[%s1917_s1 + $0x158] sm:$0xff]  ;;  %v254_v15 = vld [vmem:[%s1481_s14 + $0x8] sm:$0x1]  ;;  %vm301_vm6 = vcmask 1047559   ;;  %vm1409_vm7 = vmmov 0  }
   0xf   : > { %1194 = vmatpush3.msra.mxu0 %v362_v3  ;;  %1229 = vmatpush3.msra.mxu1 %v1070_v4  ;;  %v250_v9 = vld [vmem:[%s1481_s14] sm:$0x1]  ;;  %v251_v10 = vld [vmem:[%s1481_s14 + $0x2] sm:$0x1]  ;;  %v252_v11 = vld [vmem:[%s1481_s14 + $0x4] sm:$0x1] }
  0x10   : > { %1195 = vmatprep.subr.mxu0 %v1407_v2  ;;  %1230 = vmatprep.subr.mxu1 %v1407_v2  ;;  %v253_v14 = vld [vmem:[%s1481_s14 + $0x6] sm:$0x1]  ;;  %v255_v16 = vld [vmem:[%s1481_s14 + $0xa] sm:$0x1]  ;;  %v256_v17 = vld [vmem:[%s1481_s14 + $0xc] sm:$0x1] }
  0x11   : > { %1196 = vmatpush3.msra.mxu0 %v361_v5  ;;  %1231 = vmatpush3.msra.mxu1 %v1069_v6  ;;  %v257_v18 = vld [vmem:[%s1481_s14 + $0xe] sm:$0x1]  ;;  %v258_v19 = vld [vmem:[%s1481_s14 + $0x1] sm:$0x1]  ;;  %v1066_v21 = vld [vmem:[%s1917_s1 + $0x150] sm:$0xff]  ;;  %vm547_vm8 = vcmask 1040384  }
  0x12   : > { %1197 = vmatprep.subr.mxu0 %v1407_v2  ;;  %1232 = vmatprep.subr.mxu1 %v1407_v2  ;;  %v259_v22 = vld [vmem:[%s1481_s14 + $0x3] sm:$0x1]  ;;  %v260_v23 = vld [vmem:[%s1481_s14 + $0x5] sm:$0x1]  ;;  %v261_v24 = vld [vmem:[%s1481_s14 + $0x7] sm:$0x1]  ;;  %v1517_v25 = vmax.f32 %v250_v9, %v258_v19 }
  0x13   : > { %1198 = vmatpush3.msra.mxu0 %v360_v7  ;;  %1233 = vmatpush3.msra.mxu1 %v1068_v8  ;;  %v262_v26 = vld [vmem:[%s1481_s14 + $0x9] sm:$0x1]  ;;  %v263_v27 = vld [vmem:[%s1481_s14 + $0xb] sm:$0x1]  ;;  %v264_v28 = vld [vmem:[%s1481_s14 + $0xd] sm:$0x1]  ;;  %v1522_v29 = vmax.f32 %v251_v10, %v259_v22  ;;  %v1524_v30 = vmax.f32 %v252_v11, %v260_v23  ;;  %v1526_v31 = vmax.f32 %v253_v14, %v261_v24 }
  0x14   : > { %1199 = vmatprep.subr.mxu0 %v1407_v2  ;;  %1234 = vmatprep.subr.mxu1 %v1407_v2  ;;  %v265_v32 = vld [vmem:[%s1481_s14 + $0xf] sm:$0x1]  ;;  %v1531_v33 = vmax.f32 %v254_v15, %v262_v26  ;;  %v1533_v34 = vmax.f32 %v255_v16, %v263_v27  ;;  %v1535_v35 = vmax.f32 %v256_v17, %v264_v28  ;;  %v356_v45 = vld [vmem:[%s1917_s1 + $0x40] sm:$0xff]  ;;  %v355_v51 = vld [vmem:[%s1917_s1 + $0x38] sm:$0xff]  ;;  %vm622_vm9 = vcmask 1046528   ;;  %s1039_s8 = sshll.u32 %s1924_s22, 3 }
  0x15   : > { %1200 = vmatpush3.msra.mxu0 %v359_v12  ;;  %1235 = vmatpush3.msra.mxu1 %v1067_v13  ;;  %v1537_v36 = vmax.f32 %v257_v18, %v265_v32  ;;  %v282_v37 = vrot.slane %v1522_v29, 7  ;;  %v285_v38 = vrot.slane %v1524_v30, 6  ;;  %v288_v39 = vrot.slane %v1526_v31, 5  ;;  %v357_v40 = vld [vmem:[%s1917_s1 + $0x48] sm:$0xff]  ;;  %v1064_v46 = vld [vmem:[%s1917_s1 + $0x140] sm:$0xff]  ;;  %v1063_v52 = vld [vmem:[%s1917_s1 + $0x138] sm:$0xff]  ;;  %s249_s11 = scalar_lea.vmem %s1922_s6, %s1039_s8 }
  0x16   : > { %1201 = vmatprep.subr.mxu0 %v1407_v2  ;;  %1236 = vmatprep.subr.mxu1 %v1407_v2  ;;  %v1065_v41 = vld [vmem:[%s1917_s1 + $0x148] sm:$0xff]  ;;  %v291_v42 = vrot.slane %v1531_v33, 4  ;;  %v294_v44 = vrot.slane %v1533_v34, 3  ;;  %v297_v48 = vrot.slane %v1535_v35, 2  ;;  %v354_v55 = vld [vmem:[%s1917_s1 + $0x30] sm:$0xff]  ;;  %v352_v61 = vld [vmem:[%s1917_s1 + $0x20] sm:$0xff] }
  0x17   : > { %1202 = vmatpush3.msra.mxu0 %v358_v20  ;;  %1237 = vmatpush3.msra.mxu1 %v1066_v21  ;;  %v284_v43 = vsel %vm283_vm0, %v282_v37, %v1517_v25  ;;  %v300_v50 = vrot.slane %v1537_v36, 1  ;;  %v1062_v57 = vld [vmem:[%s1917_s1 + $0x130] sm:$0xff]  ;;  %v353_v59 = vld [vmem:[%s1917_s1 + $0x28] sm:$0xff]  ;;  %v1060_v62 = vld [vmem:[%s1917_s1 + $0x120] sm:$0xff]  ;;  %vm651_vm10 = vcmask 523264  }
  0x18   : > { %1203 = vmatprep.subr.mxu0 %v1407_v2  ;;  %1238 = vmatprep.subr.mxu1 %v1407_v2  ;;  %v287_v47 = vsel %vm286_vm1, %v285_v38, %v284_v43  ;;  %v1061_v60 = vld [vmem:[%s1917_s1 + $0x128] sm:$0xff]  ;;  %v351_v63 = vld [vmem:[%s1917_s1 + $0x18] sm:$0xff]  ;;  %v350_v1 = vld [vmem:[%s1917_s1 + $0x10] sm:$0xff] }
  0x19   : > { %1204 = vmatpush3.msra.mxu0 %v357_v40  ;;  %1239 = vmatpush3.msra.mxu1 %v1065_v41  ;;  %v290_v49 = vsel %vm289_vm2, %v288_v39, %v287_v47  ;;  %v1059_v0 = vld [vmem:[%s1917_s1 + $0x118] sm:$0xff]  ;;  %v1058_v3 = vld [vmem:[%s1917_s1 + $0x110] sm:$0xff]  ;;  %v349_v4 = vld [vmem:[%s1917_s1 + $0x8] sm:$0xff] }
  0x1a   : > { %1205 = vmatprep.subr.mxu0 %v1407_v2  ;;  %1240 = vmatprep.subr.mxu1 %v1407_v2  ;;  %v293_v53 = vsel %vm292_vm3, %v291_v42, %v290_v49  ;;  %v1057_v5 = vld [vmem:[%s1917_s1 + $0x108] sm:$0xff]  ;;  %v348_v6 = vld [vmem:[%s1917_s1] sm:$0xff]  ;;  %v1054_v39 = vld [vmem:[%s1917_s1 + $0xf0] sm:$0xff] }
  0x1b   : > { %1206 = vmatpush3.msra.mxu0 %v356_v45  ;;  %1241 = vmatpush3.msra.mxu1 %v1064_v46  ;;  %v296_v54 = vsel %vm295_vm4, %v294_v44, %v293_v53  ;;  %v1056_v7 = vld [vmem:[%s1917_s1 + $0x100] sm:$0xff]  ;;  %v1053_v40 = vld [vmem:[%s1917_s1 + $0xe8] sm:$0xff]  ;;  %v1051_v42 = vld [vmem:[%s1917_s1 + $0xd8] sm:$0xff] }
  0x1c   : > { %1207 = vmatprep.subr.mxu0 %v1407_v2  ;;  %1242 = vmatprep.subr.mxu1 %v1407_v2  ;;  %v299_v56 = vsel %vm298_vm5, %v297_v48, %v296_v54  ;;  %v1052_v41 = vld [vmem:[%s1917_s1 + $0xe0] sm:$0xff]  ;;  %v1050_v43 = vld [vmem:[%s1917_s1 + $0xd0] sm:$0xff]  ;;  %v1049_v44 = vld [vmem:[%s1917_s1 + $0xc8] sm:$0xff] }
  0x1d   : > { %1208 = vmatpush3.msra.mxu0 %v355_v51  ;;  %1243 = vmatpush3.msra.mxu1 %v1063_v52  ;;  %v302_v58 = vsel %vm301_vm6, %v300_v50, %v299_v56  ;;  %v1048_v45 = vld [vmem:[%s1917_s1 + $0xc0] sm:$0xff]  ;;  %v1047_v46 = vld [vmem:[%s1917_s1 + $0xb8] sm:$0xff]  ;;  %v1046_v47 = vld [vmem:[%s1917_s1 + $0xb0] sm:$0xff] }
  0x1e   : > { %1209 = vmatprep.subr.mxu0 %v1407_v2  ;;  %1244 = vmatprep.subr.mxu1 %v1407_v2  ;;  %v1045_v48 = vld [vmem:[%s1917_s1 + $0xa8] sm:$0xff]  ;;  %v1044_v49 = vld [vmem:[%s1917_s1 + $0xa0] sm:$0xff]  ;;  %v1043_v50 = vld [vmem:[%s1917_s1 + $0x98] sm:$0xff] }
  0x1f   : > { %303 = vrot.lane.b32.xlu0 %v302_v58, %s1408_s25  ;;  %1210 = vmatpush3.msra.mxu0 %v354_v55  ;;  %v1042_v51 = vld [vmem:[%s1917_s1 + $0x90] sm:$0xff]  ;;  %v1041_v52 = vld [vmem:[%s1917_s1 + $0x88] sm:$0xff]  ;;  %v1040_v53 = vld [vmem:[%s1917_s1 + $0x80] sm:$0xff] }
  0x20   : > { %1211 = vmatprep.subr.mxu0 %v1407_v2  ;;  %1245 = vmatpush3.msra.mxu1 %v1062_v57  ;;  %v650_v54 = vld [vmem:[%s1919_s3 + $0x38] sm:$0xff]  ;;  %v649_v56 = vld [vmem:[%s1919_s3 + $0x30] sm:$0xff]  ;;  %v648_v58 = vld [vmem:[%s1919_s3 + $0x28] sm:$0xff] }
  0x21   : > { %1212 = vmatpush3.msra.mxu0 %v353_v59  ;;  %1246 = vmatprep.subr.mxu1 %v1407_v2  ;;  %v1080_v55 = vld [vmem:[%s1919_s3 + $0x78] sm:$0xff]  ;;  %v1079_v57 = vld [vmem:[%s1919_s3 + $0x70] sm:$0xff]  ;;  %v1078_v59 = vld [vmem:[%s1919_s3 + $0x68] sm:$0xff] }
  0x22   : > { %1213 = vmatprep.subr.mxu0 %v1407_v2  ;;  %1247 = vmatpush3.msra.mxu1 %v1061_v60  ;;  %v647_v60 = vld [vmem:[%s1919_s3 + $0x20] sm:$0xff] }
  0x23   : > { %1214 = vmatpush3.msra.mxu0 %v352_v61  ;;  %1248 = vmatprep.subr.mxu1 %v1407_v2  ;;  %v1077_v61 = vld [vmem:[%s1919_s3 + $0x60] sm:$0xff] }
  0x24   : > { %1215 = vmatprep.subr.mxu0 %v1407_v2  ;;  %1249 = vmatpush3.msra.mxu1 %v1060_v62  ;;  %v646_v62 = vld [vmem:[%s1919_s3 + $0x18] sm:$0xff] }
  0x25   : > { %1216 = vmatpush3.msra.mxu0 %v351_v63  ;;  %1250 = vmatprep.subr.mxu1 %v1407_v2  ;;  %v1076_v63 = vld [vmem:[%s1919_s3 + $0x58] sm:$0xff] }
  0x26   : > { %1217 = vmatprep.subr.mxu0 %v1407_v2  ;;  %1251 = vmatpush3.msra.mxu1 %v1059_v0  ;;  %v645_v0 = vld [vmem:[%s1919_s3 + $0x10] sm:$0xff] }
  0x27   : > { %1218 = vmatpush3.msra.mxu0 %v350_v1  ;;  %1252 = vmatprep.subr.mxu1 %v1407_v2  ;;  %v1075_v1 = vld [vmem:[%s1919_s3 + $0x50] sm:$0xff] }
  0x28   : > { %1219 = vmatprep.subr.mxu0 %v1407_v2  ;;  %1253 = vmatpush3.msra.mxu1 %v1058_v3  ;;  %v644_v3 = vld [vmem:[%s1919_s3 + $0x8] sm:$0xff] }
  0x29   : > { %1220 = vmatpush3.msra.mxu0 %v349_v4  ;;  %1254 = vmatprep.subr.mxu1 %v1407_v2  ;;  %v1074_v4 = vld [vmem:[%s1919_s3 + $0x48] sm:$0xff] }
  0x2a   : > { %1221 = vmatprep.subr.mxu0 %v1407_v2  ;;  %1255 = vmatpush3.msra.mxu1 %v1057_v5  ;;  %v643_v5 = vld [vmem:[%s1919_s3] sm:$0xff] }
  0x2b   : > { %1222 = vmatpush3.msra.mxu0 %v348_v6  ;;  %1256 = vmatprep.subr.mxu1 %v1407_v2  ;;  %v1073_v6 = vld [vmem:[%s1919_s3 + $0x40] sm:$0xff] }
  0x2c   : > { %1223 = vmatprep.mubr.msk.f32.mxu0 %vm1409_vm7, %v1407_v2  ;;  %1257 = vmatpush3.msra.mxu1 %v1056_v7 }
  0x2d   : > { %1258 = vmatprep.mubr.msk.f32.mxu1 %vm1409_vm7, %v1407_v2  ;;  %1261 = vmatprep.subr.mxu0 %v1407_v2 }
  0x2e   : > { %1296 = vmatprep.subr.mxu1 %v1407_v2 }
  0x91   : > { %v304_v8 = vpop.permute.xlu0 %303 }
  0x92   : > { %v307_v9 = vrot.slane %v304_v8, 1  ;;  %v308_v10 = vrot.slane %v304_v8, 2  ;;  %v309_v11 = vrot.slane %v304_v8, 3  ;;  %v310_v12 = vrot.slane %v304_v8, 4 }
  0x93   : > { %v311_v13 = vrot.slane %v304_v8, 5  ;;  %v312_v14 = vrot.slane %v304_v8, 6  ;;  %v313_v17 = vrot.slane %v304_v8, 7  ;;  %v322_v20 = vmax.f32 %v1517_v25, %v304_v8 }
  0x94   : > { %v323_v15 = vmax.f32 %v1522_v29, %v307_v9  ;;  %v324_v16 = vmax.f32 %v1524_v30, %v308_v10  ;;  %v325_v18 = vmax.f32 %v1526_v31, %v309_v11  ;;  %v326_v19 = vmax.f32 %v1531_v33, %v310_v12 }
  0x95   : > { %v327_v23 = vmax.f32 %v1533_v34, %v311_v13  ;;  %v328_v24 = vmax.f32 %v1535_v35, %v312_v14  ;;  %v329_v26 = vmax.f32 %v1537_v36, %v313_v17  ;;  %v1055_v35 = vld [vmem:[%s1917_s1 + $0xf8] sm:$0xff]  ;;  %v1072_v17 = vld [vmem:[%s1918_s2] ss:$0 sm:$0xff] }
  0x96   : > { %v372_v21 = vrot.slane %v323_v15, 7  ;;  %v374_v22 = vrot.slane %v324_v16, 6  ;;  %v376_v28 = vrot.slane %v325_v18, 5  ;;  %v378_v30 = vrot.slane %v326_v19, 4 }
  0x97   : > { %v380_v32 = vrot.slane %v327_v23, 3  ;;  %v382_v25 = vrot.slane %v328_v24, 2  ;;  %v384_v38 = vrot.slane %v329_v26, 1  ;;  %v1088_v23 = vld [vmem:[%s1919_s3 + $0xb0] sm:$0xff]  ;;  %v1087_v24 = vld [vmem:[%s1919_s3 + $0xa8] sm:$0xff]  ;;  %v1086_v26 = vld [vmem:[%s1919_s3 + $0xa0] sm:$0xff] }
  0x98   : > { %v373_v27 = vsel %vm283_vm0, %v372_v21, %v322_v20 }
  0x99   : > { %v375_v29 = vsel %vm286_vm1, %v374_v22, %v373_v27  ;;  %v1089_v22 = vld [vmem:[%s1919_s3 + $0xb8] sm:$0xff] }
  0x9a   : > { %v377_v31 = vsel %vm289_vm2, %v376_v28, %v375_v29  ;;  %v1085_v27 = vld [vmem:[%s1919_s3 + $0x98] sm:$0xff]  ;;  %v1084_v28 = vld [vmem:[%s1919_s3 + $0x90] sm:$0xff]  ;;  %v1083_v29 = vld [vmem:[%s1919_s3 + $0x88] sm:$0xff] }
  0x9b   : > { %v379_v33 = vsel %vm292_vm3, %v378_v30, %v377_v31  ;;  %v1082_v30 = vld [vmem:[%s1919_s3 + $0x80] sm:$0xff]  ;;  %v905_v31 = vld [vmem:[%s1921_s5 + $0x78] sm:$0xff] }
  0x9c   : > { %v381_v37 = vsel %vm295_vm4, %v380_v32, %v379_v33  ;;  %v904_v32 = vld [vmem:[%s1921_s5 + $0x70] sm:$0xff]  ;;  %v903_v33 = vld [vmem:[%s1921_s5 + $0x68] sm:$0xff] }
  0x9d   : > { %v383_v34 = vsel %vm298_vm5, %v382_v25, %v381_v37  ;;  %v902_v25 = vld [vmem:[%s1921_s5 + $0x60] sm:$0xff]  ;;  %v901_v37 = vld [vmem:[%s1921_s5 + $0x58] sm:$0xff] }
  0x9e   : > { %v1660_v36 = vsel %vm301_vm6, %v384_v38, %v383_v34  ;;  %v900_v38 = vld [vmem:[%s1921_s5 + $0x50] sm:$0xff]  ;;  %v899_v34 = vld [vmem:[%s1921_s5 + $0x48] sm:$0xff] }
  0x9f   : > { %1224 = vmatmul.mubr.f32.vlgmr.msra.gmra.mxu0 %v1660_v36  ;;  %1259 = vmatmul.mubr.f32.vlgmr.msra.gmra.mxu1 %v1660_v36 }
  0xa0   : > { %1262 = vmatpush3.msra.mxu0 %v1055_v35  ;;  %1293 = vmatprep.mubr.msk.f32.mxu0 %vm1409_vm7, %v1407_v2  ;;  %v898_v35 = vld [vmem:[%s1921_s5 + $0x40] sm:$0xff] }
  0xa1   : > { %1263 = vmatprep.subr.mxu0 %v1407_v2  ;;  %1312 = vmatprep.mubr.msk.f32.mxu1 %vm1409_vm7, %v1407_v2 }
  0xa2   : > { %1264 = vmatpush3.msra.mxu0 %v1054_v39  ;;  %1297 = vmatpush3.msra.mxu1 %v650_v54  ;;  %v897_v39 = vld [vmem:[%s1921_s5 + $0x38] sm:$0xff] }
  0xa3   : > { %1265 = vmatprep.subr.mxu0 %v1407_v2  ;;  %1298 = vmatprep.subr.mxu1 %v1407_v2 }
  0xa4   : > { %1266 = vmatpush3.msra.mxu0 %v1053_v40  ;;  %1299 = vmatpush3.msra.mxu1 %v649_v56  ;;  %v896_v40 = vld [vmem:[%s1921_s5 + $0x30] sm:$0xff] }
  0xa5   : > { %1267 = vmatprep.subr.mxu0 %v1407_v2  ;;  %1300 = vmatprep.subr.mxu1 %v1407_v2 }
  0xa6   : > { %1268 = vmatpush3.msra.mxu0 %v1052_v41  ;;  %1301 = vmatpush3.msra.mxu1 %v648_v58  ;;  %v895_v41 = vld [vmem:[%s1921_s5 + $0x28] sm:$0xff] }
  0xa7   : > { %1269 = vmatprep.subr.mxu0 %v1407_v2  ;;  %1302 = vmatprep.subr.mxu1 %v1407_v2 }
  0xa8   : > { %1270 = vmatpush3.msra.mxu0 %v1051_v42  ;;  %1303 = vmatpush3.msra.mxu1 %v647_v60  ;;  %v894_v42 = vld [vmem:[%s1921_s5 + $0x20] sm:$0xff] }
  0xa9   : > { %1271 = vmatprep.subr.mxu0 %v1407_v2  ;;  %1304 = vmatprep.subr.mxu1 %v1407_v2 }
  0xaa   : > { %1272 = vmatpush3.msra.mxu0 %v1050_v43  ;;  %1305 = vmatpush3.msra.mxu1 %v646_v62  ;;  %v893_v43 = vld [vmem:[%s1921_s5 + $0x18] sm:$0xff] }
  0xab   : > { %1273 = vmatprep.subr.mxu0 %v1407_v2  ;;  %1306 = vmatprep.subr.mxu1 %v1407_v2 }
  0xac   : > { %1274 = vmatpush3.msra.mxu0 %v1049_v44  ;;  %1307 = vmatpush3.msra.mxu1 %v645_v0  ;;  %v892_v44 = vld [vmem:[%s1921_s5 + $0x10] sm:$0xff] }
  0xad   : > { %1275 = vmatprep.subr.mxu0 %v1407_v2  ;;  %1308 = vmatprep.subr.mxu1 %v1407_v2 }
  0xae   : > { %1276 = vmatpush3.msra.mxu0 %v1048_v45  ;;  %1309 = vmatpush3.msra.mxu1 %v644_v3  ;;  %v891_v45 = vld [vmem:[%s1921_s5 + $0x8] sm:$0xff] }
  0xaf   : > { %1277 = vmatprep.subr.mxu0 %v1407_v2  ;;  %1310 = vmatprep.subr.mxu1 %v1407_v2 }
  0xb0   : > { %1278 = vmatpush3.msra.mxu0 %v1047_v46  ;;  %1311 = vmatpush3.msra.mxu1 %v643_v5  ;;  %v890_v46 = vld [vmem:[%s1921_s5] sm:$0xff] }
  0xb1   : > { %1279 = vmatprep.subr.mxu0 %v1407_v2  ;;  %1315 = vmatprep.subr.mxu1 %v1407_v2 }
  0xb2   : > { %1280 = vmatpush3.msra.mxu0 %v1046_v47 }
  0xb3   : > { %1281 = vmatprep.subr.mxu0 %v1407_v2 }
  0xb4   : > { %1282 = vmatpush3.msra.mxu0 %v1045_v48 }
  0xb5   : > { %1283 = vmatprep.subr.mxu0 %v1407_v2 }
  0xb6   : > { %1284 = vmatpush3.msra.mxu0 %v1044_v49 }
  0xb7   : > { %1285 = vmatprep.subr.mxu0 %v1407_v2 }
  0xb8   : > { %1286 = vmatpush3.msra.mxu0 %v1043_v50 }
  0xb9   : > { %1287 = vmatprep.subr.mxu0 %v1407_v2 }
  0xba   : > { %1288 = vmatpush3.msra.mxu0 %v1042_v51 }
  0xbb   : > { %1289 = vmatprep.subr.mxu0 %v1407_v2 }
  0xbc   : > { %1290 = vmatpush3.msra.mxu0 %v1041_v52 }
  0xbd   : > { %1291 = vmatprep.subr.mxu0 %v1407_v2 }
  0xbe   : > { %1292 = vmatpush3.msra.mxu0 %v1040_v53 }
  0xbf   : > { %1294 = vmatmul.mubr.f32.vlgmr.msra.gmra.mxu0 %v1660_v36  ;;  %1334 = vmatprep.subr.mxu0 %v1407_v2 }
  0xc0   : > { %1350 = vmatprep.mubr.msk.f32.mxu0 %vm1409_vm7, %v1407_v2  ;;  %1335 = vmatpush3.msra.mxu0 %v1080_v55 }
  0xc1   : > { %1336 = vmatprep.subr.mxu0 %v1407_v2 }
  0xc2   : > { %1337 = vmatpush3.msra.mxu0 %v1079_v57 }
  0xc3   : > { %1338 = vmatprep.subr.mxu0 %v1407_v2 }
  0xc4   : > { %1339 = vmatpush3.msra.mxu0 %v1078_v59 }
  0xc5   : > { %1340 = vmatprep.subr.mxu0 %v1407_v2 }
  0xc6   : > { %1341 = vmatpush3.msra.mxu0 %v1077_v61 }
  0xc7   : > { %1342 = vmatprep.subr.mxu0 %v1407_v2 }
  0xc8   : > { %1343 = vmatpush3.msra.mxu0 %v1076_v63 }
  0xc9   : > { %1344 = vmatprep.subr.mxu0 %v1407_v2 }
  0xca   : > { %1345 = vmatpush3.msra.mxu0 %v1075_v1 }
  0xcb   : > { %1346 = vmatprep.subr.mxu0 %v1407_v2 }
  0xcc   : > { %1347 = vmatpush3.msra.mxu0 %v1074_v4 }
  0xcd   : > { %1348 = vmatprep.subr.mxu0 %v1407_v2 }
  0xce   : > { %1349 = vmatpush3.msra.mxu0 %v1073_v6 }
 0x15f   : > { %v453_v7 = vpop.f32.mrf.mxu0  ;;  %v540_v8 = vpop.f32.mrf.mxu1 }
 0x160   : > { %v545_v11 = vrot.slane %v453_v7, 7  ;;  %v620_v12 = vrot.slane %v540_v8, 1 }
 0x161   : > { %v1225_v9 = vpop.f32.mrf.mxu0  ;;  %v1260_v10 = vpop.f32.mrf.mxu1 }
 0x162   : > { %v548_v13 = vsel %vm547_vm8, 0.0, %v545_v11  ;;  %v623_v16 = vsel %vm622_vm9, %v620_v12, 0.0 }
 0x17f   : > { %v615_v14 = vpop.f32.mrf.mxu0 }
 0x180   : > { %v616_v15 = vadd.f32 %v615_v14, %v548_v13 }
 0x181   : > { %v1295_v18 = vpop.f32.mrf.mxu0 }
 0x182   : > { %v624_v19 = vadd.f32 %v623_v16, %v616_v15 }
 0x184   : > { %v631_v20 = vadd.f32 %v1072_v17, %v624_v19 }
 0x186   : > { %v632_v21 = vmax.f32 %v631_v20, 0.0 }
 0x188   : > { %1313 = vmatmul.mubr.msk.f32.vlgmr.msra.gmra.mxu1 %vm651_vm10, %v632_v21  ;;  %1351 = vmatmul.mubr.msk.f32.vlgmr.msra.gmra.mxu0 %vm651_vm10, %v632_v21 }
 0x189   : > { %1316 = vmatpush3.msra.mxu1 %v1089_v22  ;;  %1331 = vmatprep.mubr.msk.f32.mxu1 %vm1409_vm7, %v1407_v2 }
 0x18a   : > { %1317 = vmatprep.subr.mxu1 %v1407_v2 }
 0x18b   : > { %1318 = vmatpush3.msra.mxu1 %v1088_v23 }
 0x18c   : > { %1319 = vmatprep.subr.mxu1 %v1407_v2 }
 0x18d   : > { %1320 = vmatpush3.msra.mxu1 %v1087_v24 }
 0x18e   : > { %1321 = vmatprep.subr.mxu1 %v1407_v2 }
 0x18f   : > { %1322 = vmatpush3.msra.mxu1 %v1086_v26 }
 0x190   : > { %1323 = vmatprep.subr.mxu1 %v1407_v2 }
 0x191   : > { %1324 = vmatpush3.msra.mxu1 %v1085_v27 }
 0x192   : > { %1325 = vmatprep.subr.mxu1 %v1407_v2 }
 0x193   : > { %1326 = vmatpush3.msra.mxu1 %v1084_v28 }
 0x194   : > { %1327 = vmatprep.subr.mxu1 %v1407_v2 }
 0x195   : > { %1328 = vmatpush3.msra.mxu1 %v1083_v29 }
 0x196   : > { %1329 = vmatprep.subr.mxu1 %v1407_v2 }
 0x197   : > { %1330 = vmatpush3.msra.mxu1 %v1082_v30 }
 0x198   : > { %1332 = vmatmul.mubr.msk.f32.vlgmr.msra.gmra.mxu1 %vm651_vm10, %v632_v21  ;;  %1353 = vmatprep.subr.mxu1 %v1407_v2 }
 0x199   : > { %1354 = vmatpush3.msra.mxu1 %v905_v31  ;;  %1385 = vmatprep.mubr.msk.f32.mxu1 %vm1409_vm7, %v1407_v2 }
 0x19a   : > { %1355 = vmatprep.subr.mxu1 %v1407_v2 }
 0x19b   : > { %1356 = vmatpush3.msra.mxu1 %v904_v32 }
 0x19c   : > { %1357 = vmatprep.subr.mxu1 %v1407_v2 }
 0x19d   : > { %1358 = vmatpush3.msra.mxu1 %v903_v33 }
 0x19e   : > { %1359 = vmatprep.subr.mxu1 %v1407_v2 }
 0x19f   : > { %1360 = vmatpush3.msra.mxu1 %v902_v25 }
 0x1a0   : > { %1361 = vmatprep.subr.mxu1 %v1407_v2 }
 0x1a1   : > { %1362 = vmatpush3.msra.mxu1 %v901_v37 }
 0x1a2   : > { %1363 = vmatprep.subr.mxu1 %v1407_v2 }
 0x1a3   : > { %1364 = vmatpush3.msra.mxu1 %v900_v38 }
 0x1a4   : > { %1365 = vmatprep.subr.mxu1 %v1407_v2 }
 0x1a5   : > { %1366 = vmatpush3.msra.mxu1 %v899_v34 }
 0x1a6   : > { %1367 = vmatprep.subr.mxu1 %v1407_v2 }
 0x1a7   : > { %1368 = vmatpush3.msra.mxu1 %v898_v35 }
 0x1a8   : > { %1369 = vmatprep.subr.mxu1 %v1407_v2 }
 0x1a9   : > { %1370 = vmatpush3.msra.mxu1 %v897_v39 }
 0x1aa   : > { %1371 = vmatprep.subr.mxu1 %v1407_v2 }
 0x1ab   : > { %1372 = vmatpush3.msra.mxu1 %v896_v40 }
 0x1ac   : > { %1373 = vmatprep.subr.mxu1 %v1407_v2 }
 0x1ad   : > { %1374 = vmatpush3.msra.mxu1 %v895_v41 }
 0x1ae   : > { %1375 = vmatprep.subr.mxu1 %v1407_v2 }
 0x1af   : > { %1376 = vmatpush3.msra.mxu1 %v894_v42 }
 0x1b0   : > { %1377 = vmatprep.subr.mxu1 %v1407_v2 }
 0x1b1   : > { %1378 = vmatpush3.msra.mxu1 %v893_v43 }
 0x1b2   : > { %1379 = vmatprep.subr.mxu1 %v1407_v2 }
 0x1b3   : > { %1380 = vmatpush3.msra.mxu1 %v892_v44 }
 0x1b4   : > { %1381 = vmatprep.subr.mxu1 %v1407_v2 }
 0x1b5   : > { %1382 = vmatpush3.msra.mxu1 %v891_v45 }
 0x1b6   : > { %1383 = vmatprep.subr.mxu1 %v1407_v2  ;;  %v1092_v2 = vld [vmem:[%s1920_s4] ss:$0 sm:$0xff] }
 0x1b7   : > { %1384 = vmatpush3.msra.mxu1 %v890_v46 }
 0x1b8   : > { %1386 = vmatmul.mubr.f32.vlgmr.msra.gmra.mxu1 %v1660_v36 }
 0x248   : > { %v721_v47 = vpop.f32.mrf.mxu1  ;;  %v874_v48 = vpop.f32.mrf.mxu0 }
 0x249   : > { %v805_v53 = vrot.slane %v721_v47, 7 }
 0x24a   : > { %v1314_v49 = vpop.f32.mrf.mxu1  ;;  %v1352_v50 = vpop.f32.mrf.mxu0 }
 0x24b   : > { %v807_v55 = vsel %vm547_vm8, 0.0, %v805_v53 }
 0x24c   : > { %v875_v57 = vadd.f32 %v874_v48, %v807_v55 }
 0x258   : > { %v800_v51 = vpop.f32.mrf.mxu1 }
 0x259   : > { %v879_v54 = vrot.slane %v800_v51, 1 }
 0x25a   : > { %v1333_v52 = vpop.f32.mrf.mxu1 }
 0x25b   : > { %v881_v56 = vsel %vm622_vm9, %v879_v54, 0.0 }
 0x25c   : > { %v882_v58 = vadd.f32 %v881_v56, %v875_v57 }
 0x25e   : > { %v889_v36 = vadd.f32 %v1092_v2, %v882_v58 }
 0x278   : > { %v972_v59 = vpop.f32.mrf.mxu1 }
 0x279   : > { %v976_v60 = vadd.f32 %v972_v59, %v889_v36 }
 0x27a   : > { %v1387_v61 = vpop.f32.mrf.mxu1 }
 0x27b   : > { %v977_v62 = vmax.f32 %v976_v60, 0.0 }
 0x27d   : > { %978 = vst.msk [vmem:[%s249_s11] sm:$0xff] %vm651_vm10, %v977_v62 }
 0x27e PF: > { %s16_s21 = sadd.s32 1, %s1405_s21  }
 0x27f   : > { %p13_p4 = scmp.ge.s32.totalorder %s16_s21, 4  }
 0x281   :  { %15 = sbr.rel (!%p13_p4) target bundleno = 1 (0x1), region = 78 }

// kernel: _lambda_.8
= control target key start
LH: loop header
LB: loop body
LE: loop exit
PB: predicated region body
PF: predicated region fallthrough
CT: control target
= control target key end

     0   :  { %11 = vsyncpa [#allocation3], 0  ;;  %s1445_s21 = smov 0   ;;  %s1694_s0 = inlined_call_operand.vmem [shape: f32[2,16,64], index: 0, kind: input, shape index: {}]   ;;  %s1695_s1 = inlined_call_operand.hbm [shape: f32[3,64,128], index: 1, kind: input, shape index: {}]   ;;  %s1696_s2 = inlined_call_operand.vmem [shape: f32[1,128], index: 2, kind: input, shape index: {}]   ;;  %s1697_s3 = inlined_call_operand.vmem [shape: f32[3,128,128], index: 3, kind: input, shape index: {}]   ;;  %s1698_s4 = inlined_call_operand.vmem [shape: f32[1,128], index: 4, kind: input, shape index: {}]   ;;  %s1699_s5 = inlined_call_operand.vmem [shape: f32[64,128], index: 5, kind: input, shape index: {}]   ;;  %s1700_s6 = inlined_call_operand.vmem [shape: f32[2,16,128], index: 6, kind: output, shape index: {}]  }
   0x1 LB: > { %s1016_s22 = sadd.s32 4294967295, %s1405_s21   ;;  %p1018_p0 = scmp.ge.s32.totalorder %s1405_s21, 1  ;;  %s1405_s21 = sphi %s1445_s21, %s17_s21  }
   0x2   : > { %p179_p1 = scmp.lt.s32.totalorder %s1405_s21, 3  ;;  %s1407_s23 = smov [#allocation2]  }
   0x3   : > { %s191_s24 = sshll.u32 %s1407_s23, 4  ;;  %p1356_p3 = scmp.eq.s32.totalorder %s1016_s22, 0  ;;  %s192_s24 = int_to_ptr.vmem [resolvable:$true] %s191_s24 }
   0x4   : > { %p1453_p2 = pnand %p1018_p0, %p179_p1  ;;  %s1380_s26 = scalar_lea.vmem %s192_s24, 3072 }
   0x5   : > { %p1381_p7 = scmp.ne.s32.totalorder %s192_s24, %s1380_s26  ;;  %p1388_p10 = scmp.lt.s32.totalorder %s192_s24, %s192_s24 }
   0x6   : > { %p1352_p4 = pneg %p1453_p2  ;;  %p1389_p11 = scmp.lt.s32.totalorder %s1380_s26, %s1380_s26 }
   0x8   : > { %p1353_p5 = pnand %p1356_p3, %p1352_p4  ;;  %p1390_p12 = por %p1389_p11, %p1388_p10 }
   0xa   : > { %p1371_p6 = pneg %p1353_p5 }
   0xc   : > { %p1383_p8 = pnand %p1381_p7, %p1371_p6 }
   0xe   : > { %p1384_p9 = pneg %p1383_p8 }
  0x10   : > { %p1391_p13 = pnand %p1390_p12, %p1384_p9 }
  0x12   : > { %1394 = shalt.err (!%p1391_p13)
}
  0x13   : > { %s1408_s27 = smov 128   ;;  %s1409_s28 = smov 8  }
  0x14   : > { %1355 = dma.hbm_to_vmem [thread:$0]  (!%p1353_p5), %s1695_s1, 3072, %s192_s24, [#allocation3], %s1408_s27, %s1408_s27, %s1409_s28  }
  0x15   : > { %227 = sbr.rel (%p1453_p2) target bundleno = 502 (0x1f6), region = 44 }
  0x1a   : > { %1400 = dma.done.wait (%p1356_p3), [#allocation3], 3072  }
  0x1b   : > { %1402 = vsyncadd (%p1356_p3), [#allocation3], 4294964224  ;;  %p257_p0 = scmp.lt.s32.totalorder %s1016_s22, 1  ;;  %v286_v0 = vld [vmem:[#allocation2 + $0x38] sm:$0xff]  ;;  %v285_v1 = vld [vmem:[#allocation2 + $0x30] sm:$0xff]  ;;  %vm287_vm0 = vcmask 523264  }
  0x1c   : > { %1167 = vmatprep.subr.mxu0 %v286_v0  ;;  %v284_v2 = vld [vmem:[#allocation2 + $0x28] sm:$0xff]  ;;  %v377_v3 = vld [vmem:[#allocation2 + $0xb8] sm:$0xff]  ;;  %v376_v5 = vld [vmem:[#allocation2 + $0xb0] sm:$0xff]  ;;  %vm539_vm1 = vcmask 1046528   ;;  %vm455_vm2 = vcmask 1040384  }
  0x1d   : > { %s1703_s22 = smov (!%p257_p0, %s1016_s22), 1  ;;  %1168 = vmatpush3.msra.mxu0 %v286_v0  ;;  %1186 = vmatprep.subr.mxu1 %v377_v3  ;;  %v283_v6 = vld [vmem:[#allocation2 + $0x20] sm:$0xff]  ;;  %v375_v7 = vld [vmem:[#allocation2 + $0xa8] sm:$0xff]  ;;  %v282_v8 = vld [vmem:[#allocation2 + $0x18] sm:$0xff] }
  0x1e   : > { %s1071_s7 = sshll.u32 %s1703_s22, 4  ;;  %1169 = vmatprep.subr.mxu0 %v285_v1  ;;  %1187 = vmatpush3.msra.mxu1 %v377_v3  ;;  %v374_v9 = vld [vmem:[#allocation2 + $0xa0] sm:$0xff]  ;;  %v281_v10 = vld [vmem:[#allocation2 + $0x10] sm:$0xff]  ;;  %v373_v11 = vld [vmem:[#allocation2 + $0x98] sm:$0xff] }
  0x1f   : > { %s1475_s10 = scalar_lea.vmem %s1694_s0, %s1071_s7  ;;  %1170 = vmatpush3.msra.mxu0 %v285_v1  ;;  %1188 = vmatprep.subr.mxu1 %v376_v5  ;;  %v280_v12 = vld [vmem:[#allocation2 + $0x8] sm:$0xff]  ;;  %v372_v13 = vld [vmem:[#allocation2 + $0x90] sm:$0xff]  ;;  %v279_v14 = vld [vmem:[#allocation2] sm:$0xff]  ;;  %s266_s26 = scalar_lea.vmem %s1700_s6, %s1071_s7 }
  0x20   : > { %v1478_v4 = vld [vmem:[%s1475_s10] sm:$0xff]  ;;  %1171 = vmatprep.subr.mxu0 %v284_v2  ;;  %1189 = vmatpush3.msra.mxu1 %v376_v5  ;;  %v371_v15 = vld [vmem:[#allocation2 + $0x88] sm:$0xff]  ;;  %v278_v17 = vld [vmem:[#allocation2 + $0x78] sm:$0xff] }
  0x21   : > { %1183 = vmatprep.mubr.msk.f32.mxu0 %vm287_vm0, %v1478_v4  ;;  %1172 = vmatpush3.msra.mxu0 %v284_v2  ;;  %v1483_v16 = vld [vmem:[%s1475_s10 + $0x8] sm:$0xff]  ;;  %v277_v18 = vld [vmem:[#allocation2 + $0x70] sm:$0xff]  ;;  %v370_v19 = vld [vmem:[#allocation2 + $0x80] sm:$0xff] }
  0x22   : > { %1173 = vmatprep.subr.mxu0 %v283_v6  ;;  %1190 = vmatprep.subr.mxu1 %v375_v7  ;;  %v276_v20 = vld [vmem:[#allocation2 + $0x68] sm:$0xff]  ;;  %v275_v21 = vld [vmem:[#allocation2 + $0x60] sm:$0xff]  ;;  %v591_v22 = vld [vmem:[%s1697_s3 + $0x78] sm:$0xff] }
  0x23   : > { %1174 = vmatpush3.msra.mxu0 %v283_v6  ;;  %1191 = vmatpush3.msra.mxu1 %v375_v7  ;;  %v274_v23 = vld [vmem:[#allocation2 + $0x58] sm:$0xff]  ;;  %v590_v24 = vld [vmem:[%s1697_s3 + $0x70] sm:$0xff]  ;;  %v589_v26 = vld [vmem:[%s1697_s3 + $0x68] sm:$0xff] }
  0x24   : > { %1175 = vmatprep.subr.mxu0 %v282_v8  ;;  %1192 = vmatprep.subr.mxu1 %v374_v9  ;;  %v273_v25 = vld [vmem:[#allocation2 + $0x50] sm:$0xff]  ;;  %v272_v27 = vld [vmem:[#allocation2 + $0x48] sm:$0xff]  ;;  %v271_v28 = vld [vmem:[#allocation2 + $0x40] sm:$0xff] }
  0x25   : > { %1176 = vmatpush3.msra.mxu0 %v282_v8  ;;  %1193 = vmatpush3.msra.mxu1 %v374_v9  ;;  %v1065_v29 = vld [vmem:[%s1697_s3 + $0x178] sm:$0xff]  ;;  %v1064_v30 = vld [vmem:[%s1697_s3 + $0x170] sm:$0xff]  ;;  %v1063_v31 = vld [vmem:[%s1697_s3 + $0x168] sm:$0xff] }
  0x26   : > { %1177 = vmatprep.subr.mxu0 %v281_v10  ;;  %1194 = vmatprep.subr.mxu1 %v373_v11  ;;  %v588_v32 = vld [vmem:[%s1697_s3 + $0x60] sm:$0xff]  ;;  %v587_v34 = vld [vmem:[%s1697_s3 + $0x58] sm:$0xff]  ;;  %v586_v36 = vld [vmem:[%s1697_s3 + $0x50] sm:$0xff] }
  0x27   : > { %1178 = vmatpush3.msra.mxu0 %v281_v10  ;;  %1195 = vmatpush3.msra.mxu1 %v373_v11  ;;  %v1062_v33 = vld [vmem:[%s1697_s3 + $0x160] sm:$0xff]  ;;  %v1061_v35 = vld [vmem:[%s1697_s3 + $0x158] sm:$0xff]  ;;  %v1060_v37 = vld [vmem:[%s1697_s3 + $0x150] sm:$0xff] }
  0x28   : > { %1179 = vmatprep.subr.mxu0 %v280_v12  ;;  %1196 = vmatprep.subr.mxu1 %v372_v13  ;;  %v585_v38 = vld [vmem:[%s1697_s3 + $0x48] sm:$0xff]  ;;  %v584_v40 = vld [vmem:[%s1697_s3 + $0x40] sm:$0xff]  ;;  %v583_v42 = vld [vmem:[%s1697_s3 + $0x38] sm:$0xff] }
  0x29   : > { %1180 = vmatpush3.msra.mxu0 %v280_v12  ;;  %1197 = vmatpush3.msra.mxu1 %v372_v13  ;;  %v1059_v39 = vld [vmem:[%s1697_s3 + $0x148] sm:$0xff]  ;;  %v1058_v41 = vld [vmem:[%s1697_s3 + $0x140] sm:$0xff]  ;;  %v1057_v43 = vld [vmem:[%s1697_s3 + $0x138] sm:$0xff] }
  0x2a   : > { %1181 = vmatprep.subr.mxu0 %v279_v14  ;;  %1198 = vmatprep.subr.mxu1 %v371_v15  ;;  %v582_v44 = vld [vmem:[%s1697_s3 + $0x30] sm:$0xff]  ;;  %v581_v46 = vld [vmem:[%s1697_s3 + $0x28] sm:$0xff]  ;;  %v580_v48 = vld [vmem:[%s1697_s3 + $0x20] sm:$0xff] }
  0x2b   : > { %1182 = vmatpush3.msra.mxu0 %v279_v14  ;;  %1199 = vmatpush3.msra.mxu1 %v371_v15  ;;  %v1056_v45 = vld [vmem:[%s1697_s3 + $0x130] sm:$0xff]  ;;  %v1055_v47 = vld [vmem:[%s1697_s3 + $0x128] sm:$0xff]  ;;  %v1054_v49 = vld [vmem:[%s1697_s3 + $0x120] sm:$0xff] }
  0x2c   : > { %1184 = vmatmul.mubr.msk.f32.vlgmr.msra.gmra.mxu0 %vm287_vm0, %v1483_v16  ;;  %1205 = vmatprep.subr.mxu0 %v278_v17  ;;  %v579_v50 = vld [vmem:[%s1697_s3 + $0x18] sm:$0xff]  ;;  %v578_v52 = vld [vmem:[%s1697_s3 + $0x10] sm:$0xff]  ;;  %v577_v54 = vld [vmem:[%s1697_s3 + $0x8] sm:$0xff] }
  0x2d   : > { %1206 = vmatpush3.msra.mxu0 %v278_v17  ;;  %1200 = vmatprep.subr.mxu1 %v370_v19  ;;  %v1053_v51 = vld [vmem:[%s1697_s3 + $0x118] sm:$0xff]  ;;  %v1052_v53 = vld [vmem:[%s1697_s3 + $0x110] sm:$0xff]  ;;  %v1051_v55 = vld [vmem:[%s1697_s3 + $0x108] sm:$0xff] }
  0x2e   : > { %1207 = vmatprep.subr.mxu0 %v277_v18  ;;  %1201 = vmatpush3.msra.mxu1 %v370_v19  ;;  %v576_v56 = vld [vmem:[%s1697_s3] sm:$0xff]  ;;  %v1049_v58 = vld [vmem:[%s1697_s3 + $0xf8] sm:$0xff] }
  0x2f   : > { %1208 = vmatpush3.msra.mxu0 %v277_v18  ;;  %1202 = vmatprep.mubr.msk.f32.mxu1 %vm287_vm0, %v1478_v4  ;;  %v1050_v57 = vld [vmem:[%s1697_s3 + $0x100] sm:$0xff]  ;;  %v867_v59 = vld [vmem:[%s1699_s5 + $0x38] sm:$0xff] }
  0x30   : > { %1209 = vmatprep.subr.mxu0 %v276_v20  ;;  %1203 = vmatmul.mubr.msk.f32.vlgmr.msra.gmra.mxu1 %vm287_vm0, %v1483_v16  ;;  %v1033_v11 = vld [vmem:[%s1696_s2] ss:$0 sm:$0xff] }
  0x31   : > { %1210 = vmatpush3.msra.mxu0 %v276_v20  ;;  %1221 = vmatprep.mubr.msk.f32.mxu0 %vm287_vm0, %v1478_v4 }
  0x32   : > { %1211 = vmatprep.subr.mxu0 %v275_v21  ;;  %1224 = vmatprep.subr.mxu1 %v591_v22 }
  0x33   : > { %1212 = vmatpush3.msra.mxu0 %v275_v21  ;;  %1225 = vmatpush3.msra.mxu1 %v591_v22  ;;  %v1048_v21 = vld [vmem:[%s1697_s3 + $0xf0] sm:$0xff] }
  0x34   : > { %1213 = vmatprep.subr.mxu0 %v274_v23  ;;  %1226 = vmatprep.subr.mxu1 %v590_v24  ;;  %v866_v22 = vld [vmem:[%s1699_s5 + $0x30] sm:$0xff] }
  0x35   : > { %1214 = vmatpush3.msra.mxu0 %v274_v23  ;;  %1227 = vmatpush3.msra.mxu1 %v590_v24  ;;  %v1047_v23 = vld [vmem:[%s1697_s3 + $0xe8] sm:$0xff] }
  0x36   : > { %1215 = vmatprep.subr.mxu0 %v273_v25  ;;  %1228 = vmatprep.subr.mxu1 %v589_v26  ;;  %v865_v24 = vld [vmem:[%s1699_s5 + $0x28] sm:$0xff] }
  0x37   : > { %1216 = vmatpush3.msra.mxu0 %v273_v25  ;;  %1229 = vmatpush3.msra.mxu1 %v589_v26  ;;  %v1046_v25 = vld [vmem:[%s1697_s3 + $0xe0] sm:$0xff] }
  0x38   : > { %1217 = vmatprep.subr.mxu0 %v272_v27  ;;  %1230 = vmatprep.subr.mxu1 %v588_v32  ;;  %v864_v26 = vld [vmem:[%s1699_s5 + $0x20] sm:$0xff] }
  0x39   : > { %1218 = vmatpush3.msra.mxu0 %v272_v27  ;;  %1231 = vmatpush3.msra.mxu1 %v588_v32  ;;  %v1045_v27 = vld [vmem:[%s1697_s3 + $0xd8] sm:$0xff]  ;;  %v861_v32 = vld [vmem:[%s1699_s5 + $0x8] sm:$0xff] }
  0x3a   : > { %1219 = vmatprep.subr.mxu0 %v271_v28  ;;  %1232 = vmatprep.subr.mxu1 %v587_v34 }
  0x3b   : > { %1220 = vmatpush3.msra.mxu0 %v271_v28  ;;  %1233 = vmatpush3.msra.mxu1 %v587_v34  ;;  %v863_v28 = vld [vmem:[%s1699_s5 + $0x18] sm:$0xff]  ;;  %v860_v34 = vld [vmem:[%s1699_s5] sm:$0xff] }
  0x3c   : > { %1222 = vmatmul.mubr.msk.f32.vlgmr.msra.gmra.mxu0 %vm287_vm0, %v1483_v16  ;;  %1259 = vmatprep.subr.mxu0 %v1065_v29 }
  0x3d   : > { %1260 = vmatpush3.msra.mxu0 %v1065_v29  ;;  %1234 = vmatprep.subr.mxu1 %v586_v36  ;;  %v1044_v29 = vld [vmem:[%s1697_s3 + $0xd0] sm:$0xff] }
  0x3e   : > { %1261 = vmatprep.subr.mxu0 %v1064_v30  ;;  %1235 = vmatpush3.msra.mxu1 %v586_v36  ;;  %v1040_v36 = vld [vmem:[%s1697_s3 + $0xb0] sm:$0xff] }
  0x3f   : > { %1262 = vmatpush3.msra.mxu0 %v1064_v30  ;;  %1236 = vmatprep.subr.mxu1 %v585_v38  ;;  %v862_v30 = vld [vmem:[%s1699_s5 + $0x10] sm:$0xff] }
  0x40   : > { %1263 = vmatprep.subr.mxu0 %v1063_v31  ;;  %1237 = vmatpush3.msra.mxu1 %v585_v38  ;;  %v1038_v38 = vld [vmem:[%s1697_s3 + $0xa0] sm:$0xff] }
  0x41   : > { %1264 = vmatpush3.msra.mxu0 %v1063_v31  ;;  %1238 = vmatprep.subr.mxu1 %v584_v40  ;;  %v1043_v31 = vld [vmem:[%s1697_s3 + $0xc8] sm:$0xff] }
  0x42   : > { %1265 = vmatprep.subr.mxu0 %v1062_v33  ;;  %1239 = vmatpush3.msra.mxu1 %v584_v40  ;;  %v1034_v40 = vld [vmem:[%s1697_s3 + $0x80] sm:$0xff] }
  0x43   : > { %1266 = vmatpush3.msra.mxu0 %v1062_v33  ;;  %1240 = vmatprep.subr.mxu1 %v583_v42  ;;  %v1042_v33 = vld [vmem:[%s1697_s3 + $0xc0] sm:$0xff] }
  0x44   : > { %1267 = vmatprep.subr.mxu0 %v1061_v35  ;;  %1241 = vmatpush3.msra.mxu1 %v583_v42 }
  0x45   : > { %1268 = vmatpush3.msra.mxu0 %v1061_v35  ;;  %1242 = vmatprep.subr.mxu1 %v582_v44  ;;  %v1041_v35 = vld [vmem:[%s1697_s3 + $0xb8] sm:$0xff] }
  0x46   : > { %1269 = vmatprep.subr.mxu0 %v1060_v37  ;;  %1243 = vmatpush3.msra.mxu1 %v582_v44 }
  0x47   : > { %1270 = vmatpush3.msra.mxu0 %v1060_v37  ;;  %1244 = vmatprep.subr.mxu1 %v581_v46  ;;  %v1039_v37 = vld [vmem:[%s1697_s3 + $0xa8] sm:$0xff] }
  0x48   : > { %1271 = vmatprep.subr.mxu0 %v1059_v39  ;;  %1245 = vmatpush3.msra.mxu1 %v581_v46 }
  0x49   : > { %1272 = vmatpush3.msra.mxu0 %v1059_v39  ;;  %1246 = vmatprep.subr.mxu1 %v580_v48  ;;  %v1037_v39 = vld [vmem:[%s1697_s3 + $0x98] sm:$0xff] }
  0x4a   : > { %1273 = vmatprep.subr.mxu0 %v1058_v41  ;;  %1247 = vmatpush3.msra.mxu1 %v580_v48 }
  0x4b   : > { %1274 = vmatpush3.msra.mxu0 %v1058_v41  ;;  %1248 = vmatprep.subr.mxu1 %v579_v50 }
  0x4c   : > { %1275 = vmatprep.subr.mxu0 %v1057_v43  ;;  %1249 = vmatpush3.msra.mxu1 %v579_v50 }
  0x4d   : > { %1276 = vmatpush3.msra.mxu0 %v1057_v43  ;;  %1250 = vmatprep.subr.mxu1 %v578_v52 }
  0x4e   : > { %1277 = vmatprep.subr.mxu0 %v1056_v45  ;;  %1251 = vmatpush3.msra.mxu1 %v578_v52 }
  0x4f   : > { %1278 = vmatpush3.msra.mxu0 %v1056_v45  ;;  %1252 = vmatprep.subr.mxu1 %v577_v54 }
  0x50   : > { %1279 = vmatprep.subr.mxu0 %v1055_v47  ;;  %1253 = vmatpush3.msra.mxu1 %v577_v54 }
  0x51   : > { %1280 = vmatpush3.msra.mxu0 %v1055_v47  ;;  %1254 = vmatprep.subr.mxu1 %v576_v56 }
  0x52   : > { %1281 = vmatprep.subr.mxu0 %v1054_v49  ;;  %1255 = vmatpush3.msra.mxu1 %v576_v56 }
  0x53   : > { %1282 = vmatpush3.msra.mxu0 %v1054_v49  ;;  %1294 = vmatprep.subr.mxu1 %v1049_v58 }
  0x54   : > { %1283 = vmatprep.subr.mxu0 %v1053_v51 }
  0x55   : > { %1284 = vmatpush3.msra.mxu0 %v1053_v51 }
  0x56   : > { %1285 = vmatprep.subr.mxu0 %v1052_v53 }
  0x57   : > { %1286 = vmatpush3.msra.mxu0 %v1052_v53 }
  0x58   : > { %1287 = vmatprep.subr.mxu0 %v1051_v55 }
  0x59   : > { %1288 = vmatpush3.msra.mxu0 %v1051_v55  ;;  %v1066_v55 = vld [vmem:[%s1698_s4] ss:$0 sm:$0xff] }
  0x5a   : > { %1289 = vmatprep.subr.mxu0 %v1050_v57 }
  0x5b   : > { %1290 = vmatpush3.msra.mxu0 %v1050_v57 }
  0x5c   : > { %1329 = vmatprep.subr.mxu0 %v867_v59 }
  0xec   : > { %v1185_v60 = vpop.f32.mrf.mxu0 }
  0xed   : > { %v457_v63 = vrot.slane %v1185_v60, 7 }
  0xee   : > { %v360_v61 = vpop.f32.mrf.mxu0 }
  0xef   : > { %v456_v0 = vrot.slane %v360_v61, 7 }
  0xf0   : > { %v1204_v62 = vpop.f32.mrf.mxu1 }
  0xf1   : > { %v541_v1 = vrot.slane %v1204_v62, 1  ;;  %v458_v6 = vsel %vm455_vm2, %v456_v0, %v457_v63  ;;  %v461_v9 = vsel %vm455_vm2, 0.0, %v456_v0 }
  0xf2   : > { %v444_v2 = vpop.f32.mrf.mxu1 }
  0xf3   : > { %v545_v3 = vsel %vm539_vm1, %v541_v1, 0.0  ;;  %v540_v5 = vrot.slane %v444_v2, 1 }
  0xf5   : > { %v542_v14 = vsel %vm539_vm1, %v540_v5, %v541_v1 }
  0xfc   : > { %v1223_v7 = vpop.f32.mrf.mxu0 }
  0xfd   : > { %v534_v8 = vadd.f32 %v1223_v7, %v458_v6 }
  0xfe   : > { %v528_v10 = vpop.f32.mrf.mxu0 }
  0xff   : > { %v547_v12 = vadd.f32 %v545_v3, %v534_v8  ;;  %v529_v13 = vadd.f32 %v528_v10, %v461_v9 }
 0x101   : > { %v546_v15 = vadd.f32 %v542_v14, %v529_v13  ;;  %v555_v17 = vadd.f32 %v1033_v11, %v547_v12 }
 0x103   : > { %v554_v18 = vadd.f32 %v1033_v11, %v546_v15  ;;  %v1604_v20 = vmax.f32 %v555_v17, 0.0 }
 0x105   : > { %v556_v19 = vmax.f32 %v554_v18, 0.0 }
 0x107   : > { %1256 = vmatprep.mubr.f32.mxu1 %v556_v19  ;;  %1291 = vmatprep.mubr.f32.mxu0 %v556_v19 }
 0x108   : > { %1257 = vmatmul.mubr.f32.vlgmr.msra.gmra.mxu1 %v1604_v20  ;;  %1292 = vmatmul.mubr.f32.vlgmr.msra.gmra.mxu0 %v1604_v20 }
 0x109   : > { %1295 = vmatpush3.msra.mxu1 %v1049_v58  ;;  %1326 = vmatprep.mubr.f32.mxu1 %v556_v19 }
 0x10a   : > { %1296 = vmatprep.subr.mxu1 %v1048_v21  ;;  %1330 = vmatpush3.msra.mxu0 %v867_v59 }
 0x10b   : > { %1297 = vmatpush3.msra.mxu1 %v1048_v21  ;;  %1331 = vmatprep.subr.mxu0 %v866_v22 }
 0x10c   : > { %1298 = vmatprep.subr.mxu1 %v1047_v23  ;;  %1332 = vmatpush3.msra.mxu0 %v866_v22 }
 0x10d   : > { %1299 = vmatpush3.msra.mxu1 %v1047_v23  ;;  %1333 = vmatprep.subr.mxu0 %v865_v24 }
 0x10e   : > { %1300 = vmatprep.subr.mxu1 %v1046_v25  ;;  %1334 = vmatpush3.msra.mxu0 %v865_v24 }
 0x10f   : > { %1301 = vmatpush3.msra.mxu1 %v1046_v25  ;;  %1335 = vmatprep.subr.mxu0 %v864_v26 }
 0x110   : > { %1302 = vmatprep.subr.mxu1 %v1045_v27  ;;  %1336 = vmatpush3.msra.mxu0 %v864_v26 }
 0x111   : > { %1303 = vmatpush3.msra.mxu1 %v1045_v27  ;;  %1337 = vmatprep.subr.mxu0 %v863_v28 }
 0x112   : > { %1304 = vmatprep.subr.mxu1 %v1044_v29  ;;  %1338 = vmatpush3.msra.mxu0 %v863_v28 }
 0x113   : > { %1305 = vmatpush3.msra.mxu1 %v1044_v29  ;;  %1339 = vmatprep.subr.mxu0 %v862_v30 }
 0x114   : > { %1306 = vmatprep.subr.mxu1 %v1043_v31  ;;  %1340 = vmatpush3.msra.mxu0 %v862_v30 }
 0x115   : > { %1307 = vmatpush3.msra.mxu1 %v1043_v31  ;;  %1341 = vmatprep.subr.mxu0 %v861_v32 }
 0x116   : > { %1308 = vmatprep.subr.mxu1 %v1042_v33  ;;  %1342 = vmatpush3.msra.mxu0 %v861_v32 }
 0x117   : > { %1309 = vmatpush3.msra.mxu1 %v1042_v33  ;;  %1343 = vmatprep.subr.mxu0 %v860_v34 }
 0x118   : > { %1310 = vmatprep.subr.mxu1 %v1041_v35  ;;  %1344 = vmatpush3.msra.mxu0 %v860_v34 }
 0x119   : > { %1311 = vmatpush3.msra.mxu1 %v1041_v35  ;;  %1345 = vmatprep.mubr.msk.f32.mxu0 %vm287_vm0, %v1478_v4  ;;  %v1036_v4 = vld [vmem:[%s1697_s3 + $0x90] sm:$0xff] }
 0x11a   : > { %1312 = vmatprep.subr.mxu1 %v1040_v36  ;;  %1346 = vmatmul.mubr.msk.f32.vlgmr.msra.gmra.mxu0 %vm287_vm0, %v1483_v16  ;;  %v1035_v16 = vld [vmem:[%s1697_s3 + $0x88] sm:$0xff] }
 0x11b   : > { %1313 = vmatpush3.msra.mxu1 %v1040_v36 }
 0x11c   : > { %1314 = vmatprep.subr.mxu1 %v1039_v37 }
 0x11d   : > { %1315 = vmatpush3.msra.mxu1 %v1039_v37 }
 0x11e   : > { %1316 = vmatprep.subr.mxu1 %v1038_v38 }
 0x11f   : > { %1317 = vmatpush3.msra.mxu1 %v1038_v38 }
 0x120   : > { %1318 = vmatprep.subr.mxu1 %v1037_v39 }
 0x121   : > { %1319 = vmatpush3.msra.mxu1 %v1037_v39 }
 0x122   : > { %1320 = vmatprep.subr.mxu1 %v1036_v4 }
 0x123   : > { %1321 = vmatpush3.msra.mxu1 %v1036_v4 }
 0x124   : > { %1322 = vmatprep.subr.mxu1 %v1035_v16 }
 0x125   : > { %1323 = vmatpush3.msra.mxu1 %v1035_v16 }
 0x126   : > { %1324 = vmatprep.subr.mxu1 %v1034_v40 }
 0x127   : > { %1325 = vmatpush3.msra.mxu1 %v1034_v40 }
 0x128   : > { %1327 = vmatmul.mubr.f32.vlgmr.msra.gmra.mxu1 %v1604_v20 }
 0x1c8   : > { %v1258_v41 = vpop.f32.mrf.mxu1  ;;  %v1293_v42 = vpop.f32.mrf.mxu0 }
 0x1c9   : > { %v762_v46 = vrot.slane %v1258_v41, 7  ;;  %v845_v47 = vrot.slane %v1293_v42, 1 }
 0x1ca   : > { %v658_v43 = vpop.f32.mrf.mxu1  ;;  %v750_v45 = vpop.f32.mrf.mxu0 }
 0x1cb   : > { %v761_v44 = vrot.slane %v658_v43, 7  ;;  %v844_v48 = vrot.slane %v750_v45, 1  ;;  %v849_v52 = vsel %vm539_vm1, %v845_v47, 0.0 }
 0x1cd   : > { %v763_v49 = vsel %vm455_vm2, %v761_v44, %v762_v46  ;;  %v766_v53 = vsel %vm455_vm2, 0.0, %v761_v44  ;;  %v846_v58 = vsel %vm539_vm1, %v844_v48, %v845_v47 }
 0x1da   : > { %v1347_v59 = vpop.f32.mrf.mxu0 }
 0x1dc   : > { %v934_v0 = vpop.f32.mrf.mxu0 }
 0x1e8   : > { %v1328_v50 = vpop.f32.mrf.mxu1 }
 0x1e9   : > { %v839_v51 = vadd.f32 %v1328_v50, %v763_v49 }
 0x1ea   : > { %v833_v54 = vpop.f32.mrf.mxu1 }
 0x1eb   : > { %v851_v56 = vadd.f32 %v849_v52, %v839_v51  ;;  %v834_v57 = vadd.f32 %v833_v54, %v766_v53 }
 0x1ed   : > { %v850_v60 = vadd.f32 %v846_v58, %v834_v57  ;;  %v859_v61 = vadd.f32 %v1066_v55, %v851_v56 }
 0x1ef   : > { %v944_v62 = vadd.f32 %v1347_v59, %v859_v61  ;;  %v858_v63 = vadd.f32 %v1066_v55, %v850_v60 }
 0x1f1   : > { %v946_v1 = vmax.f32 %v944_v62, 0.0  ;;  %v943_v2 = vadd.f32 %v934_v0, %v858_v63 }
 0x1f3   : > { %948 = vst [vmem:[%s266_s26 + $0x8] sm:$0xff] %v946_v1  ;;  %v945_v3 = vmax.f32 %v943_v2, 0.0 }
 0x1f5   : > { %947 = vst [vmem:[%s266_s26] sm:$0xff] %v945_v3 }
 0x1f6 PF: > { %s17_s21 = sadd.s32 1, %s1405_s21  }
 0x1f7   : > { %p14_p1 = scmp.ge.s32.totalorder %s17_s21, 4  }
 0x1f9   :  { %16 = sbr.rel (!%p14_p1) target bundleno = 1 (0x1), region = 83 }
 0x1fe   :  { %970 = vsyncpa [#allocation3], 1 }
 0x1ff   :  { %972 = vsyncpa [#allocation3 + $0x1], 1 }

// kernel: _lambda_.13
= control target key start
LH: loop header
LB: loop body
LE: loop exit
PB: predicated region body
PF: predicated region fallthrough
CT: control target
= control target key end

     0   :  { %s1061_s18 = smov 0   ;;  %s1317_s0 = inlined_call_operand.vmem [shape: f32[2,4,64], index: 0, kind: input, shape index: {}]   ;;  %s1318_s1 = inlined_call_operand.vmem [shape: f32[3,64,64], index: 1, kind: input, shape index: {}]   ;;  %s1319_s2 = inlined_call_operand.vmem [shape: f32[1,64], index: 2, kind: input, shape index: {}]   ;;  %s1320_s3 = inlined_call_operand.vmem [shape: f32[3,64,64], index: 3, kind: input, shape index: {}]   ;;  %s1321_s4 = inlined_call_operand.vmem [shape: f32[1,64], index: 4, kind: input, shape index: {}]   ;;  %s1322_s5 = inlined_call_operand.vmem [shape: f32[2,4,64], index: 5, kind: output, shape index: {}]  }
   0x1 LB: > { %s794_s19 = sadd.s32 4294967295, %s1027_s18   ;;  %p798_p0 = scmp.ge.s32.totalorder %s1027_s18, 1  ;;  %s1027_s18 = sphi %s1061_s18, %s15_s18  }
   0x2   : > { %p186_p1 = scmp.lt.s32.totalorder %s1027_s18, 3 }
   0x4   : > { %p187_p2 = pnand %p798_p0, %p186_p1 }
   0x5   : > { %p1072_p3 = scmp.lt.s32.totalorder (!%p187_p2), %s794_s19, 1 }
   0x6   : > { %190 = sbr.rel (%p187_p2) target bundleno = 465 (0x1d1), region = 40 }
   0xb   : > { %v238_v0 = vld [vmem:[%s1318_s1 + $0x38] sm:$0xff]  ;;  %v1029_v1 = vmov 0.0   ;;  %v237_v2 = vld [vmem:[%s1318_s1 + $0x30] sm:$0xff]  ;;  %vm1030_vm0 = vmmov 0   ;;  %v236_v4 = vld [vmem:[%s1318_s1 + $0x28] sm:$0xff]  ;;  %s1325_s19 = smov (!%p1072_p3, %s794_s19), 1 }
   0xc   : > { %897 = vmatprep.subr.mxu0 %v1029_v1  ;;  %916 = vmatprep.subr.mxu1 %v1029_v1  ;;  %v817_v3 = vld [vmem:[%s1318_s1 + $0xb8] sm:$0xff]  ;;  %v816_v5 = vld [vmem:[%s1318_s1 + $0xb0] sm:$0xff]  ;;  %v815_v6 = vld [vmem:[%s1318_s1 + $0xa8] sm:$0xff]  ;;  %s799_s14 = sshll.u32 %s1325_s19, 2  ;;  %vm239_vm1 = vcmask 523264   ;;  %vm470_vm2 = vcmask 1042432  }
   0xd   : > { %898 = vmatpush3.msra.mxu0 %v238_v0  ;;  %913 = vmatprep.mubr.msk.f32.mxu0 %vm1030_vm0, %v1029_v1  ;;  %v235_v7 = vld [vmem:[%s1318_s1 + $0x20] sm:$0xff]  ;;  %v234_v9 = vld [vmem:[%s1318_s1 + $0x18] sm:$0xff]  ;;  %v233_v11 = vld [vmem:[%s1318_s1 + $0x10] sm:$0xff]  ;;  %s215_s27 = scalar_lea.vmem %s1317_s0, %s799_s14  ;;  %vm395_vm3 = vcmask 1040384   ;;  %s219_s13 = scalar_lea.vmem %s1322_s5, %s799_s14  ;;  %vm739_vm4 = vcmask 519168  }
   0xe   : > { %899 = vmatprep.subr.mxu0 %v1029_v1  ;;  %917 = vmatpush3.msra.mxu1 %v817_v3  ;;  %v814_v8 = vld [vmem:[%s1318_s1 + $0xa0] sm:$0xff]  ;;  %v813_v10 = vld [vmem:[%s1318_s1 + $0x98] sm:$0xff]  ;;  %v812_v12 = vld [vmem:[%s1318_s1 + $0x90] sm:$0xff] }
   0xf   : > { %900 = vmatpush3.msra.mxu0 %v237_v2  ;;  %918 = vmatprep.subr.mxu1 %v1029_v1  ;;  %v232_v13 = vld [vmem:[%s1318_s1 + $0x8] sm:$0xff]  ;;  %v231_v15 = vld [vmem:[%s1318_s1] sm:$0xff]  ;;  %v808_v17 = vld [vmem:[%s1318_s1 + $0x78] sm:$0xff] }
  0x10   : > { %901 = vmatprep.subr.mxu0 %v1029_v1  ;;  %919 = vmatpush3.msra.mxu1 %v816_v5  ;;  %v811_v14 = vld [vmem:[%s1318_s1 + $0x88] sm:$0xff]  ;;  %v1143_v16 = vld [vmem:[%s215_s27] sm:$0xf]  ;;  %v807_v19 = vld [vmem:[%s1318_s1 + $0x70] sm:$0xff] }
  0x11   : > { %902 = vmatpush3.msra.mxu0 %v236_v4  ;;  %920 = vmatprep.subr.mxu1 %v1029_v1  ;;  %v810_v18 = vld [vmem:[%s1318_s1 + $0x80] sm:$0xff]  ;;  %v806_v20 = vld [vmem:[%s1318_s1 + $0x68] sm:$0xff]  ;;  %v804_v22 = vld [vmem:[%s1318_s1 + $0x58] sm:$0xff] }
  0x12   : > { %903 = vmatprep.subr.mxu0 %v1029_v1  ;;  %921 = vmatpush3.msra.mxu1 %v815_v6  ;;  %v805_v21 = vld [vmem:[%s1318_s1 + $0x60] sm:$0xff]  ;;  %v803_v23 = vld [vmem:[%s1318_s1 + $0x50] sm:$0xff]  ;;  %v802_v24 = vld [vmem:[%s1318_s1 + $0x48] sm:$0xff] }
  0x13   : > { %904 = vmatpush3.msra.mxu0 %v235_v7  ;;  %922 = vmatprep.subr.mxu1 %v1029_v1  ;;  %v801_v25 = vld [vmem:[%s1318_s1 + $0x40] sm:$0xff]  ;;  %v498_v26 = vld [vmem:[%s1320_s3 + $0x38] sm:$0xff]  ;;  %v497_v28 = vld [vmem:[%s1320_s3 + $0x30] sm:$0xff] }
  0x14   : > { %905 = vmatprep.subr.mxu0 %v1029_v1  ;;  %923 = vmatpush3.msra.mxu1 %v814_v8  ;;  %v837_v27 = vld [vmem:[%s1320_s3 + $0xb8] sm:$0xff]  ;;  %v836_v29 = vld [vmem:[%s1320_s3 + $0xb0] sm:$0xff]  ;;  %v496_v30 = vld [vmem:[%s1320_s3 + $0x28] sm:$0xff] }
  0x15   : > { %906 = vmatpush3.msra.mxu0 %v234_v9  ;;  %924 = vmatprep.subr.mxu1 %v1029_v1  ;;  %v835_v31 = vld [vmem:[%s1320_s3 + $0xa8] sm:$0xff]  ;;  %v495_v32 = vld [vmem:[%s1320_s3 + $0x20] sm:$0xff]  ;;  %v494_v34 = vld [vmem:[%s1320_s3 + $0x18] sm:$0xff] }
  0x16   : > { %907 = vmatprep.subr.mxu0 %v1029_v1  ;;  %925 = vmatpush3.msra.mxu1 %v813_v10  ;;  %v834_v33 = vld [vmem:[%s1320_s3 + $0xa0] sm:$0xff]  ;;  %v833_v35 = vld [vmem:[%s1320_s3 + $0x98] sm:$0xff]  ;;  %v493_v36 = vld [vmem:[%s1320_s3 + $0x10] sm:$0xff] }
  0x17   : > { %908 = vmatpush3.msra.mxu0 %v233_v11  ;;  %926 = vmatprep.subr.mxu1 %v1029_v1  ;;  %v832_v37 = vld [vmem:[%s1320_s3 + $0x90] sm:$0xff]  ;;  %v492_v38 = vld [vmem:[%s1320_s3 + $0x8] sm:$0xff]  ;;  %v491_v40 = vld [vmem:[%s1320_s3] sm:$0xff] }
  0x18   : > { %909 = vmatprep.subr.mxu0 %v1029_v1  ;;  %927 = vmatpush3.msra.mxu1 %v812_v12  ;;  %v831_v39 = vld [vmem:[%s1320_s3 + $0x88] sm:$0xff]  ;;  %v830_v41 = vld [vmem:[%s1320_s3 + $0x80] sm:$0xff]  ;;  %v828_v57 = vld [vmem:[%s1320_s3 + $0x78] sm:$0xff] }
  0x19   : > { %910 = vmatpush3.msra.mxu0 %v232_v13  ;;  %928 = vmatprep.subr.mxu1 %v1029_v1  ;;  %v820_v52 = vld [vmem:[%s1319_s2] ss:$0 sm:$0xff]  ;;  %v827_v58 = vld [vmem:[%s1320_s3 + $0x70] sm:$0xff]  ;;  %v826_v59 = vld [vmem:[%s1320_s3 + $0x68] sm:$0xff] }
  0x1a   : > { %911 = vmatprep.subr.mxu0 %v1029_v1  ;;  %929 = vmatpush3.msra.mxu1 %v811_v14  ;;  %v825_v60 = vld [vmem:[%s1320_s3 + $0x60] sm:$0xff]  ;;  %v824_v61 = vld [vmem:[%s1320_s3 + $0x58] sm:$0xff]  ;;  %v823_v62 = vld [vmem:[%s1320_s3 + $0x50] sm:$0xff] }
  0x1b   : > { %912 = vmatpush3.msra.mxu0 %v231_v15  ;;  %930 = vmatprep.subr.mxu1 %v1029_v1  ;;  %v822_v63 = vld [vmem:[%s1320_s3 + $0x48] sm:$0xff]  ;;  %v821_v0 = vld [vmem:[%s1320_s3 + $0x40] sm:$0xff] }
  0x1c   : > { %914 = vmatmul.mubr.msk.f32.vlgmr.msra.gmra.mxu0 %vm239_vm1, %v1143_v16  ;;  %935 = vmatprep.subr.mxu0 %v1029_v1 }
  0x1d   : > { %936 = vmatpush3.msra.mxu0 %v808_v17  ;;  %931 = vmatpush3.msra.mxu1 %v810_v18 }
  0x1e   : > { %937 = vmatprep.subr.mxu0 %v1029_v1  ;;  %932 = vmatprep.mubr.msk.f32.mxu1 %vm1030_vm0, %v1029_v1 }
  0x1f   : > { %938 = vmatpush3.msra.mxu0 %v807_v19  ;;  %933 = vmatmul.mubr.msk.f32.vlgmr.msra.gmra.mxu1 %vm239_vm1, %v1143_v16 }
  0x20   : > { %939 = vmatprep.subr.mxu0 %v1029_v1  ;;  %951 = vmatprep.mubr.msk.f32.mxu0 %vm1030_vm0, %v1029_v1 }
  0x21   : > { %940 = vmatpush3.msra.mxu0 %v806_v20  ;;  %954 = vmatprep.subr.mxu1 %v1029_v1 }
  0x22   : > { %941 = vmatprep.subr.mxu0 %v1029_v1  ;;  %970 = vmatprep.mubr.msk.f32.mxu1 %vm1030_vm0, %v1029_v1 }
  0x23   : > { %942 = vmatpush3.msra.mxu0 %v805_v21  ;;  %955 = vmatpush3.msra.mxu1 %v498_v26 }
  0x24   : > { %943 = vmatprep.subr.mxu0 %v1029_v1  ;;  %956 = vmatprep.subr.mxu1 %v1029_v1 }
  0x25   : > { %944 = vmatpush3.msra.mxu0 %v804_v22  ;;  %957 = vmatpush3.msra.mxu1 %v497_v28 }
  0x26   : > { %945 = vmatprep.subr.mxu0 %v1029_v1  ;;  %958 = vmatprep.subr.mxu1 %v1029_v1 }
  0x27   : > { %946 = vmatpush3.msra.mxu0 %v803_v23  ;;  %959 = vmatpush3.msra.mxu1 %v496_v30 }
  0x28   : > { %947 = vmatprep.subr.mxu0 %v1029_v1  ;;  %960 = vmatprep.subr.mxu1 %v1029_v1 }
  0x29   : > { %948 = vmatpush3.msra.mxu0 %v802_v24  ;;  %961 = vmatpush3.msra.mxu1 %v495_v32 }
  0x2a   : > { %949 = vmatprep.subr.mxu0 %v1029_v1  ;;  %962 = vmatprep.subr.mxu1 %v1029_v1 }
  0x2b   : > { %950 = vmatpush3.msra.mxu0 %v801_v25  ;;  %963 = vmatpush3.msra.mxu1 %v494_v34 }
  0x2c   : > { %952 = vmatmul.mubr.msk.f32.vlgmr.msra.gmra.mxu0 %vm239_vm1, %v1143_v16  ;;  %973 = vmatprep.subr.mxu0 %v1029_v1 }
  0x2d   : > { %989 = vmatprep.mubr.msk.f32.mxu0 %vm1030_vm0, %v1029_v1  ;;  %974 = vmatpush3.msra.mxu0 %v837_v27 }
  0x2e   : > { %975 = vmatprep.subr.mxu0 %v1029_v1  ;;  %964 = vmatprep.subr.mxu1 %v1029_v1 }
  0x2f   : > { %976 = vmatpush3.msra.mxu0 %v836_v29  ;;  %965 = vmatpush3.msra.mxu1 %v493_v36 }
  0x30   : > { %977 = vmatprep.subr.mxu0 %v1029_v1  ;;  %966 = vmatprep.subr.mxu1 %v1029_v1 }
  0x31   : > { %978 = vmatpush3.msra.mxu0 %v835_v31  ;;  %967 = vmatpush3.msra.mxu1 %v492_v38 }
  0x32   : > { %979 = vmatprep.subr.mxu0 %v1029_v1  ;;  %968 = vmatprep.subr.mxu1 %v1029_v1 }
  0x33   : > { %980 = vmatpush3.msra.mxu0 %v834_v33  ;;  %969 = vmatpush3.msra.mxu1 %v491_v40 }
  0x34   : > { %981 = vmatprep.subr.mxu0 %v1029_v1  ;;  %992 = vmatprep.subr.mxu1 %v1029_v1 }
  0x35   : > { %982 = vmatpush3.msra.mxu0 %v833_v35 }
  0x36   : > { %983 = vmatprep.subr.mxu0 %v1029_v1 }
  0x37   : > { %984 = vmatpush3.msra.mxu0 %v832_v37 }
  0x38   : > { %985 = vmatprep.subr.mxu0 %v1029_v1 }
  0x39   : > { %986 = vmatpush3.msra.mxu0 %v831_v39 }
  0x3a   : > { %987 = vmatprep.subr.mxu0 %v1029_v1 }
  0x3b   : > { %988 = vmatpush3.msra.mxu0 %v830_v41 }
  0xdc   : > { %v309_v42 = vpop.f32.mrf.mxu0 }
  0xdd   : > { %v393_v46 = vrot.slane %v309_v42, 7 }
  0xde   : > { %v915_v43 = vpop.f32.mrf.mxu0 }
  0xdf   : > { %v388_v44 = vpop.f32.mrf.mxu1  ;;  %v396_v49 = vsel %vm395_vm3, 0.0, %v393_v46 }
  0xe0   : > { %v468_v47 = vrot.slane %v388_v44, 1 }
  0xe1   : > { %v934_v45 = vpop.f32.mrf.mxu1 }
  0xe2   : > { %v471_v48 = vsel %vm470_vm2, %v468_v47, 0.0 }
  0xec   : > { %v463_v50 = vpop.f32.mrf.mxu0 }
  0xed   : > { %v464_v51 = vadd.f32 %v463_v50, %v396_v49 }
  0xee   : > { %v953_v53 = vpop.f32.mrf.mxu0 }
  0xef   : > { %v472_v54 = vadd.f32 %v471_v48, %v464_v51 }
  0xf1   : > { %v479_v55 = vadd.f32 %v820_v52, %v472_v54 }
  0xf3   : > { %v480_v56 = vmax.f32 %v479_v55, 0.0 }
  0xf5   : > { %971 = vmatmul.mubr.msk.f32.vlgmr.msra.gmra.mxu1 %vm239_vm1, %v480_v56  ;;  %990 = vmatmul.mubr.msk.f32.vlgmr.msra.gmra.mxu0 %vm239_vm1, %v480_v56 }
  0xf6   : > { %993 = vmatpush3.msra.mxu1 %v828_v57  ;;  %1008 = vmatprep.mubr.msk.f32.mxu1 %vm1030_vm0, %v1029_v1 }
  0xf7   : > { %994 = vmatprep.subr.mxu1 %v1029_v1 }
  0xf8   : > { %995 = vmatpush3.msra.mxu1 %v827_v58 }
  0xf9   : > { %996 = vmatprep.subr.mxu1 %v1029_v1 }
  0xfa   : > { %997 = vmatpush3.msra.mxu1 %v826_v59 }
  0xfb   : > { %998 = vmatprep.subr.mxu1 %v1029_v1 }
  0xfc   : > { %999 = vmatpush3.msra.mxu1 %v825_v60 }
  0xfd   : > { %1000 = vmatprep.subr.mxu1 %v1029_v1 }
  0xfe   : > { %1001 = vmatpush3.msra.mxu1 %v824_v61 }
  0xff   : > { %1002 = vmatprep.subr.mxu1 %v1029_v1 }
 0x100   : > { %1003 = vmatpush3.msra.mxu1 %v823_v62 }
 0x101   : > { %1004 = vmatprep.subr.mxu1 %v1029_v1 }
 0x102   : > { %1005 = vmatpush3.msra.mxu1 %v822_v63 }
 0x103   : > { %1006 = vmatprep.subr.mxu1 %v1029_v1  ;;  %v840_v1 = vld [vmem:[%s1321_s4] ss:$0 sm:$0xff] }
 0x104   : > { %1007 = vmatpush3.msra.mxu1 %v821_v0 }
 0x105   : > { %1009 = vmatmul.mubr.msk.f32.vlgmr.msra.gmra.mxu1 %vm239_vm1, %v480_v56 }
 0x1b5   : > { %v568_v2 = vpop.f32.mrf.mxu1  ;;  %v647_v3 = vpop.f32.mrf.mxu0 }
 0x1b6   : > { %v652_v6 = vrot.slane %v568_v2, 7  ;;  %v726_v7 = vrot.slane %v647_v3, 1 }
 0x1b7   : > { %v972_v4 = vpop.f32.mrf.mxu1  ;;  %v991_v5 = vpop.f32.mrf.mxu0 }
 0x1b8   : > { %v654_v8 = vsel %vm395_vm3, 0.0, %v652_v6  ;;  %v728_v11 = vsel %vm470_vm2, %v726_v7, 0.0 }
 0x1c5   : > { %v721_v9 = vpop.f32.mrf.mxu1 }
 0x1c6   : > { %v722_v10 = vadd.f32 %v721_v9, %v654_v8 }
 0x1c7   : > { %v1010_v12 = vpop.f32.mrf.mxu1 }
 0x1c8   : > { %v729_v13 = vadd.f32 %v728_v11, %v722_v10 }
 0x1ca   : > { %v736_v14 = vadd.f32 %v840_v1, %v729_v13 }
 0x1cc   : > { %v737_v15 = vadd.f32 %v736_v14, %v1143_v16 }
 0x1ce   : > { %v738_v17 = vmax.f32 %v737_v15, 0.0 }
 0x1d0   : > { %740 = vst.msk [vmem:[%s219_s13] sm:$0xf] %vm739_vm4, %v738_v17 }
 0x1d1 PF: > { %s15_s18 = sadd.s32 1, %s1027_s18  }
 0x1d2   : > { %p12_p4 = scmp.ge.s32.totalorder %s15_s18, 4  }
 0x1d4   :  { %14 = sbr.rel (!%p12_p4) target bundleno = 1 (0x1), region = 74 }

// kernel: _lambda_.12
= control target key start
LH: loop header
LB: loop body
LE: loop exit
PB: predicated region body
PF: predicated region fallthrough
CT: control target
= control target key end

     0   :  { %s1262_s21 = smov 0   ;;  %s1554_s0 = inlined_call_operand.vmem [shape: f32[2,4,2,64], index: 0, kind: input, shape index: {}]   ;;  %s1555_s1 = inlined_call_operand.vmem [shape: f32[3,64,64], index: 1, kind: input, shape index: {}]   ;;  %s1556_s2 = inlined_call_operand.vmem [shape: f32[1,64], index: 2, kind: input, shape index: {}]   ;;  %s1557_s3 = inlined_call_operand.vmem [shape: f32[3,64,64], index: 3, kind: input, shape index: {}]   ;;  %s1558_s4 = inlined_call_operand.vmem [shape: f32[1,64], index: 4, kind: input, shape index: {}]   ;;  %s1559_s5 = inlined_call_operand.vmem [shape: f32[64,64], index: 5, kind: input, shape index: {}]   ;;  %s1560_s6 = inlined_call_operand.vmem [shape: f32[2,4,64], index: 6, kind: output, shape index: {}]  }
   0x1 LB: > { %s955_s22 = sadd.s32 4294967295, %s1221_s21   ;;  %p959_p0 = scmp.ge.s32.totalorder %s1221_s21, 1  ;;  %s1221_s21 = sphi %s1262_s21, %s16_s21  }
   0x2   : > { %p212_p1 = scmp.lt.s32.totalorder %s1221_s21, 3 }
   0x4   : > { %p213_p2 = pnand %p959_p0, %p212_p1 }
   0x5   : > { %p241_p3 = scmp.lt.s32.totalorder (!%p213_p2), %s955_s22, 1 }
   0x6   : > { %216 = sbr.rel (%p213_p2) target bundleno = 592 (0x250), region = 44 }
   0xb   : > { %v1223_v0 = vmov 0.0   ;;  %v312_v1 = vld [vmem:[%s1555_s1 + $0x38] sm:$0xff]  ;;  %v311_v3 = vld [vmem:[%s1555_s1 + $0x30] sm:$0xff]  ;;  %s1562_s22 = smov (!%p241_p3, %s955_s22), 1  ;;  %v310_v5 = vld [vmem:[%s1555_s1 + $0x28] sm:$0xff]  ;;  %vm267_vm0 = vcmask 1041409  }
   0xc   : > { %1070 = vmatprep.subr.mxu0 %v1223_v0  ;;  %1089 = vmatprep.subr.mxu1 %v1223_v0  ;;  %v979_v2 = vld [vmem:[%s1555_s1 + $0xb8] sm:$0xff]  ;;  %v978_v4 = vld [vmem:[%s1555_s1 + $0xb0] sm:$0xff]  ;;  %v977_v6 = vld [vmem:[%s1555_s1 + $0xa8] sm:$0xff]  ;;  %s1006_s11 = sshll.u32 %s1562_s22, 3  ;;  %vm270_vm1 = vcmask 1042434   ;;  %vm273_vm2 = vcmask 1043459  }
   0xd   : > { %1071 = vmatpush3.msra.mxu0 %v312_v1  ;;  %1090 = vmatpush3.msra.mxu1 %v979_v2  ;;  %s245_s14 = scalar_lea.vmem %s1554_s0, %s1006_s11  ;;  %v309_v7 = vld [vmem:[%s1555_s1 + $0x20] sm:$0xff]  ;;  %v308_v21 = vld [vmem:[%s1555_s1 + $0x18] sm:$0xff]  ;;  %v307_v23 = vld [vmem:[%s1555_s1 + $0x10] sm:$0xff]  ;;  %s1224_s11 = smov 120   ;;  %vm1225_vm3 = vmmov 0   ;;  %vm281_vm4 = vcmask 457728  }
   0xe   : > { %1072 = vmatprep.subr.mxu0 %v1223_v0  ;;  %1091 = vmatprep.subr.mxu1 %v1223_v0  ;;  %v250_v8 = vld [vmem:[%s245_s14] sm:$0x1]  ;;  %v251_v9 = vld [vmem:[%s245_s14 + $0x2] sm:$0x1]  ;;  %v252_v10 = vld [vmem:[%s245_s14 + $0x4] sm:$0x1] }
   0xf   : > { %1073 = vmatpush3.msra.mxu0 %v311_v3  ;;  %1092 = vmatpush3.msra.mxu1 %v978_v4  ;;  %v253_v11 = vld [vmem:[%s245_s14 + $0x6] sm:$0x1]  ;;  %v254_v12 = vld [vmem:[%s245_s14 + $0x1] sm:$0x1]  ;;  %v255_v13 = vld [vmem:[%s245_s14 + $0x3] sm:$0x1] }
  0x10   : > { %1074 = vmatprep.subr.mxu0 %v1223_v0  ;;  %1093 = vmatprep.subr.mxu1 %v1223_v0  ;;  %v256_v14 = vld [vmem:[%s245_s14 + $0x5] sm:$0x1]  ;;  %v257_v15 = vld [vmem:[%s245_s14 + $0x7] sm:$0x1]  ;;  %v1305_v16 = vmax.f32 %v250_v8, %v254_v12  ;;  %v259_v17 = vmax.f32 %v251_v9, %v255_v13  ;;  %v975_v22 = vld [vmem:[%s1555_s1 + $0x98] sm:$0xff]  ;;  %s1226_s14 = smov 56  }
  0x11   : > { %1075 = vmatpush3.msra.mxu0 %v310_v5  ;;  %1094 = vmatpush3.msra.mxu1 %v977_v6  ;;  %v976_v18 = vld [vmem:[%s1555_s1 + $0xa0] sm:$0xff]  ;;  %v260_v19 = vmax.f32 %v252_v10, %v256_v14  ;;  %v261_v20 = vmax.f32 %v253_v11, %v257_v15  ;;  %v974_v25 = vld [vmem:[%s1555_s1 + $0x90] sm:$0xff]  ;;  %v306_v28 = vld [vmem:[%s1555_s1 + $0x8] sm:$0xff]  ;;  %vm323_vm5 = vcmask 523264   ;;  %vm478_vm6 = vcmask 1040384  }
  0x12   : > { %1076 = vmatprep.subr.mxu0 %v1223_v0  ;;  %1095 = vmatprep.subr.mxu1 %v1223_v0  ;;  %v266_v24 = vrot.slane %v259_v17, 7  ;;  %v973_v31 = vld [vmem:[%s1555_s1 + $0x88] sm:$0xff]  ;;  %v305_v32 = vld [vmem:[%s1555_s1] sm:$0xff]  ;;  %v970_v50 = vld [vmem:[%s1555_s1 + $0x78] sm:$0xff]  ;;  %vm553_vm7 = vcmask 1042432   ;;  %vm900_vm8 = vcmask 519168  }
  0x13   : > { %1077 = vmatpush3.msra.mxu0 %v309_v7  ;;  %1096 = vmatpush3.msra.mxu1 %v976_v18  ;;  %v269_v26 = vrot.slane %v260_v19, 6  ;;  %v272_v27 = vrot.slane %v261_v20, 5  ;;  %v972_v34 = vld [vmem:[%s1555_s1 + $0x80] sm:$0xff]  ;;  %v969_v52 = vld [vmem:[%s1555_s1 + $0x70] sm:$0xff]  ;;  %v968_v53 = vld [vmem:[%s1555_s1 + $0x68] sm:$0xff] }
  0x14   : > { %1078 = vmatprep.subr.mxu0 %v1223_v0  ;;  %1097 = vmatprep.subr.mxu1 %v1223_v0  ;;  %v268_v29 = vsel %vm267_vm0, %v266_v24, %v1305_v16  ;;  %v967_v54 = vld [vmem:[%s1555_s1 + $0x60] sm:$0xff]  ;;  %v966_v55 = vld [vmem:[%s1555_s1 + $0x58] sm:$0xff]  ;;  %v965_v56 = vld [vmem:[%s1555_s1 + $0x50] sm:$0xff] }
  0x15   : > { %1079 = vmatpush3.msra.mxu0 %v308_v21  ;;  %1098 = vmatpush3.msra.mxu1 %v975_v22  ;;  %v271_v30 = vsel %vm270_vm1, %v269_v26, %v268_v29  ;;  %v964_v57 = vld [vmem:[%s1555_s1 + $0x48] sm:$0xff]  ;;  %v963_v58 = vld [vmem:[%s1555_s1 + $0x40] sm:$0xff]  ;;  %v581_v59 = vld [vmem:[%s1557_s3 + $0x38] sm:$0xff] }
  0x16   : > { %1080 = vmatprep.subr.mxu0 %v1223_v0  ;;  %1099 = vmatprep.subr.mxu1 %v1223_v0  ;;  %v274_v33 = vsel %vm273_vm2, %v272_v27, %v271_v30  ;;  %v999_v60 = vld [vmem:[%s1557_s3 + $0xb8] sm:$0xff]  ;;  %v580_v61 = vld [vmem:[%s1557_s3 + $0x30] sm:$0xff]  ;;  %v579_v63 = vld [vmem:[%s1557_s3 + $0x28] sm:$0xff] }
  0x17   : > { %1081 = vmatpush3.msra.mxu0 %v307_v23  ;;  %1100 = vmatpush3.msra.mxu1 %v974_v25  ;;  %v998_v62 = vld [vmem:[%s1557_s3 + $0xb0] sm:$0xff]  ;;  %v997_v1 = vld [vmem:[%s1557_s3 + $0xa8] sm:$0xff]  ;;  %v578_v2 = vld [vmem:[%s1557_s3 + $0x20] sm:$0xff] }
  0x18   : > { %1082 = vmatprep.subr.mxu0 %v1223_v0  ;;  %1101 = vmatprep.subr.mxu1 %v1223_v0  ;;  %v996_v3 = vld [vmem:[%s1557_s3 + $0xa0] sm:$0xff]  ;;  %v577_v4 = vld [vmem:[%s1557_s3 + $0x18] sm:$0xff]  ;;  %v576_v6 = vld [vmem:[%s1557_s3 + $0x10] sm:$0xff] }
  0x19   : > { %1083 = vmatpush3.msra.mxu0 %v306_v28  ;;  %275 = vrot.lane.b32.xlu0 %v274_v33, %s1224_s11  ;;  %v995_v5 = vld [vmem:[%s1557_s3 + $0x98] sm:$0xff]  ;;  %v994_v7 = vld [vmem:[%s1557_s3 + $0x90] sm:$0xff]  ;;  %v575_v8 = vld [vmem:[%s1557_s3 + $0x8] sm:$0xff]  ;;  %s962_s11 = sshll.u32 %s1562_s22, 2 }
  0x1a   : > { %1084 = vmatprep.subr.mxu0 %v1223_v0  ;;  %1102 = vmatpush3.msra.mxu1 %v973_v31  ;;  %v993_v9 = vld [vmem:[%s1557_s3 + $0x88] sm:$0xff]  ;;  %v574_v10 = vld [vmem:[%s1557_s3] sm:$0xff]  ;;  %v990_v27 = vld [vmem:[%s1557_s3 + $0x78] sm:$0xff] }
  0x1b   : > { %1085 = vmatpush3.msra.mxu0 %v305_v32  ;;  %1103 = vmatprep.subr.mxu1 %v1223_v0  ;;  %v992_v11 = vld [vmem:[%s1557_s3 + $0x80] sm:$0xff]  ;;  %v827_v28 = vld [vmem:[%s1559_s5 + $0x38] sm:$0xff]  ;;  %v989_v29 = vld [vmem:[%s1557_s3 + $0x70] sm:$0xff] }
  0x1c   : > { %1086 = vmatprep.mubr.msk.f32.mxu0 %vm1225_vm3, %v1223_v0  ;;  %1104 = vmatpush3.msra.mxu1 %v972_v34  ;;  %v982_v22 = vld [vmem:[%s1556_s2] ss:$0 sm:$0xff]  ;;  %v826_v30 = vld [vmem:[%s1559_s5 + $0x30] sm:$0xff]  ;;  %v988_v31 = vld [vmem:[%s1557_s3 + $0x68] sm:$0xff] }
  0x1d   : > { %1105 = vmatprep.mubr.msk.f32.mxu1 %vm1225_vm3, %v1223_v0  ;;  %278 = vrot.lane.b32.xlu0 %v274_v33, %s1226_s14  ;;  %v825_v32 = vld [vmem:[%s1559_s5 + $0x28] sm:$0xff]  ;;  %v987_v33 = vld [vmem:[%s1557_s3 + $0x60] sm:$0xff]  ;;  %s249_s14 = scalar_lea.vmem %s1560_s6, %s962_s11 }
  0x1e   : > { %1108 = vmatprep.subr.mxu0 %v1223_v0  ;;  %1127 = vmatprep.subr.mxu1 %v1223_v0  ;;  %v824_v34 = vld [vmem:[%s1559_s5 + $0x20] sm:$0xff] }
  0x8b   : > { %v276_v35 = vpop.permute.xlu0 %275 }
  0x8f   : > { %v279_v36 = vpop.permute.xlu0 %278 }
  0x90   : > { %v282_v37 = vsel %vm281_vm4, %v276_v35, %v279_v36  ;;  %v986_v35 = vld [vmem:[%s1557_s3 + $0x58] sm:$0xff] }
  0x91   : > { %v284_v38 = vrot.slane %v282_v37, 1  ;;  %v285_v39 = vrot.slane %v282_v37, 2  ;;  %v286_v40 = vrot.slane %v282_v37, 3  ;;  %v291_v44 = vmax.f32 %v1305_v16, %v282_v37  ;;  %v823_v36 = vld [vmem:[%s1559_s5 + $0x18] sm:$0xff]  ;;  %v985_v37 = vld [vmem:[%s1557_s3 + $0x50] sm:$0xff] }
  0x93   : > { %v292_v41 = vmax.f32 %v259_v17, %v284_v38  ;;  %v293_v42 = vmax.f32 %v260_v19, %v285_v39  ;;  %v294_v43 = vmax.f32 %v261_v20, %v286_v40  ;;  %v822_v38 = vld [vmem:[%s1559_s5 + $0x10] sm:$0xff]  ;;  %v984_v39 = vld [vmem:[%s1557_s3 + $0x48] sm:$0xff] }
  0x94   : > { %v821_v40 = vld [vmem:[%s1559_s5 + $0x8] sm:$0xff] }
  0x95   : > { %v317_v45 = vrot.slane %v292_v41, 7  ;;  %v319_v46 = vrot.slane %v293_v42, 6  ;;  %v321_v48 = vrot.slane %v294_v43, 5  ;;  %v983_v41 = vld [vmem:[%s1557_s3 + $0x40] sm:$0xff] }
  0x96   : > { %v820_v42 = vld [vmem:[%s1559_s5] sm:$0xff] }
  0x97   : > { %v318_v47 = vsel %vm267_vm0, %v317_v45, %v291_v44 }
  0x98   : > { %v320_v49 = vsel %vm270_vm1, %v319_v46, %v318_v47 }
  0x99   : > { %v1359_v51 = vsel %vm273_vm2, %v321_v48, %v320_v49 }
  0x9a   : > { %1087 = vmatmul.mubr.msk.f32.vlgmr.msra.gmra.mxu0 %vm323_vm5, %v1359_v51  ;;  %1106 = vmatmul.mubr.msk.f32.vlgmr.msra.gmra.mxu1 %vm323_vm5, %v1359_v51 }
  0x9b   : > { %1109 = vmatpush3.msra.mxu0 %v970_v50  ;;  %1124 = vmatprep.mubr.msk.f32.mxu0 %vm1225_vm3, %v1223_v0 }
  0x9c   : > { %1110 = vmatprep.subr.mxu0 %v1223_v0  ;;  %1143 = vmatprep.mubr.msk.f32.mxu1 %vm1225_vm3, %v1223_v0 }
  0x9d   : > { %1111 = vmatpush3.msra.mxu0 %v969_v52  ;;  %1128 = vmatpush3.msra.mxu1 %v581_v59 }
  0x9e   : > { %1112 = vmatprep.subr.mxu0 %v1223_v0  ;;  %1129 = vmatprep.subr.mxu1 %v1223_v0 }
  0x9f   : > { %1113 = vmatpush3.msra.mxu0 %v968_v53  ;;  %1130 = vmatpush3.msra.mxu1 %v580_v61 }
  0xa0   : > { %1114 = vmatprep.subr.mxu0 %v1223_v0  ;;  %1131 = vmatprep.subr.mxu1 %v1223_v0 }
  0xa1   : > { %1115 = vmatpush3.msra.mxu0 %v967_v54  ;;  %1132 = vmatpush3.msra.mxu1 %v579_v63 }
  0xa2   : > { %1116 = vmatprep.subr.mxu0 %v1223_v0  ;;  %1133 = vmatprep.subr.mxu1 %v1223_v0 }
  0xa3   : > { %1117 = vmatpush3.msra.mxu0 %v966_v55  ;;  %1134 = vmatpush3.msra.mxu1 %v578_v2 }
  0xa4   : > { %1118 = vmatprep.subr.mxu0 %v1223_v0  ;;  %1135 = vmatprep.subr.mxu1 %v1223_v0 }
  0xa5   : > { %1119 = vmatpush3.msra.mxu0 %v965_v56  ;;  %1136 = vmatpush3.msra.mxu1 %v577_v4 }
  0xa6   : > { %1120 = vmatprep.subr.mxu0 %v1223_v0  ;;  %1137 = vmatprep.subr.mxu1 %v1223_v0 }
  0xa7   : > { %1121 = vmatpush3.msra.mxu0 %v964_v57  ;;  %1138 = vmatpush3.msra.mxu1 %v576_v6 }
  0xa8   : > { %1122 = vmatprep.subr.mxu0 %v1223_v0  ;;  %1139 = vmatprep.subr.mxu1 %v1223_v0 }
  0xa9   : > { %1123 = vmatpush3.msra.mxu0 %v963_v58  ;;  %1140 = vmatpush3.msra.mxu1 %v575_v8 }
  0xaa   : > { %1125 = vmatmul.mubr.msk.f32.vlgmr.msra.gmra.mxu0 %vm323_vm5, %v1359_v51  ;;  %1146 = vmatprep.subr.mxu0 %v1223_v0 }
  0xab   : > { %1162 = vmatprep.mubr.msk.f32.mxu0 %vm1225_vm3, %v1223_v0  ;;  %1147 = vmatpush3.msra.mxu0 %v999_v60 }
  0xac   : > { %1148 = vmatprep.subr.mxu0 %v1223_v0  ;;  %1141 = vmatprep.subr.mxu1 %v1223_v0 }
  0xad   : > { %1149 = vmatpush3.msra.mxu0 %v998_v62  ;;  %1142 = vmatpush3.msra.mxu1 %v574_v10 }
  0xae   : > { %1150 = vmatprep.subr.mxu0 %v1223_v0  ;;  %1165 = vmatprep.subr.mxu1 %v1223_v0 }
  0xaf   : > { %1151 = vmatpush3.msra.mxu0 %v997_v1 }
  0xb0   : > { %1152 = vmatprep.subr.mxu0 %v1223_v0 }
  0xb1   : > { %1153 = vmatpush3.msra.mxu0 %v996_v3 }
  0xb2   : > { %1154 = vmatprep.subr.mxu0 %v1223_v0 }
  0xb3   : > { %1155 = vmatpush3.msra.mxu0 %v995_v5 }
  0xb4   : > { %1156 = vmatprep.subr.mxu0 %v1223_v0 }
  0xb5   : > { %1157 = vmatpush3.msra.mxu0 %v994_v7 }
  0xb6   : > { %1158 = vmatprep.subr.mxu0 %v1223_v0 }
  0xb7   : > { %1159 = vmatpush3.msra.mxu0 %v993_v9 }
  0xb8   : > { %1160 = vmatprep.subr.mxu0 %v1223_v0 }
  0xb9   : > { %1161 = vmatpush3.msra.mxu0 %v992_v11 }
  0xba   : > { %1184 = vmatprep.subr.mxu0 %v1223_v0 }
 0x15a   : > { %v392_v12 = vpop.f32.mrf.mxu0  ;;  %v471_v13 = vpop.f32.mrf.mxu1 }
 0x15b   : > { %v476_v16 = vrot.slane %v392_v12, 7  ;;  %v551_v17 = vrot.slane %v471_v13, 1 }
 0x15c   : > { %v1088_v14 = vpop.f32.mrf.mxu0  ;;  %v1107_v15 = vpop.f32.mrf.mxu1 }
 0x15d   : > { %v479_v18 = vsel %vm478_vm6, 0.0, %v476_v16  ;;  %v554_v21 = vsel %vm553_vm7, %v551_v17, 0.0 }
 0x16a   : > { %v546_v19 = vpop.f32.mrf.mxu0 }
 0x16b   : > { %v547_v20 = vadd.f32 %v546_v19, %v479_v18 }
 0x16c   : > { %v1126_v23 = vpop.f32.mrf.mxu0 }
 0x16d   : > { %v555_v24 = vadd.f32 %v554_v21, %v547_v20 }
 0x16f   : > { %v562_v25 = vadd.f32 %v982_v22, %v555_v24 }
 0x171   : > { %v563_v26 = vmax.f32 %v562_v25, 0.0 }
 0x173   : > { %1144 = vmatmul.mubr.msk.f32.vlgmr.msra.gmra.mxu1 %vm323_vm5, %v563_v26  ;;  %1163 = vmatmul.mubr.msk.f32.vlgmr.msra.gmra.mxu0 %vm323_vm5, %v563_v26 }
 0x174   : > { %1166 = vmatpush3.msra.mxu1 %v990_v27  ;;  %1185 = vmatpush3.msra.mxu0 %v827_v28 }
 0x175   : > { %1167 = vmatprep.subr.mxu1 %v1223_v0  ;;  %1186 = vmatprep.subr.mxu0 %v1223_v0 }
 0x176   : > { %1168 = vmatpush3.msra.mxu1 %v989_v29  ;;  %1187 = vmatpush3.msra.mxu0 %v826_v30 }
 0x177   : > { %1169 = vmatprep.subr.mxu1 %v1223_v0  ;;  %1188 = vmatprep.subr.mxu0 %v1223_v0 }
 0x178   : > { %1170 = vmatpush3.msra.mxu1 %v988_v31  ;;  %1189 = vmatpush3.msra.mxu0 %v825_v32 }
 0x179   : > { %1171 = vmatprep.subr.mxu1 %v1223_v0  ;;  %1190 = vmatprep.subr.mxu0 %v1223_v0 }
 0x17a   : > { %1172 = vmatpush3.msra.mxu1 %v987_v33  ;;  %1191 = vmatpush3.msra.mxu0 %v824_v34 }
 0x17b   : > { %1173 = vmatprep.subr.mxu1 %v1223_v0  ;;  %1192 = vmatprep.subr.mxu0 %v1223_v0 }
 0x17c   : > { %1174 = vmatpush3.msra.mxu1 %v986_v35  ;;  %1193 = vmatpush3.msra.mxu0 %v823_v36 }
 0x17d   : > { %1175 = vmatprep.subr.mxu1 %v1223_v0  ;;  %1194 = vmatprep.subr.mxu0 %v1223_v0 }
 0x17e   : > { %1176 = vmatpush3.msra.mxu1 %v985_v37  ;;  %1195 = vmatpush3.msra.mxu0 %v822_v38 }
 0x17f   : > { %1177 = vmatprep.subr.mxu1 %v1223_v0  ;;  %1196 = vmatprep.subr.mxu0 %v1223_v0 }
 0x180   : > { %1178 = vmatpush3.msra.mxu1 %v984_v39  ;;  %1197 = vmatpush3.msra.mxu0 %v821_v40 }
 0x181   : > { %1179 = vmatprep.subr.mxu1 %v1223_v0  ;;  %1198 = vmatprep.subr.mxu0 %v1223_v0 }
 0x182   : > { %1180 = vmatpush3.msra.mxu1 %v983_v41  ;;  %1181 = vmatprep.mubr.msk.f32.mxu1 %vm1225_vm3, %v1223_v0 }
 0x183   : > { %1199 = vmatpush3.msra.mxu0 %v820_v42  ;;  %1200 = vmatprep.mubr.msk.f32.mxu0 %vm1225_vm3, %v1223_v0  ;;  %v1002_v0 = vld [vmem:[%s1558_s4] ss:$0 sm:$0xff] }
 0x184   : > { %1182 = vmatmul.mubr.msk.f32.vlgmr.msra.gmra.mxu1 %vm323_vm5, %v563_v26  ;;  %1201 = vmatmul.mubr.msk.f32.vlgmr.msra.gmra.mxu0 %vm323_vm5, %v1359_v51 }
 0x233   : > { %v651_v43 = vpop.f32.mrf.mxu1  ;;  %v730_v44 = vpop.f32.mrf.mxu0 }
 0x234   : > { %v735_v47 = vrot.slane %v651_v43, 7  ;;  %v809_v48 = vrot.slane %v730_v44, 1 }
 0x235   : > { %v1145_v45 = vpop.f32.mrf.mxu1  ;;  %v1164_v46 = vpop.f32.mrf.mxu0 }
 0x236   : > { %v737_v49 = vsel %vm478_vm6, 0.0, %v735_v47  ;;  %v811_v54 = vsel %vm553_vm7, %v809_v48, 0.0 }
 0x244   : > { %v804_v50 = vpop.f32.mrf.mxu1  ;;  %v894_v52 = vpop.f32.mrf.mxu0 }
 0x245   : > { %v805_v53 = vadd.f32 %v804_v50, %v737_v49 }
 0x246   : > { %v1183_v55 = vpop.f32.mrf.mxu1  ;;  %v1202_v51 = vpop.f32.mrf.mxu0 }
 0x247   : > { %v812_v56 = vadd.f32 %v811_v54, %v805_v53 }
 0x249   : > { %v819_v57 = vadd.f32 %v1002_v0, %v812_v56 }
 0x24b   : > { %v898_v58 = vadd.f32 %v894_v52, %v819_v57 }
 0x24d   : > { %v899_v59 = vmax.f32 %v898_v58, 0.0 }
 0x24f   : > { %901 = vst.msk [vmem:[%s249_s14] sm:$0xf] %vm900_vm8, %v899_v59 }
 0x250 PF: > { %s16_s21 = sadd.s32 1, %s1221_s21  }
 0x251   : > { %p13_p4 = scmp.ge.s32.totalorder %s16_s21, 4  }
 0x253   :  { %15 = sbr.rel (!%p13_p4) target bundleno = 1 (0x1), region = 78 }

// kernel: _lambda_.11
= control target key start
LH: loop header
LB: loop body
LE: loop exit
PB: predicated region body
PF: predicated region fallthrough
CT: control target
= control target key end

     0   :  { %s1060_s18 = smov 0   ;;  %s1317_s0 = inlined_call_operand.vmem [shape: f32[2,8,64], index: 0, kind: input, shape index: {}]   ;;  %s1318_s1 = inlined_call_operand.vmem [shape: f32[3,64,64], index: 1, kind: input, shape index: {}]   ;;  %s1319_s2 = inlined_call_operand.vmem [shape: f32[1,64], index: 2, kind: input, shape index: {}]   ;;  %s1320_s3 = inlined_call_operand.vmem [shape: f32[3,64,64], index: 3, kind: input, shape index: {}]   ;;  %s1321_s4 = inlined_call_operand.vmem [shape: f32[1,64], index: 4, kind: input, shape index: {}]   ;;  %s1322_s5 = inlined_call_operand.vmem [shape: f32[2,8,64], index: 5, kind: output, shape index: {}]  }
   0x1 LB: > { %s793_s19 = sadd.s32 4294967295, %s1026_s18   ;;  %p797_p0 = scmp.ge.s32.totalorder %s1026_s18, 1  ;;  %s1026_s18 = sphi %s1060_s18, %s15_s18  }
   0x2   : > { %p186_p1 = scmp.lt.s32.totalorder %s1026_s18, 3 }
   0x4   : > { %p187_p2 = pnand %p797_p0, %p186_p1 }
   0x5   : > { %p1071_p3 = scmp.lt.s32.totalorder (!%p187_p2), %s793_s19, 1 }
   0x6   : > { %190 = sbr.rel (%p187_p2) target bundleno = 465 (0x1d1), region = 40 }
   0xb   : > { %v238_v0 = vld [vmem:[%s1318_s1 + $0x38] sm:$0xff]  ;;  %v1028_v1 = vmov 0.0   ;;  %v237_v2 = vld [vmem:[%s1318_s1 + $0x30] sm:$0xff]  ;;  %vm1029_vm0 = vmmov 0   ;;  %v236_v4 = vld [vmem:[%s1318_s1 + $0x28] sm:$0xff]  ;;  %s1325_s19 = smov (!%p1071_p3, %s793_s19), 1 }
   0xc   : > { %896 = vmatprep.subr.mxu0 %v1028_v1  ;;  %915 = vmatprep.subr.mxu1 %v1028_v1  ;;  %v816_v3 = vld [vmem:[%s1318_s1 + $0xb8] sm:$0xff]  ;;  %v815_v5 = vld [vmem:[%s1318_s1 + $0xb0] sm:$0xff]  ;;  %v814_v6 = vld [vmem:[%s1318_s1 + $0xa8] sm:$0xff]  ;;  %s798_s14 = sshll.u32 %s1325_s19, 3  ;;  %vm239_vm1 = vcmask 523264   ;;  %vm470_vm2 = vcmask 1046528  }
   0xd   : > { %897 = vmatpush3.msra.mxu0 %v238_v0  ;;  %912 = vmatprep.mubr.msk.f32.mxu0 %vm1029_vm0, %v1028_v1  ;;  %v235_v7 = vld [vmem:[%s1318_s1 + $0x20] sm:$0xff]  ;;  %v234_v9 = vld [vmem:[%s1318_s1 + $0x18] sm:$0xff]  ;;  %v233_v11 = vld [vmem:[%s1318_s1 + $0x10] sm:$0xff]  ;;  %s215_s27 = scalar_lea.vmem %s1317_s0, %s798_s14  ;;  %vm395_vm3 = vcmask 1040384   ;;  %s219_s13 = scalar_lea.vmem %s1322_s5, %s798_s14 }
   0xe   : > { %898 = vmatprep.subr.mxu0 %v1028_v1  ;;  %916 = vmatpush3.msra.mxu1 %v816_v3  ;;  %v813_v8 = vld [vmem:[%s1318_s1 + $0xa0] sm:$0xff]  ;;  %v812_v10 = vld [vmem:[%s1318_s1 + $0x98] sm:$0xff]  ;;  %v811_v12 = vld [vmem:[%s1318_s1 + $0x90] sm:$0xff] }
   0xf   : > { %899 = vmatpush3.msra.mxu0 %v237_v2  ;;  %917 = vmatprep.subr.mxu1 %v1028_v1  ;;  %v232_v13 = vld [vmem:[%s1318_s1 + $0x8] sm:$0xff]  ;;  %v231_v15 = vld [vmem:[%s1318_s1] sm:$0xff]  ;;  %v807_v17 = vld [vmem:[%s1318_s1 + $0x78] sm:$0xff] }
  0x10   : > { %900 = vmatprep.subr.mxu0 %v1028_v1  ;;  %918 = vmatpush3.msra.mxu1 %v815_v5  ;;  %v810_v14 = vld [vmem:[%s1318_s1 + $0x88] sm:$0xff]  ;;  %v1142_v16 = vld [vmem:[%s215_s27] sm:$0xff]  ;;  %v806_v19 = vld [vmem:[%s1318_s1 + $0x70] sm:$0xff] }
  0x11   : > { %901 = vmatpush3.msra.mxu0 %v236_v4  ;;  %919 = vmatprep.subr.mxu1 %v1028_v1  ;;  %v809_v18 = vld [vmem:[%s1318_s1 + $0x80] sm:$0xff]  ;;  %v805_v20 = vld [vmem:[%s1318_s1 + $0x68] sm:$0xff]  ;;  %v803_v22 = vld [vmem:[%s1318_s1 + $0x58] sm:$0xff] }
  0x12   : > { %902 = vmatprep.subr.mxu0 %v1028_v1  ;;  %920 = vmatpush3.msra.mxu1 %v814_v6  ;;  %v804_v21 = vld [vmem:[%s1318_s1 + $0x60] sm:$0xff]  ;;  %v802_v23 = vld [vmem:[%s1318_s1 + $0x50] sm:$0xff]  ;;  %v801_v24 = vld [vmem:[%s1318_s1 + $0x48] sm:$0xff] }
  0x13   : > { %903 = vmatpush3.msra.mxu0 %v235_v7  ;;  %921 = vmatprep.subr.mxu1 %v1028_v1  ;;  %v800_v25 = vld [vmem:[%s1318_s1 + $0x40] sm:$0xff]  ;;  %v498_v26 = vld [vmem:[%s1320_s3 + $0x38] sm:$0xff]  ;;  %v497_v28 = vld [vmem:[%s1320_s3 + $0x30] sm:$0xff] }
  0x14   : > { %904 = vmatprep.subr.mxu0 %v1028_v1  ;;  %922 = vmatpush3.msra.mxu1 %v813_v8  ;;  %v836_v27 = vld [vmem:[%s1320_s3 + $0xb8] sm:$0xff]  ;;  %v835_v29 = vld [vmem:[%s1320_s3 + $0xb0] sm:$0xff]  ;;  %v496_v30 = vld [vmem:[%s1320_s3 + $0x28] sm:$0xff] }
  0x15   : > { %905 = vmatpush3.msra.mxu0 %v234_v9  ;;  %923 = vmatprep.subr.mxu1 %v1028_v1  ;;  %v834_v31 = vld [vmem:[%s1320_s3 + $0xa8] sm:$0xff]  ;;  %v495_v32 = vld [vmem:[%s1320_s3 + $0x20] sm:$0xff]  ;;  %v494_v34 = vld [vmem:[%s1320_s3 + $0x18] sm:$0xff] }
  0x16   : > { %906 = vmatprep.subr.mxu0 %v1028_v1  ;;  %924 = vmatpush3.msra.mxu1 %v812_v10  ;;  %v833_v33 = vld [vmem:[%s1320_s3 + $0xa0] sm:$0xff]  ;;  %v832_v35 = vld [vmem:[%s1320_s3 + $0x98] sm:$0xff]  ;;  %v493_v36 = vld [vmem:[%s1320_s3 + $0x10] sm:$0xff] }
  0x17   : > { %907 = vmatpush3.msra.mxu0 %v233_v11  ;;  %925 = vmatprep.subr.mxu1 %v1028_v1  ;;  %v831_v37 = vld [vmem:[%s1320_s3 + $0x90] sm:$0xff]  ;;  %v492_v38 = vld [vmem:[%s1320_s3 + $0x8] sm:$0xff]  ;;  %v491_v40 = vld [vmem:[%s1320_s3] sm:$0xff] }
  0x18   : > { %908 = vmatprep.subr.mxu0 %v1028_v1  ;;  %926 = vmatpush3.msra.mxu1 %v811_v12  ;;  %v830_v39 = vld [vmem:[%s1320_s3 + $0x88] sm:$0xff]  ;;  %v829_v41 = vld [vmem:[%s1320_s3 + $0x80] sm:$0xff]  ;;  %v827_v57 = vld [vmem:[%s1320_s3 + $0x78] sm:$0xff] }
  0x19   : > { %909 = vmatpush3.msra.mxu0 %v232_v13  ;;  %927 = vmatprep.subr.mxu1 %v1028_v1  ;;  %v819_v52 = vld [vmem:[%s1319_s2] ss:$0 sm:$0xff]  ;;  %v826_v58 = vld [vmem:[%s1320_s3 + $0x70] sm:$0xff]  ;;  %v825_v59 = vld [vmem:[%s1320_s3 + $0x68] sm:$0xff] }
  0x1a   : > { %910 = vmatprep.subr.mxu0 %v1028_v1  ;;  %928 = vmatpush3.msra.mxu1 %v810_v14  ;;  %v824_v60 = vld [vmem:[%s1320_s3 + $0x60] sm:$0xff]  ;;  %v823_v61 = vld [vmem:[%s1320_s3 + $0x58] sm:$0xff]  ;;  %v822_v62 = vld [vmem:[%s1320_s3 + $0x50] sm:$0xff] }
  0x1b   : > { %911 = vmatpush3.msra.mxu0 %v231_v15  ;;  %929 = vmatprep.subr.mxu1 %v1028_v1  ;;  %v821_v63 = vld [vmem:[%s1320_s3 + $0x48] sm:$0xff]  ;;  %v820_v0 = vld [vmem:[%s1320_s3 + $0x40] sm:$0xff] }
  0x1c   : > { %913 = vmatmul.mubr.msk.f32.vlgmr.msra.gmra.mxu0 %vm239_vm1, %v1142_v16  ;;  %934 = vmatprep.subr.mxu0 %v1028_v1 }
  0x1d   : > { %935 = vmatpush3.msra.mxu0 %v807_v17  ;;  %930 = vmatpush3.msra.mxu1 %v809_v18 }
  0x1e   : > { %936 = vmatprep.subr.mxu0 %v1028_v1  ;;  %931 = vmatprep.mubr.msk.f32.mxu1 %vm1029_vm0, %v1028_v1 }
  0x1f   : > { %937 = vmatpush3.msra.mxu0 %v806_v19  ;;  %932 = vmatmul.mubr.msk.f32.vlgmr.msra.gmra.mxu1 %vm239_vm1, %v1142_v16 }
  0x20   : > { %938 = vmatprep.subr.mxu0 %v1028_v1  ;;  %950 = vmatprep.mubr.msk.f32.mxu0 %vm1029_vm0, %v1028_v1 }
  0x21   : > { %939 = vmatpush3.msra.mxu0 %v805_v20  ;;  %953 = vmatprep.subr.mxu1 %v1028_v1 }
  0x22   : > { %940 = vmatprep.subr.mxu0 %v1028_v1  ;;  %969 = vmatprep.mubr.msk.f32.mxu1 %vm1029_vm0, %v1028_v1 }
  0x23   : > { %941 = vmatpush3.msra.mxu0 %v804_v21  ;;  %954 = vmatpush3.msra.mxu1 %v498_v26 }
  0x24   : > { %942 = vmatprep.subr.mxu0 %v1028_v1  ;;  %955 = vmatprep.subr.mxu1 %v1028_v1 }
  0x25   : > { %943 = vmatpush3.msra.mxu0 %v803_v22  ;;  %956 = vmatpush3.msra.mxu1 %v497_v28 }
  0x26   : > { %944 = vmatprep.subr.mxu0 %v1028_v1  ;;  %957 = vmatprep.subr.mxu1 %v1028_v1 }
  0x27   : > { %945 = vmatpush3.msra.mxu0 %v802_v23  ;;  %958 = vmatpush3.msra.mxu1 %v496_v30 }
  0x28   : > { %946 = vmatprep.subr.mxu0 %v1028_v1  ;;  %959 = vmatprep.subr.mxu1 %v1028_v1 }
  0x29   : > { %947 = vmatpush3.msra.mxu0 %v801_v24  ;;  %960 = vmatpush3.msra.mxu1 %v495_v32 }
  0x2a   : > { %948 = vmatprep.subr.mxu0 %v1028_v1  ;;  %961 = vmatprep.subr.mxu1 %v1028_v1 }
  0x2b   : > { %949 = vmatpush3.msra.mxu0 %v800_v25  ;;  %962 = vmatpush3.msra.mxu1 %v494_v34 }
  0x2c   : > { %951 = vmatmul.mubr.msk.f32.vlgmr.msra.gmra.mxu0 %vm239_vm1, %v1142_v16  ;;  %972 = vmatprep.subr.mxu0 %v1028_v1 }
  0x2d   : > { %988 = vmatprep.mubr.msk.f32.mxu0 %vm1029_vm0, %v1028_v1  ;;  %973 = vmatpush3.msra.mxu0 %v836_v27 }
  0x2e   : > { %974 = vmatprep.subr.mxu0 %v1028_v1  ;;  %963 = vmatprep.subr.mxu1 %v1028_v1 }
  0x2f   : > { %975 = vmatpush3.msra.mxu0 %v835_v29  ;;  %964 = vmatpush3.msra.mxu1 %v493_v36 }
  0x30   : > { %976 = vmatprep.subr.mxu0 %v1028_v1  ;;  %965 = vmatprep.subr.mxu1 %v1028_v1 }
  0x31   : > { %977 = vmatpush3.msra.mxu0 %v834_v31  ;;  %966 = vmatpush3.msra.mxu1 %v492_v38 }
  0x32   : > { %978 = vmatprep.subr.mxu0 %v1028_v1  ;;  %967 = vmatprep.subr.mxu1 %v1028_v1 }
  0x33   : > { %979 = vmatpush3.msra.mxu0 %v833_v33  ;;  %968 = vmatpush3.msra.mxu1 %v491_v40 }
  0x34   : > { %980 = vmatprep.subr.mxu0 %v1028_v1  ;;  %991 = vmatprep.subr.mxu1 %v1028_v1 }
  0x35   : > { %981 = vmatpush3.msra.mxu0 %v832_v35 }
  0x36   : > { %982 = vmatprep.subr.mxu0 %v1028_v1 }
  0x37   : > { %983 = vmatpush3.msra.mxu0 %v831_v37 }
  0x38   : > { %984 = vmatprep.subr.mxu0 %v1028_v1 }
  0x39   : > { %985 = vmatpush3.msra.mxu0 %v830_v39 }
  0x3a   : > { %986 = vmatprep.subr.mxu0 %v1028_v1 }
  0x3b   : > { %987 = vmatpush3.msra.mxu0 %v829_v41 }
  0xdc   : > { %v309_v42 = vpop.f32.mrf.mxu0 }
  0xdd   : > { %v393_v46 = vrot.slane %v309_v42, 7 }
  0xde   : > { %v914_v43 = vpop.f32.mrf.mxu0 }
  0xdf   : > { %v388_v44 = vpop.f32.mrf.mxu1  ;;  %v396_v49 = vsel %vm395_vm3, 0.0, %v393_v46 }
  0xe0   : > { %v468_v47 = vrot.slane %v388_v44, 1 }
  0xe1   : > { %v933_v45 = vpop.f32.mrf.mxu1 }
  0xe2   : > { %v471_v48 = vsel %vm470_vm2, %v468_v47, 0.0 }
  0xec   : > { %v463_v50 = vpop.f32.mrf.mxu0 }
  0xed   : > { %v464_v51 = vadd.f32 %v463_v50, %v396_v49 }
  0xee   : > { %v952_v53 = vpop.f32.mrf.mxu0 }
  0xef   : > { %v472_v54 = vadd.f32 %v471_v48, %v464_v51 }
  0xf1   : > { %v479_v55 = vadd.f32 %v819_v52, %v472_v54 }
  0xf3   : > { %v480_v56 = vmax.f32 %v479_v55, 0.0 }
  0xf5   : > { %970 = vmatmul.mubr.msk.f32.vlgmr.msra.gmra.mxu1 %vm239_vm1, %v480_v56  ;;  %989 = vmatmul.mubr.msk.f32.vlgmr.msra.gmra.mxu0 %vm239_vm1, %v480_v56 }
  0xf6   : > { %992 = vmatpush3.msra.mxu1 %v827_v57  ;;  %1007 = vmatprep.mubr.msk.f32.mxu1 %vm1029_vm0, %v1028_v1 }
  0xf7   : > { %993 = vmatprep.subr.mxu1 %v1028_v1 }
  0xf8   : > { %994 = vmatpush3.msra.mxu1 %v826_v58 }
  0xf9   : > { %995 = vmatprep.subr.mxu1 %v1028_v1 }
  0xfa   : > { %996 = vmatpush3.msra.mxu1 %v825_v59 }
  0xfb   : > { %997 = vmatprep.subr.mxu1 %v1028_v1 }
  0xfc   : > { %998 = vmatpush3.msra.mxu1 %v824_v60 }
  0xfd   : > { %999 = vmatprep.subr.mxu1 %v1028_v1 }
  0xfe   : > { %1000 = vmatpush3.msra.mxu1 %v823_v61 }
  0xff   : > { %1001 = vmatprep.subr.mxu1 %v1028_v1 }
 0x100   : > { %1002 = vmatpush3.msra.mxu1 %v822_v62 }
 0x101   : > { %1003 = vmatprep.subr.mxu1 %v1028_v1 }
 0x102   : > { %1004 = vmatpush3.msra.mxu1 %v821_v63 }
 0x103   : > { %1005 = vmatprep.subr.mxu1 %v1028_v1  ;;  %v839_v1 = vld [vmem:[%s1321_s4] ss:$0 sm:$0xff] }
 0x104   : > { %1006 = vmatpush3.msra.mxu1 %v820_v0 }
 0x105   : > { %1008 = vmatmul.mubr.msk.f32.vlgmr.msra.gmra.mxu1 %vm239_vm1, %v480_v56 }
 0x1b5   : > { %v568_v2 = vpop.f32.mrf.mxu1  ;;  %v647_v3 = vpop.f32.mrf.mxu0 }
 0x1b6   : > { %v652_v6 = vrot.slane %v568_v2, 7  ;;  %v726_v7 = vrot.slane %v647_v3, 1 }
 0x1b7   : > { %v971_v4 = vpop.f32.mrf.mxu1  ;;  %v990_v5 = vpop.f32.mrf.mxu0 }
 0x1b8   : > { %v654_v8 = vsel %vm395_vm3, 0.0, %v652_v6  ;;  %v728_v11 = vsel %vm470_vm2, %v726_v7, 0.0 }
 0x1c5   : > { %v721_v9 = vpop.f32.mrf.mxu1 }
 0x1c6   : > { %v722_v10 = vadd.f32 %v721_v9, %v654_v8 }
 0x1c7   : > { %v1009_v12 = vpop.f32.mrf.mxu1 }
 0x1c8   : > { %v729_v13 = vadd.f32 %v728_v11, %v722_v10 }
 0x1ca   : > { %v736_v14 = vadd.f32 %v839_v1, %v729_v13 }
 0x1cc   : > { %v737_v15 = vadd.f32 %v736_v14, %v1142_v16 }
 0x1ce   : > { %v738_v17 = vmax.f32 %v737_v15, 0.0 }
 0x1d0   : > { %739 = vst.msk [vmem:[%s219_s13] sm:$0xff] %vm239_vm1, %v738_v17 }
 0x1d1 PF: > { %s15_s18 = sadd.s32 1, %s1026_s18  }
 0x1d2   : > { %p12_p4 = scmp.ge.s32.totalorder %s15_s18, 4  }
 0x1d4   :  { %14 = sbr.rel (!%p12_p4) target bundleno = 1 (0x1), region = 74 }

// kernel: _lambda_.9
= control target key start
LH: loop header
LB: loop body
LE: loop exit
PB: predicated region body
PF: predicated region fallthrough
CT: control target
= control target key end

     0   :  { %s1339_s18 = smov 0   ;;  %s1681_s0 = inlined_call_operand.vmem [shape: f32[2,16,128], index: 0, kind: input, shape index: {}]   ;;  %s1682_s1 = inlined_call_operand.vmem [shape: f32[3,128,128], index: 1, kind: input, shape index: {}]   ;;  %s1683_s2 = inlined_call_operand.vmem [shape: f32[1,128], index: 2, kind: input, shape index: {}]   ;;  %s1684_s3 = inlined_call_operand.vmem [shape: f32[3,128,128], index: 3, kind: input, shape index: {}]   ;;  %s1685_s4 = inlined_call_operand.vmem [shape: f32[1,128], index: 4, kind: input, shape index: {}]   ;;  %s1686_s5 = inlined_call_operand.vmem [shape: f32[2,16,128], index: 5, kind: output, shape index: {}]  }
   0x1 LB: > { %s896_s19 = sadd.s32 4294967295, %s1307_s18   ;;  %p900_p0 = scmp.ge.s32.totalorder %s1307_s18, 1  ;;  %s1307_s18 = sphi %s1339_s18, %s15_s18  }
   0x2   : > { %p187_p1 = scmp.lt.s32.totalorder %s1307_s18, 3 }
   0x4   : > { %p188_p2 = pnand %p900_p0, %p187_p1 }
   0x5   : > { %p215_p3 = scmp.lt.s32.totalorder (!%p188_p2), %s896_s19, 1 }
   0x6   : > { %191 = sbr.rel (%p188_p2) target bundleno = 518 (0x206), region = 40 }
   0xb   : > { %v260_v0 = vld [vmem:[%s1682_s1 + $0x78] sm:$0xff]  ;;  %v259_v1 = vld [vmem:[%s1682_s1 + $0x70] sm:$0xff]  ;;  %v258_v2 = vld [vmem:[%s1682_s1 + $0x68] sm:$0xff]  ;;  %s1688_s19 = smov (!%p215_p3, %s896_s19), 1  ;;  %vm514_vm0 = vcmask 1046528   ;;  %vm430_vm1 = vcmask 1040384  }
   0xc   : > { %1083 = vmatprep.subr.mxu0 %v260_v0  ;;  %v257_v3 = vld [vmem:[%s1682_s1 + $0x60] sm:$0xff]  ;;  %s973_s28 = sshll.u32 %s1688_s19, 4  ;;  %v936_v4 = vld [vmem:[%s1682_s1 + $0x178] sm:$0xff]  ;;  %v935_v7 = vld [vmem:[%s1682_s1 + $0x170] sm:$0xff] }
   0xd   : > { %1084 = vmatpush3.msra.mxu0 %v260_v0  ;;  %s1370_s8 = scalar_lea.vmem %s1681_s0, %s973_s28  ;;  %v256_v5 = vld [vmem:[%s1682_s1 + $0x58] sm:$0xff]  ;;  %1118 = vmatprep.subr.mxu1 %v936_v4  ;;  %v255_v8 = vld [vmem:[%s1682_s1 + $0x50] sm:$0xff]  ;;  %v934_v9 = vld [vmem:[%s1682_s1 + $0x168] sm:$0xff]  ;;  %s224_s24 = scalar_lea.vmem %s1686_s5, %s973_s28 }
   0xe   : > { %1085 = vmatprep.subr.mxu0 %v259_v1  ;;  %v1376_v6 = vld [vmem:[%s1370_s8] sm:$0xff]  ;;  %1119 = vmatpush3.msra.mxu1 %v936_v4  ;;  %v254_v10 = vld [vmem:[%s1682_s1 + $0x48] sm:$0xff]  ;;  %v932_v13 = vld [vmem:[%s1682_s1 + $0x158] sm:$0xff] }
   0xf   : > { %1086 = vmatpush3.msra.mxu0 %v259_v1  ;;  %1115 = vmatprep.mubr.f32.mxu0 %v1376_v6  ;;  %v933_v11 = vld [vmem:[%s1682_s1 + $0x160] sm:$0xff]  ;;  %v252_v14 = vld [vmem:[%s1682_s1 + $0x38] sm:$0xff]  ;;  %v931_v15 = vld [vmem:[%s1682_s1 + $0x150] sm:$0xff] }
  0x10   : > { %1087 = vmatprep.subr.mxu0 %v258_v2  ;;  %1120 = vmatprep.subr.mxu1 %v935_v7  ;;  %v253_v12 = vld [vmem:[%s1682_s1 + $0x40] sm:$0xff]  ;;  %v251_v16 = vld [vmem:[%s1682_s1 + $0x30] sm:$0xff]  ;;  %v930_v17 = vld [vmem:[%s1682_s1 + $0x148] sm:$0xff] }
  0x11   : > { %1088 = vmatpush3.msra.mxu0 %v258_v2  ;;  %1121 = vmatpush3.msra.mxu1 %v935_v7  ;;  %v250_v18 = vld [vmem:[%s1682_s1 + $0x28] sm:$0xff]  ;;  %v929_v19 = vld [vmem:[%s1682_s1 + $0x140] sm:$0xff]  ;;  %v928_v21 = vld [vmem:[%s1682_s1 + $0x138] sm:$0xff] }
  0x12   : > { %1089 = vmatprep.subr.mxu0 %v257_v3  ;;  %1122 = vmatprep.subr.mxu1 %v934_v9  ;;  %v249_v20 = vld [vmem:[%s1682_s1 + $0x20] sm:$0xff]  ;;  %v248_v22 = vld [vmem:[%s1682_s1 + $0x18] sm:$0xff]  ;;  %v927_v23 = vld [vmem:[%s1682_s1 + $0x130] sm:$0xff] }
  0x13   : > { %1090 = vmatpush3.msra.mxu0 %v257_v3  ;;  %1123 = vmatpush3.msra.mxu1 %v934_v9  ;;  %v247_v24 = vld [vmem:[%s1682_s1 + $0x10] sm:$0xff]  ;;  %v926_v25 = vld [vmem:[%s1682_s1 + $0x128] sm:$0xff]  ;;  %v925_v27 = vld [vmem:[%s1682_s1 + $0x120] sm:$0xff] }
  0x14   : > { %1091 = vmatprep.subr.mxu0 %v256_v5  ;;  %1124 = vmatprep.subr.mxu1 %v933_v11  ;;  %v246_v26 = vld [vmem:[%s1682_s1 + $0x8] sm:$0xff]  ;;  %v245_v28 = vld [vmem:[%s1682_s1] sm:$0xff]  ;;  %v924_v29 = vld [vmem:[%s1682_s1 + $0x118] sm:$0xff] }
  0x15   : > { %1092 = vmatpush3.msra.mxu0 %v256_v5  ;;  %1125 = vmatpush3.msra.mxu1 %v933_v11  ;;  %v1449_v30 = vld [vmem:[%s1370_s8 + $0x8] sm:$0xff]  ;;  %v920_v31 = vld [vmem:[%s1682_s1 + $0xf8] sm:$0xff]  ;;  %v923_v32 = vld [vmem:[%s1682_s1 + $0x110] sm:$0xff] }
  0x16   : > { %1093 = vmatprep.subr.mxu0 %v255_v8  ;;  %1126 = vmatprep.subr.mxu1 %v932_v13  ;;  %v919_v33 = vld [vmem:[%s1682_s1 + $0xf0] sm:$0xff]  ;;  %v922_v34 = vld [vmem:[%s1682_s1 + $0x108] sm:$0xff]  ;;  %v921_v36 = vld [vmem:[%s1682_s1 + $0x100] sm:$0xff] }
  0x17   : > { %1094 = vmatpush3.msra.mxu0 %v255_v8  ;;  %1127 = vmatpush3.msra.mxu1 %v932_v13  ;;  %v918_v35 = vld [vmem:[%s1682_s1 + $0xe8] sm:$0xff]  ;;  %v917_v37 = vld [vmem:[%s1682_s1 + $0xe0] sm:$0xff]  ;;  %v916_v38 = vld [vmem:[%s1682_s1 + $0xd8] sm:$0xff] }
  0x18   : > { %1095 = vmatprep.subr.mxu0 %v254_v10  ;;  %1128 = vmatprep.subr.mxu1 %v931_v15  ;;  %v915_v39 = vld [vmem:[%s1682_s1 + $0xd0] sm:$0xff]  ;;  %v914_v40 = vld [vmem:[%s1682_s1 + $0xc8] sm:$0xff]  ;;  %v913_v41 = vld [vmem:[%s1682_s1 + $0xc0] sm:$0xff] }
  0x19   : > { %1096 = vmatpush3.msra.mxu0 %v254_v10  ;;  %1129 = vmatpush3.msra.mxu1 %v931_v15  ;;  %v912_v42 = vld [vmem:[%s1682_s1 + $0xb8] sm:$0xff]  ;;  %v911_v43 = vld [vmem:[%s1682_s1 + $0xb0] sm:$0xff]  ;;  %v910_v44 = vld [vmem:[%s1682_s1 + $0xa8] sm:$0xff] }
  0x1a   : > { %1097 = vmatprep.subr.mxu0 %v253_v12  ;;  %1130 = vmatprep.subr.mxu1 %v930_v17  ;;  %v909_v45 = vld [vmem:[%s1682_s1 + $0xa0] sm:$0xff]  ;;  %v908_v46 = vld [vmem:[%s1682_s1 + $0x98] sm:$0xff]  ;;  %v907_v47 = vld [vmem:[%s1682_s1 + $0x90] sm:$0xff] }
  0x1b   : > { %1098 = vmatpush3.msra.mxu0 %v253_v12  ;;  %1131 = vmatpush3.msra.mxu1 %v930_v17  ;;  %v906_v48 = vld [vmem:[%s1682_s1 + $0x88] sm:$0xff]  ;;  %v905_v49 = vld [vmem:[%s1682_s1 + $0x80] sm:$0xff]  ;;  %v566_v50 = vld [vmem:[%s1684_s3 + $0x78] sm:$0xff] }
  0x1c   : > { %1099 = vmatprep.subr.mxu0 %v252_v14  ;;  %1132 = vmatprep.subr.mxu1 %v929_v19  ;;  %v969_v51 = vld [vmem:[%s1684_s3 + $0x178] sm:$0xff]  ;;  %v565_v52 = vld [vmem:[%s1684_s3 + $0x70] sm:$0xff]  ;;  %v564_v54 = vld [vmem:[%s1684_s3 + $0x68] sm:$0xff] }
  0x1d   : > { %1100 = vmatpush3.msra.mxu0 %v252_v14  ;;  %1133 = vmatpush3.msra.mxu1 %v929_v19  ;;  %v968_v53 = vld [vmem:[%s1684_s3 + $0x170] sm:$0xff]  ;;  %v967_v55 = vld [vmem:[%s1684_s3 + $0x168] sm:$0xff]  ;;  %v563_v56 = vld [vmem:[%s1684_s3 + $0x60] sm:$0xff] }
  0x1e   : > { %1101 = vmatprep.subr.mxu0 %v251_v16  ;;  %1134 = vmatprep.subr.mxu1 %v928_v21  ;;  %v966_v57 = vld [vmem:[%s1684_s3 + $0x160] sm:$0xff]  ;;  %v562_v58 = vld [vmem:[%s1684_s3 + $0x58] sm:$0xff]  ;;  %v561_v60 = vld [vmem:[%s1684_s3 + $0x50] sm:$0xff] }
  0x1f   : > { %1102 = vmatpush3.msra.mxu0 %v251_v16  ;;  %1135 = vmatpush3.msra.mxu1 %v928_v21  ;;  %v965_v59 = vld [vmem:[%s1684_s3 + $0x158] sm:$0xff]  ;;  %v964_v61 = vld [vmem:[%s1684_s3 + $0x150] sm:$0xff]  ;;  %v560_v62 = vld [vmem:[%s1684_s3 + $0x48] sm:$0xff] }
  0x20   : > { %1103 = vmatprep.subr.mxu0 %v250_v18  ;;  %1136 = vmatprep.subr.mxu1 %v927_v23  ;;  %v963_v63 = vld [vmem:[%s1684_s3 + $0x148] sm:$0xff]  ;;  %v559_v0 = vld [vmem:[%s1684_s3 + $0x40] sm:$0xff]  ;;  %v558_v2 = vld [vmem:[%s1684_s3 + $0x38] sm:$0xff] }
  0x21   : > { %1104 = vmatpush3.msra.mxu0 %v250_v18  ;;  %1137 = vmatpush3.msra.mxu1 %v927_v23  ;;  %v962_v1 = vld [vmem:[%s1684_s3 + $0x140] sm:$0xff]  ;;  %v961_v3 = vld [vmem:[%s1684_s3 + $0x138] sm:$0xff]  ;;  %v557_v4 = vld [vmem:[%s1684_s3 + $0x30] sm:$0xff] }
  0x22   : > { %1105 = vmatprep.subr.mxu0 %v249_v20  ;;  %1138 = vmatprep.subr.mxu1 %v926_v25  ;;  %v960_v5 = vld [vmem:[%s1684_s3 + $0x130] sm:$0xff]  ;;  %v556_v7 = vld [vmem:[%s1684_s3 + $0x28] sm:$0xff]  ;;  %v555_v9 = vld [vmem:[%s1684_s3 + $0x20] sm:$0xff] }
  0x23   : > { %1106 = vmatpush3.msra.mxu0 %v249_v20  ;;  %1139 = vmatpush3.msra.mxu1 %v926_v25  ;;  %v959_v8 = vld [vmem:[%s1684_s3 + $0x128] sm:$0xff]  ;;  %v958_v10 = vld [vmem:[%s1684_s3 + $0x120] sm:$0xff]  ;;  %v554_v11 = vld [vmem:[%s1684_s3 + $0x18] sm:$0xff] }
  0x24   : > { %1107 = vmatprep.subr.mxu0 %v248_v22  ;;  %1140 = vmatprep.subr.mxu1 %v925_v27  ;;  %v957_v12 = vld [vmem:[%s1684_s3 + $0x118] sm:$0xff]  ;;  %v553_v13 = vld [vmem:[%s1684_s3 + $0x10] sm:$0xff]  ;;  %v552_v15 = vld [vmem:[%s1684_s3 + $0x8] sm:$0xff] }
  0x25   : > { %1108 = vmatpush3.msra.mxu0 %v248_v22  ;;  %1141 = vmatpush3.msra.mxu1 %v925_v27  ;;  %v956_v14 = vld [vmem:[%s1684_s3 + $0x110] sm:$0xff]  ;;  %v955_v16 = vld [vmem:[%s1684_s3 + $0x108] sm:$0xff]  ;;  %v551_v17 = vld [vmem:[%s1684_s3] sm:$0xff] }
  0x26   : > { %1109 = vmatprep.subr.mxu0 %v247_v24  ;;  %1142 = vmatprep.subr.mxu1 %v924_v29  ;;  %v954_v18 = vld [vmem:[%s1684_s3 + $0x100] sm:$0xff]  ;;  %v953_v19 = vld [vmem:[%s1684_s3 + $0xf8] sm:$0xff] }
  0x27   : > { %1110 = vmatpush3.msra.mxu0 %v247_v24  ;;  %1143 = vmatpush3.msra.mxu1 %v924_v29 }
  0x28   : > { %1111 = vmatprep.subr.mxu0 %v246_v26  ;;  %1144 = vmatprep.subr.mxu1 %v923_v32 }
  0x29   : > { %1112 = vmatpush3.msra.mxu0 %v246_v26  ;;  %1145 = vmatpush3.msra.mxu1 %v923_v32 }
  0x2a   : > { %1113 = vmatprep.subr.mxu0 %v245_v28  ;;  %1146 = vmatprep.subr.mxu1 %v922_v34 }
  0x2b   : > { %1114 = vmatpush3.msra.mxu0 %v245_v28  ;;  %1147 = vmatpush3.msra.mxu1 %v922_v34 }
  0x2c   : > { %1116 = vmatmul.mubr.f32.vlgmr.msra.gmra.mxu0 %v1449_v30  ;;  %1153 = vmatprep.subr.mxu0 %v920_v31 }
  0x2d   : > { %1154 = vmatpush3.msra.mxu0 %v920_v31  ;;  %1148 = vmatprep.subr.mxu1 %v921_v36 }
  0x2e   : > { %1155 = vmatprep.subr.mxu0 %v919_v33  ;;  %1149 = vmatpush3.msra.mxu1 %v921_v36 }
  0x2f   : > { %1156 = vmatpush3.msra.mxu0 %v919_v33  ;;  %1150 = vmatprep.mubr.f32.mxu1 %v1376_v6 }
  0x30   : > { %1157 = vmatprep.subr.mxu0 %v918_v35  ;;  %1151 = vmatmul.mubr.f32.vlgmr.msra.gmra.mxu1 %v1449_v30 }
  0x31   : > { %1158 = vmatpush3.msra.mxu0 %v918_v35  ;;  %1185 = vmatprep.mubr.f32.mxu0 %v1376_v6  ;;  %v937_v35 = vld [vmem:[%s1683_s2] ss:$0 sm:$0xff] }
  0x32   : > { %1159 = vmatprep.subr.mxu0 %v917_v37  ;;  %1188 = vmatprep.subr.mxu1 %v566_v50 }
  0x33   : > { %1160 = vmatpush3.msra.mxu0 %v917_v37  ;;  %1189 = vmatpush3.msra.mxu1 %v566_v50  ;;  %v946_v50 = vld [vmem:[%s1684_s3 + $0xc0] sm:$0xff] }
  0x34   : > { %1161 = vmatprep.subr.mxu0 %v916_v38  ;;  %1190 = vmatprep.subr.mxu1 %v565_v52 }
  0x35   : > { %1162 = vmatpush3.msra.mxu0 %v916_v38  ;;  %1191 = vmatpush3.msra.mxu1 %v565_v52  ;;  %v944_v52 = vld [vmem:[%s1684_s3 + $0xb0] sm:$0xff] }
  0x36   : > { %1163 = vmatprep.subr.mxu0 %v915_v39  ;;  %1192 = vmatprep.subr.mxu1 %v564_v54 }
  0x37   : > { %1164 = vmatpush3.msra.mxu0 %v915_v39  ;;  %1193 = vmatpush3.msra.mxu1 %v564_v54  ;;  %v942_v54 = vld [vmem:[%s1684_s3 + $0xa0] sm:$0xff] }
  0x38   : > { %1165 = vmatprep.subr.mxu0 %v914_v40  ;;  %1194 = vmatprep.subr.mxu1 %v563_v56 }
  0x39   : > { %1166 = vmatpush3.msra.mxu0 %v914_v40  ;;  %1195 = vmatpush3.msra.mxu1 %v563_v56  ;;  %v940_v56 = vld [vmem:[%s1684_s3 + $0x90] sm:$0xff] }
  0x3a   : > { %1167 = vmatprep.subr.mxu0 %v913_v41  ;;  %1196 = vmatprep.subr.mxu1 %v562_v58 }
  0x3b   : > { %1168 = vmatpush3.msra.mxu0 %v913_v41  ;;  %1197 = vmatpush3.msra.mxu1 %v562_v58  ;;  %v938_v58 = vld [vmem:[%s1684_s3 + $0x80] sm:$0xff] }
  0x3c   : > { %1169 = vmatprep.subr.mxu0 %v912_v42  ;;  %1198 = vmatprep.subr.mxu1 %v561_v60 }
  0x3d   : > { %1170 = vmatpush3.msra.mxu0 %v912_v42  ;;  %1199 = vmatpush3.msra.mxu1 %v561_v60 }
  0x3e   : > { %1171 = vmatprep.subr.mxu0 %v911_v43  ;;  %1200 = vmatprep.subr.mxu1 %v560_v62 }
  0x3f   : > { %1172 = vmatpush3.msra.mxu0 %v911_v43  ;;  %1201 = vmatpush3.msra.mxu1 %v560_v62 }
  0x40   : > { %1173 = vmatprep.subr.mxu0 %v910_v44  ;;  %1202 = vmatprep.subr.mxu1 %v559_v0 }
  0x41   : > { %1174 = vmatpush3.msra.mxu0 %v910_v44  ;;  %1203 = vmatpush3.msra.mxu1 %v559_v0  ;;  %v952_v44 = vld [vmem:[%s1684_s3 + $0xf0] sm:$0xff] }
  0x42   : > { %1175 = vmatprep.subr.mxu0 %v909_v45  ;;  %1204 = vmatprep.subr.mxu1 %v558_v2 }
  0x43   : > { %1176 = vmatpush3.msra.mxu0 %v909_v45  ;;  %1205 = vmatpush3.msra.mxu1 %v558_v2  ;;  %v951_v45 = vld [vmem:[%s1684_s3 + $0xe8] sm:$0xff] }
  0x44   : > { %1177 = vmatprep.subr.mxu0 %v908_v46  ;;  %1206 = vmatprep.subr.mxu1 %v557_v4 }
  0x45   : > { %1178 = vmatpush3.msra.mxu0 %v908_v46  ;;  %1207 = vmatpush3.msra.mxu1 %v557_v4  ;;  %v950_v46 = vld [vmem:[%s1684_s3 + $0xe0] sm:$0xff] }
  0x46   : > { %1179 = vmatprep.subr.mxu0 %v907_v47  ;;  %1208 = vmatprep.subr.mxu1 %v556_v7 }
  0x47   : > { %1180 = vmatpush3.msra.mxu0 %v907_v47  ;;  %1209 = vmatpush3.msra.mxu1 %v556_v7  ;;  %v949_v47 = vld [vmem:[%s1684_s3 + $0xd8] sm:$0xff] }
  0x48   : > { %1181 = vmatprep.subr.mxu0 %v906_v48  ;;  %1210 = vmatprep.subr.mxu1 %v555_v9 }
  0x49   : > { %1182 = vmatpush3.msra.mxu0 %v906_v48  ;;  %1211 = vmatpush3.msra.mxu1 %v555_v9  ;;  %v948_v48 = vld [vmem:[%s1684_s3 + $0xd0] sm:$0xff] }
  0x4a   : > { %1183 = vmatprep.subr.mxu0 %v905_v49  ;;  %1212 = vmatprep.subr.mxu1 %v554_v11 }
  0x4b   : > { %1184 = vmatpush3.msra.mxu0 %v905_v49  ;;  %1213 = vmatpush3.msra.mxu1 %v554_v11  ;;  %v947_v49 = vld [vmem:[%s1684_s3 + $0xc8] sm:$0xff] }
  0x4c   : > { %1186 = vmatmul.mubr.f32.vlgmr.msra.gmra.mxu0 %v1449_v30  ;;  %1223 = vmatprep.subr.mxu0 %v969_v51 }
  0x4d   : > { %1224 = vmatpush3.msra.mxu0 %v969_v51  ;;  %1214 = vmatprep.subr.mxu1 %v553_v13  ;;  %v945_v51 = vld [vmem:[%s1684_s3 + $0xb8] sm:$0xff] }
  0x4e   : > { %1225 = vmatprep.subr.mxu0 %v968_v53  ;;  %1215 = vmatpush3.msra.mxu1 %v553_v13 }
  0x4f   : > { %1226 = vmatpush3.msra.mxu0 %v968_v53  ;;  %1216 = vmatprep.subr.mxu1 %v552_v15  ;;  %v943_v53 = vld [vmem:[%s1684_s3 + $0xa8] sm:$0xff] }
  0x50   : > { %1227 = vmatprep.subr.mxu0 %v967_v55  ;;  %1217 = vmatpush3.msra.mxu1 %v552_v15 }
  0x51   : > { %1228 = vmatpush3.msra.mxu0 %v967_v55  ;;  %1218 = vmatprep.subr.mxu1 %v551_v17  ;;  %v941_v55 = vld [vmem:[%s1684_s3 + $0x98] sm:$0xff] }
  0x52   : > { %1229 = vmatprep.subr.mxu0 %v966_v57  ;;  %1219 = vmatpush3.msra.mxu1 %v551_v17 }
  0x53   : > { %1230 = vmatpush3.msra.mxu0 %v966_v57  ;;  %1258 = vmatprep.subr.mxu1 %v953_v19  ;;  %v939_v57 = vld [vmem:[%s1684_s3 + $0x88] sm:$0xff] }
  0x54   : > { %1231 = vmatprep.subr.mxu0 %v965_v59 }
  0x55   : > { %1232 = vmatpush3.msra.mxu0 %v965_v59 }
  0x56   : > { %1233 = vmatprep.subr.mxu0 %v964_v61 }
  0x57   : > { %1234 = vmatpush3.msra.mxu0 %v964_v61 }
  0x58   : > { %1235 = vmatprep.subr.mxu0 %v963_v63 }
  0x59   : > { %1236 = vmatpush3.msra.mxu0 %v963_v63 }
  0x5a   : > { %1237 = vmatprep.subr.mxu0 %v962_v1 }
  0x5b   : > { %1238 = vmatpush3.msra.mxu0 %v962_v1 }
  0x5c   : > { %1239 = vmatprep.subr.mxu0 %v961_v3 }
  0x5d   : > { %1240 = vmatpush3.msra.mxu0 %v961_v3 }
  0x5e   : > { %1241 = vmatprep.subr.mxu0 %v960_v5 }
  0x5f   : > { %1242 = vmatpush3.msra.mxu0 %v960_v5 }
  0x60   : > { %1243 = vmatprep.subr.mxu0 %v959_v8 }
  0x61   : > { %1244 = vmatpush3.msra.mxu0 %v959_v8  ;;  %v970_v8 = vld [vmem:[%s1685_s4] ss:$0 sm:$0xff] }
  0x62   : > { %1245 = vmatprep.subr.mxu0 %v958_v10 }
  0x63   : > { %1246 = vmatpush3.msra.mxu0 %v958_v10 }
  0x64   : > { %1247 = vmatprep.subr.mxu0 %v957_v12 }
  0x65   : > { %1248 = vmatpush3.msra.mxu0 %v957_v12 }
  0x66   : > { %1249 = vmatprep.subr.mxu0 %v956_v14 }
  0x67   : > { %1250 = vmatpush3.msra.mxu0 %v956_v14 }
  0x68   : > { %1251 = vmatprep.subr.mxu0 %v955_v16 }
  0x69   : > { %1252 = vmatpush3.msra.mxu0 %v955_v16 }
  0x6a   : > { %1253 = vmatprep.subr.mxu0 %v954_v18 }
  0x6b   : > { %1254 = vmatpush3.msra.mxu0 %v954_v18 }
  0xec   : > { %v1117_v20 = vpop.f32.mrf.mxu0 }
  0xed   : > { %v432_v23 = vrot.slane %v1117_v20, 7 }
  0xee   : > { %v327_v21 = vpop.f32.mrf.mxu0 }
  0xef   : > { %v431_v24 = vrot.slane %v327_v21, 7 }
  0xf0   : > { %v1152_v22 = vpop.f32.mrf.mxu1 }
  0xf1   : > { %v516_v25 = vrot.slane %v1152_v22, 1  ;;  %v433_v29 = vsel %vm430_vm1, %v431_v24, %v432_v23  ;;  %v436_v33 = vsel %vm430_vm1, 0.0, %v431_v24 }
  0xf2   : > { %v419_v26 = vpop.f32.mrf.mxu1 }
  0xf3   : > { %v520_v27 = vsel %vm514_vm0, %v516_v25, 0.0  ;;  %v515_v28 = vrot.slane %v419_v26, 1 }
  0xf5   : > { %v517_v38 = vsel %vm514_vm0, %v515_v28, %v516_v25 }
 0x10c   : > { %v1187_v31 = vpop.f32.mrf.mxu0 }
 0x10d   : > { %v509_v32 = vadd.f32 %v1187_v31, %v433_v29 }
 0x10e   : > { %v503_v34 = vpop.f32.mrf.mxu0 }
 0x10f   : > { %v522_v36 = vadd.f32 %v520_v27, %v509_v32  ;;  %v504_v37 = vadd.f32 %v503_v34, %v436_v33 }
 0x111   : > { %v521_v39 = vadd.f32 %v517_v38, %v504_v37  ;;  %v530_v40 = vadd.f32 %v937_v35, %v522_v36 }
 0x113   : > { %v529_v41 = vadd.f32 %v937_v35, %v521_v39  ;;  %v532_v43 = vmax.f32 %v530_v40, 0.0 }
 0x115   : > { %v531_v42 = vmax.f32 %v529_v41, 0.0 }
 0x117   : > { %1220 = vmatprep.mubr.f32.mxu1 %v531_v42  ;;  %1255 = vmatprep.mubr.f32.mxu0 %v531_v42 }
 0x118   : > { %1221 = vmatmul.mubr.f32.vlgmr.msra.gmra.mxu1 %v532_v43  ;;  %1256 = vmatmul.mubr.f32.vlgmr.msra.gmra.mxu0 %v532_v43 }
 0x119   : > { %1259 = vmatpush3.msra.mxu1 %v953_v19  ;;  %1290 = vmatprep.mubr.f32.mxu1 %v531_v42 }
 0x11a   : > { %1260 = vmatprep.subr.mxu1 %v952_v44 }
 0x11b   : > { %1261 = vmatpush3.msra.mxu1 %v952_v44 }
 0x11c   : > { %1262 = vmatprep.subr.mxu1 %v951_v45 }
 0x11d   : > { %1263 = vmatpush3.msra.mxu1 %v951_v45 }
 0x11e   : > { %1264 = vmatprep.subr.mxu1 %v950_v46 }
 0x11f   : > { %1265 = vmatpush3.msra.mxu1 %v950_v46 }
 0x120   : > { %1266 = vmatprep.subr.mxu1 %v949_v47 }
 0x121   : > { %1267 = vmatpush3.msra.mxu1 %v949_v47 }
 0x122   : > { %1268 = vmatprep.subr.mxu1 %v948_v48 }
 0x123   : > { %1269 = vmatpush3.msra.mxu1 %v948_v48 }
 0x124   : > { %1270 = vmatprep.subr.mxu1 %v947_v49 }
 0x125   : > { %1271 = vmatpush3.msra.mxu1 %v947_v49 }
 0x126   : > { %1272 = vmatprep.subr.mxu1 %v946_v50 }
 0x127   : > { %1273 = vmatpush3.msra.mxu1 %v946_v50 }
 0x128   : > { %1274 = vmatprep.subr.mxu1 %v945_v51 }
 0x129   : > { %1275 = vmatpush3.msra.mxu1 %v945_v51 }
 0x12a   : > { %1276 = vmatprep.subr.mxu1 %v944_v52 }
 0x12b   : > { %1277 = vmatpush3.msra.mxu1 %v944_v52 }
 0x12c   : > { %1278 = vmatprep.subr.mxu1 %v943_v53 }
 0x12d   : > { %1279 = vmatpush3.msra.mxu1 %v943_v53 }
 0x12e   : > { %1280 = vmatprep.subr.mxu1 %v942_v54 }
 0x12f   : > { %1281 = vmatpush3.msra.mxu1 %v942_v54 }
 0x130   : > { %1282 = vmatprep.subr.mxu1 %v941_v55 }
 0x131   : > { %1283 = vmatpush3.msra.mxu1 %v941_v55 }
 0x132   : > { %1284 = vmatprep.subr.mxu1 %v940_v56 }
 0x133   : > { %1285 = vmatpush3.msra.mxu1 %v940_v56 }
 0x134   : > { %1286 = vmatprep.subr.mxu1 %v939_v57 }
 0x135   : > { %1287 = vmatpush3.msra.mxu1 %v939_v57 }
 0x136   : > { %1288 = vmatprep.subr.mxu1 %v938_v58 }
 0x137   : > { %1289 = vmatpush3.msra.mxu1 %v938_v58 }
 0x138   : > { %1291 = vmatmul.mubr.f32.vlgmr.msra.gmra.mxu1 %v532_v43 }
 0x1d8   : > { %v1222_v59 = vpop.f32.mrf.mxu1  ;;  %v1257_v60 = vpop.f32.mrf.mxu0 }
 0x1d9   : > { %v737_v0 = vrot.slane %v1222_v59, 7  ;;  %v820_v1 = vrot.slane %v1257_v60, 1 }
 0x1da   : > { %v633_v61 = vpop.f32.mrf.mxu1  ;;  %v725_v63 = vpop.f32.mrf.mxu0 }
 0x1db   : > { %v736_v62 = vrot.slane %v633_v61, 7  ;;  %v819_v2 = vrot.slane %v725_v63, 1  ;;  %v824_v7 = vsel %vm514_vm0, %v820_v1, 0.0 }
 0x1dd   : > { %v738_v3 = vsel %vm430_vm1, %v736_v62, %v737_v0  ;;  %v741_v9 = vsel %vm430_vm1, 0.0, %v736_v62  ;;  %v821_v13 = vsel %vm514_vm0, %v819_v2, %v820_v1 }
 0x1f8   : > { %v1292_v4 = vpop.f32.mrf.mxu1 }
 0x1f9   : > { %v814_v5 = vadd.f32 %v1292_v4, %v738_v3 }
 0x1fa   : > { %v808_v10 = vpop.f32.mrf.mxu1 }
 0x1fb   : > { %v826_v11 = vadd.f32 %v824_v7, %v814_v5  ;;  %v809_v12 = vadd.f32 %v808_v10, %v741_v9 }
 0x1fd   : > { %v834_v14 = vadd.f32 %v970_v8, %v826_v11  ;;  %v825_v15 = vadd.f32 %v821_v13, %v809_v12 }
 0x1ff   : > { %v836_v16 = vadd.f32 %v834_v14, %v1449_v30  ;;  %v833_v17 = vadd.f32 %v970_v8, %v825_v15 }
 0x201   : > { %v838_v18 = vmax.f32 %v836_v16, 0.0  ;;  %v835_v19 = vadd.f32 %v833_v17, %v1376_v6 }
 0x203   : > { %840 = vst [vmem:[%s224_s24 + $0x8] sm:$0xff] %v838_v18  ;;  %v837_v20 = vmax.f32 %v835_v19, 0.0 }
 0x205   : > { %839 = vst [vmem:[%s224_s24] sm:$0xff] %v837_v20 }
 0x206 PF: > { %s15_s18 = sadd.s32 1, %s1307_s18  }
 0x207   : > { %p12_p4 = scmp.ge.s32.totalorder %s15_s18, 4  }
 0x209   :  { %14 = sbr.rel (!%p12_p4) target bundleno = 1 (0x1), region = 74 }

// kernel: _lambda_.14
= control target key start
LH: loop header
LB: loop body
LE: loop exit
PB: predicated region body
PF: predicated region fallthrough
CT: control target
= control target key end

     0   :  { %s1320_s24 = smov 0   ;;  %s1575_s0 = inlined_call_operand.vmem [shape: f32[2,4,64], index: 0, kind: input, shape index: {}]   ;;  %s1576_s1 = inlined_call_operand.vmem [shape: f32[2,4,2,64], index: 1, kind: input, shape index: {}]   ;;  %s1577_s2 = inlined_call_operand.vmem [shape: f32[3,64,32], index: 2, kind: input, shape index: {}]   ;;  %s1578_s3 = inlined_call_operand.vmem [shape: f32[1,32], index: 3, kind: input, shape index: {}]   ;;  %s1579_s4 = inlined_call_operand.vmem [shape: f32[3,32,64], index: 4, kind: input, shape index: {}]   ;;  %s1580_s5 = inlined_call_operand.vmem [shape: f32[1,64], index: 5, kind: input, shape index: {}]   ;;  %s1581_s6 = inlined_call_operand.vmem [shape: f32[64,64], index: 6, kind: input, shape index: {}]   ;;  %s1582_s7 = inlined_call_operand.vmem [shape: f32[2,4,2,64], index: 7, kind: output, shape index: {}]  }
   0x1 LB: > { %s1051_s25 = sadd.s32 4294967295, %s1275_s24   ;;  %p1055_p0 = scmp.ge.s32.totalorder %s1275_s24, 1  ;;  %s1275_s24 = sphi %s1320_s24, %s17_s24  }
   0x2   : > { %p246_p1 = scmp.lt.s32.totalorder %s1275_s24, 3 }
   0x4   : > { %p247_p2 = pnand %p1055_p0, %p246_p1 }
   0x5   : > { %p1331_p3 = scmp.lt.s32.totalorder (!%p247_p2), %s1051_s25, 1 }
   0x6   : > { %250 = sbr.rel (%p247_p2) target bundleno = 477 (0x1dd), region = 48 }
   0xb   : > { %v314_v0 = vld [vmem:[%s1577_s2 + $0x38] sm:$0xff]  ;;  %v1277_v1 = vmov 0.0   ;;  %v313_v2 = vld [vmem:[%s1577_s2 + $0x30] sm:$0xff]  ;;  %vm1278_vm0 = vmmov 0   ;;  %v312_v4 = vld [vmem:[%s1577_s2 + $0x28] sm:$0xff]  ;;  %s1585_s25 = smov (!%p1331_p3, %s1051_s25), 1 }
   0xc   : > { %1149 = vmatprep.subr.mxu0 %v1277_v1  ;;  %1168 = vmatprep.subr.mxu1 %v1277_v1  ;;  %v1077_v3 = vld [vmem:[%s1577_s2 + $0xb8] sm:$0xff]  ;;  %v1076_v5 = vld [vmem:[%s1577_s2 + $0xb0] sm:$0xff]  ;;  %v1075_v6 = vld [vmem:[%s1577_s2 + $0xa8] sm:$0xff]  ;;  %s1056_s22 = sshll.u32 %s1585_s25, 2  ;;  %vm315_vm1 = vcmask 523264   ;;  %vm546_vm2 = vcmask 1042432  }
   0xd   : > { %1150 = vmatpush3.msra.mxu0 %v314_v0  ;;  %1165 = vmatprep.mubr.msk.f32.mxu0 %vm1278_vm0, %v1277_v1  ;;  %v311_v7 = vld [vmem:[%s1577_s2 + $0x20] sm:$0xff]  ;;  %v310_v9 = vld [vmem:[%s1577_s2 + $0x18] sm:$0xff]  ;;  %v309_v11 = vld [vmem:[%s1577_s2 + $0x10] sm:$0xff]  ;;  %s285_s12 = scalar_lea.vmem %s1575_s0, %s1056_s22  ;;  %vm471_vm3 = vcmask 1040384   ;;  %vm567_vm4 = vcmask 261120   ;;  %s1096_s14 = sshll.u32 %s1585_s25, 3 }
   0xe   : > { %1151 = vmatprep.subr.mxu0 %v1277_v1  ;;  %1169 = vmatpush3.msra.mxu1 %v1077_v3  ;;  %v1074_v8 = vld [vmem:[%s1577_s2 + $0xa0] sm:$0xff]  ;;  %v1073_v10 = vld [vmem:[%s1577_s2 + $0x98] sm:$0xff]  ;;  %v1072_v12 = vld [vmem:[%s1577_s2 + $0x90] sm:$0xff]  ;;  %s290_s17 = scalar_lea.vmem %s1576_s1, %s1096_s14  ;;  %vm891_vm5 = vcmask 1041409   ;;  %vm894_vm6 = vcmask 1042434   ;;  %vm897_vm7 = vcmask 1043459   ;;  %s295_s22 = scalar_lea.vmem %s1582_s7, %s1096_s14 }
   0xf   : > { %1152 = vmatpush3.msra.mxu0 %v313_v2  ;;  %1170 = vmatprep.subr.mxu1 %v1277_v1  ;;  %v308_v13 = vld [vmem:[%s1577_s2 + $0x8] sm:$0xff]  ;;  %v307_v15 = vld [vmem:[%s1577_s2] sm:$0xff]  ;;  %v1068_v17 = vld [vmem:[%s1577_s2 + $0x78] sm:$0xff]  ;;  %vm930_vm8 = vcmask 516096  }
  0x10   : > { %1153 = vmatprep.subr.mxu0 %v1277_v1  ;;  %1171 = vmatpush3.msra.mxu1 %v1076_v5  ;;  %v1071_v14 = vld [vmem:[%s1577_s2 + $0x88] sm:$0xff]  ;;  %v1400_v16 = vld [vmem:[%s285_s12] sm:$0xf]  ;;  %v1067_v19 = vld [vmem:[%s1577_s2 + $0x70] sm:$0xff] }
  0x11   : > { %1154 = vmatpush3.msra.mxu0 %v312_v4  ;;  %1172 = vmatprep.subr.mxu1 %v1277_v1  ;;  %v1070_v18 = vld [vmem:[%s1577_s2 + $0x80] sm:$0xff]  ;;  %v1066_v20 = vld [vmem:[%s1577_s2 + $0x68] sm:$0xff]  ;;  %v1064_v22 = vld [vmem:[%s1577_s2 + $0x58] sm:$0xff] }
  0x12   : > { %1155 = vmatprep.subr.mxu0 %v1277_v1  ;;  %1173 = vmatpush3.msra.mxu1 %v1075_v6  ;;  %v1065_v21 = vld [vmem:[%s1577_s2 + $0x60] sm:$0xff]  ;;  %v1063_v23 = vld [vmem:[%s1577_s2 + $0x50] sm:$0xff]  ;;  %v1062_v24 = vld [vmem:[%s1577_s2 + $0x48] sm:$0xff] }
  0x13   : > { %1156 = vmatpush3.msra.mxu0 %v311_v7  ;;  %1174 = vmatprep.subr.mxu1 %v1277_v1  ;;  %v1061_v25 = vld [vmem:[%s1577_s2 + $0x40] sm:$0xff]  ;;  %v566_v26 = vld [vmem:[%s1579_s4 + $0x18] sm:$0xff]  ;;  %v565_v28 = vld [vmem:[%s1579_s4 + $0x10] sm:$0xff] }
  0x14   : > { %1157 = vmatprep.subr.mxu0 %v1277_v1  ;;  %1175 = vmatpush3.msra.mxu1 %v1074_v8  ;;  %v1084_v27 = vld [vmem:[%s1579_s4 + $0x38] sm:$0xff]  ;;  %v1083_v29 = vld [vmem:[%s1579_s4 + $0x30] sm:$0xff]  ;;  %v564_v30 = vld [vmem:[%s1579_s4 + $0x8] sm:$0xff] }
  0x15   : > { %1158 = vmatpush3.msra.mxu0 %v310_v9  ;;  %1176 = vmatprep.subr.mxu1 %v1277_v1  ;;  %v1082_v31 = vld [vmem:[%s1579_s4 + $0x28] sm:$0xff]  ;;  %v563_v32 = vld [vmem:[%s1579_s4] sm:$0xff]  ;;  %v1089_v49 = vld [vmem:[%s1579_s4 + $0x58] sm:$0xff] }
  0x16   : > { %1159 = vmatprep.subr.mxu0 %v1277_v1  ;;  %1177 = vmatpush3.msra.mxu1 %v1073_v10  ;;  %v1081_v33 = vld [vmem:[%s1579_s4 + $0x20] sm:$0xff]  ;;  %v1088_v50 = vld [vmem:[%s1579_s4 + $0x50] sm:$0xff]  ;;  %v1087_v51 = vld [vmem:[%s1579_s4 + $0x48] sm:$0xff] }
  0x17   : > { %1160 = vmatpush3.msra.mxu0 %v309_v11  ;;  %1178 = vmatprep.subr.mxu1 %v1277_v1  ;;  %v1080_v44 = vld [vmem:[%s1578_s3] ss:$0 sm:$0xff]  ;;  %v809_v53 = vld [vmem:[%s1581_s6 + $0x38] sm:$0xff]  ;;  %v808_v54 = vld [vmem:[%s1581_s6 + $0x30] sm:$0xff] }
  0x18   : > { %1161 = vmatprep.subr.mxu0 %v1277_v1  ;;  %1179 = vmatpush3.msra.mxu1 %v1072_v12  ;;  %v1086_v52 = vld [vmem:[%s1579_s4 + $0x40] sm:$0xff]  ;;  %v807_v55 = vld [vmem:[%s1581_s6 + $0x28] sm:$0xff]  ;;  %v805_v57 = vld [vmem:[%s1581_s6 + $0x18] sm:$0xff] }
  0x19   : > { %1162 = vmatpush3.msra.mxu0 %v308_v13  ;;  %1180 = vmatprep.subr.mxu1 %v1277_v1  ;;  %v806_v56 = vld [vmem:[%s1581_s6 + $0x20] sm:$0xff]  ;;  %v804_v58 = vld [vmem:[%s1581_s6 + $0x10] sm:$0xff]  ;;  %v803_v59 = vld [vmem:[%s1581_s6 + $0x8] sm:$0xff] }
  0x1a   : > { %1163 = vmatprep.subr.mxu0 %v1277_v1  ;;  %1181 = vmatpush3.msra.mxu1 %v1071_v14  ;;  %v802_v60 = vld [vmem:[%s1581_s6] sm:$0xff] }
  0x1b   : > { %1164 = vmatpush3.msra.mxu0 %v307_v15  ;;  %1182 = vmatprep.subr.mxu1 %v1277_v1  ;;  %v883_v6 = vld [vmem:[%s290_s17 + $0x2] sm:$0x1]  ;;  %v884_v8 = vld [vmem:[%s290_s17 + $0x4] sm:$0x1]  ;;  %v882_v12 = vld [vmem:[%s290_s17] sm:$0x1] }
  0x1c   : > { %1166 = vmatmul.mubr.msk.f32.vlgmr.msra.gmra.mxu0 %vm315_vm1, %v1400_v16  ;;  %1187 = vmatprep.subr.mxu0 %v1277_v1  ;;  %v890_v9 = vrot.slane %v883_v6, 7  ;;  %v937_v13 = vld [vmem:[%s290_s17 + $0x5] sm:$0x1]  ;;  %v935_v15 = vld [vmem:[%s290_s17 + $0x1] sm:$0x1] }
  0x1d   : > { %1188 = vmatpush3.msra.mxu0 %v1068_v17  ;;  %1183 = vmatpush3.msra.mxu1 %v1070_v18  ;;  %v1279_v17 = vmov 1966171168  }
  0x1e   : > { %1189 = vmatprep.subr.mxu0 %v1277_v1  ;;  %1184 = vmatprep.mubr.msk.f32.mxu1 %vm1278_vm0, %v1277_v1  ;;  %v903_v18 = vunpack.c.l.s4 %v1279_v17 }
  0x1f   : > { %1190 = vmatpush3.msra.mxu0 %v1067_v19  ;;  %1185 = vmatmul.mubr.msk.f32.vlgmr.msra.gmra.mxu1 %vm315_vm1, %v1400_v16  ;;  %v905_v19 = vlaneseq }
  0x20   : > { %1191 = vmatprep.subr.mxu0 %v1277_v1  ;;  %1203 = vmatprep.mubr.msk.f32.mxu0 %vm1278_vm0, %v1277_v1 }
  0x21   : > { %1192 = vmatpush3.msra.mxu0 %v1066_v20  ;;  %1206 = vmatprep.subr.mxu1 %v1277_v1 }
  0x22   : > { %1193 = vmatprep.subr.mxu0 %v1277_v1  ;;  %1214 = vmatprep.mubr.msk.f32.mxu1 %vm1278_vm0, %v1277_v1 }
  0x23   : > { %1194 = vmatpush3.msra.mxu0 %v1065_v21  ;;  %1207 = vmatpush3.msra.mxu1 %v566_v26  ;;  %v885_v21 = vld [vmem:[%s290_s17 + $0x6] sm:$0x1] }
  0x24   : > { %1195 = vmatprep.subr.mxu0 %v1277_v1  ;;  %1208 = vmatprep.subr.mxu1 %v1277_v1 }
  0x25   : > { %1196 = vmatpush3.msra.mxu0 %v1064_v22  ;;  %1209 = vmatpush3.msra.mxu1 %v565_v28  ;;  %v892_v22 = vsel %vm891_vm5, %v890_v9, %v882_v12  ;;  %v896_v28 = vrot.slane %v885_v21, 5 }
  0x26   : > { %1197 = vmatprep.subr.mxu0 %v1277_v1  ;;  %1210 = vmatprep.subr.mxu1 %v1277_v1 }
  0x27   : > { %1198 = vmatpush3.msra.mxu0 %v1063_v23  ;;  %1211 = vmatpush3.msra.mxu1 %v564_v30  ;;  %v938_v23 = vld [vmem:[%s290_s17 + $0x7] sm:$0x1] }
  0x28   : > { %1199 = vmatprep.subr.mxu0 %v1277_v1  ;;  %1212 = vmatprep.subr.mxu1 %v1277_v1 }
  0x29   : > { %1200 = vmatpush3.msra.mxu0 %v1062_v24  ;;  %1213 = vmatpush3.msra.mxu1 %v563_v32  ;;  %v945_v24 = vrot.slane %v937_v13, 6  ;;  %v906_v32 = vshrl.u32 %v905_v19, 7 }
  0x2a   : > { %1201 = vmatprep.subr.mxu0 %v1277_v1  ;;  %1217 = vmatprep.subr.mxu1 %v1277_v1 }
  0x2b   : > { %1202 = vmatpush3.msra.mxu0 %v1061_v25  ;;  %v1092_v25 = vld [vmem:[%s1580_s5] ss:$0 sm:$0xff] }
  0x2c   : > { %1204 = vmatmul.mubr.msk.f32.vlgmr.msra.gmra.mxu0 %vm315_vm1, %v1400_v16  ;;  %1228 = vmatprep.subr.mxu0 %v1277_v1 }
  0x2d   : > { %1236 = vmatprep.mubr.msk.f32.mxu0 %vm1278_vm0, %v1277_v1  ;;  %1229 = vmatpush3.msra.mxu0 %v1084_v27 }
  0x2e   : > { %1230 = vmatprep.subr.mxu0 %v1277_v1 }
  0x2f   : > { %1231 = vmatpush3.msra.mxu0 %v1083_v29  ;;  %v947_v29 = vrot.slane %v938_v23, 5 }
  0x30   : > { %1232 = vmatprep.subr.mxu0 %v1277_v1 }
  0x31   : > { %1233 = vmatpush3.msra.mxu0 %v1082_v31  ;;  %v904_v31 = vunpack.c.0.s8 %v903_v18 }
  0x32   : > { %1234 = vmatprep.subr.mxu0 %v1277_v1 }
  0x33   : > { %1235 = vmatpush3.msra.mxu0 %v1081_v33 }
  0xdc   : > { %v385_v34 = vpop.f32.mrf.mxu0 }
  0xdd   : > { %v469_v38 = vrot.slane %v385_v34, 7 }
  0xde   : > { %v1167_v35 = vpop.f32.mrf.mxu0 }
  0xdf   : > { %v464_v36 = vpop.f32.mrf.mxu1  ;;  %v472_v41 = vsel %vm471_vm3, 0.0, %v469_v38 }
  0xe0   : > { %v544_v39 = vrot.slane %v464_v36, 1 }
  0xe1   : > { %v1186_v37 = vpop.f32.mrf.mxu1 }
  0xe2   : > { %v547_v40 = vsel %vm546_vm2, %v544_v39, 0.0 }
  0xec   : > { %v539_v42 = vpop.f32.mrf.mxu0 }
  0xed   : > { %v540_v43 = vadd.f32 %v539_v42, %v472_v41 }
  0xee   : > { %v1205_v45 = vpop.f32.mrf.mxu0 }
  0xef   : > { %v548_v46 = vadd.f32 %v547_v40, %v540_v43  ;;  %v907_v40 = vsub.s32 %v904_v31, %v906_v32 }
  0xf1   : > { %v555_v47 = vadd.f32 %v1080_v44, %v548_v46 }
  0xf3   : > { %v556_v48 = vmax.f32 %v555_v47, 0.0 }
  0xf5   : > { %1215 = vmatmul.mubr.msk.f32.vlgmr.msra.gmra.mxu1 %vm567_vm4, %v556_v48  ;;  %1237 = vmatmul.mubr.msk.f32.vlgmr.msra.gmra.mxu0 %vm567_vm4, %v556_v48 }
  0xf6   : > { %1218 = vmatpush3.msra.mxu1 %v1089_v49  ;;  %1225 = vmatprep.mubr.msk.f32.mxu1 %vm1278_vm0, %v1277_v1 }
  0xf7   : > { %1219 = vmatprep.subr.mxu1 %v1277_v1 }
  0xf8   : > { %1220 = vmatpush3.msra.mxu1 %v1088_v50 }
  0xf9   : > { %1221 = vmatprep.subr.mxu1 %v1277_v1 }
  0xfa   : > { %1222 = vmatpush3.msra.mxu1 %v1087_v51 }
  0xfb   : > { %1223 = vmatprep.subr.mxu1 %v1277_v1 }
  0xfc   : > { %1224 = vmatpush3.msra.mxu1 %v1086_v52 }
  0xfd   : > { %1226 = vmatmul.mubr.msk.f32.vlgmr.msra.gmra.mxu1 %vm567_vm4, %v556_v48  ;;  %1239 = vmatprep.subr.mxu1 %v1277_v1 }
  0xfe   : > { %1240 = vmatpush3.msra.mxu1 %v809_v53  ;;  %1255 = vmatprep.mubr.msk.f32.mxu1 %vm1278_vm0, %v1277_v1 }
  0xff   : > { %1241 = vmatprep.subr.mxu1 %v1277_v1 }
 0x100   : > { %1242 = vmatpush3.msra.mxu1 %v808_v54 }
 0x101   : > { %1243 = vmatprep.subr.mxu1 %v1277_v1 }
 0x102   : > { %1244 = vmatpush3.msra.mxu1 %v807_v55 }
 0x103   : > { %1245 = vmatprep.subr.mxu1 %v1277_v1 }
 0x104   : > { %1246 = vmatpush3.msra.mxu1 %v806_v56 }
 0x105   : > { %1247 = vmatprep.subr.mxu1 %v1277_v1 }
 0x106   : > { %1248 = vmatpush3.msra.mxu1 %v805_v57 }
 0x107   : > { %1249 = vmatprep.subr.mxu1 %v1277_v1 }
 0x108   : > { %1250 = vmatpush3.msra.mxu1 %v804_v58 }
 0x109   : > { %1251 = vmatprep.subr.mxu1 %v1277_v1 }
 0x10a   : > { %1252 = vmatpush3.msra.mxu1 %v803_v59 }
 0x10b   : > { %1253 = vmatprep.subr.mxu1 %v1277_v1  ;;  %v936_v1 = vld [vmem:[%s290_s17 + $0x3] sm:$0x1] }
 0x10c   : > { %1254 = vmatpush3.msra.mxu1 %v802_v60  ;;  %v943_v10 = vrot.slane %v936_v1, 7 }
 0x10d   : > { %1256 = vmatmul.mubr.msk.f32.vlgmr.msra.gmra.mxu1 %vm315_vm1, %v1400_v16  ;;  %v893_v16 = vrot.slane %v884_v8, 6 }
 0x10e   : > { %v944_v26 = vsel %vm891_vm5, %v943_v10, %v935_v15 }
 0x10f   : > { %v895_v27 = vsel %vm894_vm6, %v893_v16, %v892_v22  ;;  %v946_v33 = vsel %vm894_vm6, %v945_v24, %v944_v26 }
 0x110   : > { %v898_v36 = vsel %vm897_vm7, %v896_v28, %v895_v27  ;;  %v948_v37 = vsel %vm897_vm7, %v947_v29, %v946_v33 }
 0x1b5   : > { %v637_v61 = vpop.f32.mrf.mxu1  ;;  %v786_v62 = vpop.f32.mrf.mxu0 }
 0x1b6   : > { %v717_v3 = vrot.slane %v637_v61, 7 }
 0x1b7   : > { %v1216_v63 = vpop.f32.mrf.mxu1  ;;  %v1238_v0 = vpop.f32.mrf.mxu0 }
 0x1b8   : > { %v719_v7 = vsel %vm471_vm3, 0.0, %v717_v3 }
 0x1b9   : > { %v787_v14 = vadd.f32 %v786_v62, %v719_v7 }
 0x1bd   : > { %v712_v2 = vpop.f32.mrf.mxu1 }
 0x1be   : > { %v791_v5 = vrot.slane %v712_v2, 1 }
 0x1bf   : > { %v1227_v4 = vpop.f32.mrf.mxu1 }
 0x1c0   : > { %v793_v11 = vsel %vm546_vm2, %v791_v5, 0.0 }
 0x1c1   : > { %v794_v20 = vadd.f32 %v793_v11, %v787_v14 }
 0x1c3   : > { %v801_v30 = vadd.f32 %v1092_v25, %v794_v20 }
 0x1cd   : > { %v876_v34 = vpop.f32.mrf.mxu1 }
 0x1ce   : > { %v880_v35 = vadd.f32 %v876_v34, %v801_v30 }
 0x1cf   : > { %v1257_v38 = vpop.f32.mrf.mxu1 }
 0x1d0   : > { %v881_v39 = vmax.f32 %v880_v35, 0.0 }
 0x1d2   : > { %v900_v41 = vadd.f32 %v898_v36, %v881_v39  ;;  %v950_v42 = vadd.f32 %v948_v37, %v881_v39 }
 0x1d4   : > { %v908_v43 = vrot.slane %v900_v41, %v907_v40  ;;  %v958_v44 = vrot.slane %v950_v42, %v907_v40 }
 0x1d6   : > { %v909_v45 = vcombine.high %v908_v43, %v908_v43  ;;  %v916_v46 = vrot.slane %v908_v43, %v907_v40  ;;  %v959_v47 = vcombine.high %v958_v44, %v958_v44  ;;  %v966_v48 = vrot.slane %v958_v44, %v907_v40 }
 0x1d8   : > { %v923_v49 = vrot.slane %v909_v45, %v907_v40  ;;  %v924_v50 = vcombine.high %v916_v46, %v916_v46  ;;  %931 = vst.msk [vmem:[%s295_s22] sm:$0x1] %vm930_vm8, %v916_v46  ;;  %v973_v51 = vrot.slane %v959_v47, %v907_v40  ;;  %v974_v52 = vcombine.high %v966_v48, %v966_v48 }
 0x1d9   : > { %980 = vst.msk [vmem:[%s295_s22 + $0x1] sm:$0x1] %vm930_vm8, %v966_v48 }
 0x1da   : > { %v925_v53 = vcombine.high %v923_v49, %v923_v49  ;;  %932 = vst.msk [vmem:[%s295_s22 + $0x2] sm:$0x1] %vm930_vm8, %v923_v49  ;;  %933 = vst.msk [vmem:[%s295_s22 + $0x4] sm:$0x1] %vm930_vm8, %v924_v50  ;;  %v975_v54 = vcombine.high %v973_v51, %v973_v51 }
 0x1db   : > { %981 = vst.msk [vmem:[%s295_s22 + $0x3] sm:$0x1] %vm930_vm8, %v973_v51  ;;  %982 = vst.msk [vmem:[%s295_s22 + $0x5] sm:$0x1] %vm930_vm8, %v974_v52 }
 0x1dc   : > { %934 = vst.msk [vmem:[%s295_s22 + $0x6] sm:$0x1] %vm930_vm8, %v925_v53  ;;  %983 = vst.msk [vmem:[%s295_s22 + $0x7] sm:$0x1] %vm930_vm8, %v975_v54 }
 0x1dd PF: > { %s17_s24 = sadd.s32 1, %s1275_s24  }
 0x1de   : > { %p14_p4 = scmp.ge.s32.totalorder %s17_s24, 4  }
 0x1e0   :  { %16 = sbr.rel (!%p14_p4) target bundleno = 1 (0x1), region = 85 }

// kernel: _lambda_.15
= control target key start
LH: loop header
LB: loop body
LE: loop exit
PB: predicated region body
PF: predicated region fallthrough
CT: control target
= control target key end

     0   :  { %s1484_s24 = smov 0   ;;  %s1817_s0 = inlined_call_operand.vmem [shape: f32[2,8,64], index: 0, kind: input, shape index: {}]   ;;  %s1818_s1 = inlined_call_operand.vmem [shape: f32[2,8,2,128], index: 1, kind: input, shape index: {}]   ;;  %s1819_s2 = inlined_call_operand.vmem [shape: f32[3,64,64], index: 2, kind: input, shape index: {}]   ;;  %s1820_s3 = inlined_call_operand.vmem [shape: f32[1,64], index: 3, kind: input, shape index: {}]   ;;  %s1821_s4 = inlined_call_operand.vmem [shape: f32[3,64,128], index: 4, kind: input, shape index: {}]   ;;  %s1822_s5 = inlined_call_operand.vmem [shape: f32[1,128], index: 5, kind: input, shape index: {}]   ;;  %s1823_s6 = inlined_call_operand.vmem [shape: f32[64,128], index: 6, kind: input, shape index: {}]   ;;  %s1824_s7 = inlined_call_operand.vmem [shape: f32[2,8,2,128], index: 7, kind: output, shape index: {}]  }
   0x1 LB: > { %s1163_s25 = sadd.s32 4294967295, %s1439_s24   ;;  %p1167_p0 = scmp.ge.s32.totalorder %s1439_s24, 1  ;;  %s1439_s24 = sphi %s1484_s24, %s17_s24  }
   0x2   : > { %p246_p1 = scmp.lt.s32.totalorder %s1439_s24, 3 }
   0x4   : > { %p247_p2 = pnand %p1167_p0, %p246_p1 }
   0x5   : > { %p1495_p3 = scmp.lt.s32.totalorder (!%p247_p2), %s1163_s25, 1 }
   0x6   : > { %250 = sbr.rel (%p247_p2) target bundleno = 478 (0x1de), region = 48 }
   0xb   : > { %v314_v0 = vld [vmem:[%s1819_s2 + $0x38] sm:$0xff]  ;;  %v1441_v1 = vmov 0.0   ;;  %v313_v2 = vld [vmem:[%s1819_s2 + $0x30] sm:$0xff]  ;;  %vm1442_vm0 = vmmov 0   ;;  %v312_v4 = vld [vmem:[%s1819_s2 + $0x28] sm:$0xff]  ;;  %s1827_s25 = smov (!%p1495_p3, %s1163_s25), 1 }
   0xc   : > { %1289 = vmatprep.subr.mxu0 %v1441_v1  ;;  %1308 = vmatprep.subr.mxu1 %v1441_v1  ;;  %v1189_v3 = vld [vmem:[%s1819_s2 + $0xb8] sm:$0xff]  ;;  %v1188_v5 = vld [vmem:[%s1819_s2 + $0xb0] sm:$0xff]  ;;  %v1187_v6 = vld [vmem:[%s1819_s2 + $0xa8] sm:$0xff]  ;;  %s1168_s22 = sshll.u32 %s1827_s25, 3  ;;  %vm315_vm1 = vcmask 523264   ;;  %vm546_vm2 = vcmask 1046528  }
   0xd   : > { %1290 = vmatpush3.msra.mxu0 %v314_v0  ;;  %1305 = vmatprep.mubr.msk.f32.mxu0 %vm1442_vm0, %v1441_v1  ;;  %v311_v7 = vld [vmem:[%s1819_s2 + $0x20] sm:$0xff]  ;;  %v310_v9 = vld [vmem:[%s1819_s2 + $0x18] sm:$0xff]  ;;  %v309_v11 = vld [vmem:[%s1819_s2 + $0x10] sm:$0xff]  ;;  %s285_s12 = scalar_lea.vmem %s1817_s0, %s1168_s22  ;;  %vm471_vm3 = vcmask 1040384   ;;  %s1224_s17 = sshll.u32 %s1827_s25, 4  ;;  %vm910_vm4 = vcmask 1041409  }
   0xe   : > { %1291 = vmatprep.subr.mxu0 %v1441_v1  ;;  %1309 = vmatpush3.msra.mxu1 %v1189_v3  ;;  %v1186_v8 = vld [vmem:[%s1819_s2 + $0xa0] sm:$0xff]  ;;  %v1185_v10 = vld [vmem:[%s1819_s2 + $0x98] sm:$0xff]  ;;  %v1184_v12 = vld [vmem:[%s1819_s2 + $0x90] sm:$0xff]  ;;  %s1766_s20 = scalar_lea.vmem %s1818_s1, %s1224_s17  ;;  %vm913_vm5 = vcmask 1042434   ;;  %vm916_vm6 = vcmask 1043459   ;;  %vm919_vm7 = vcmask 1044484   ;;  %s1796_s27 = scalar_lea.vmem %s1824_s7, %s1224_s17 }
   0xf   : > { %1292 = vmatpush3.msra.mxu0 %v313_v2  ;;  %1310 = vmatprep.subr.mxu1 %v1441_v1  ;;  %v308_v13 = vld [vmem:[%s1819_s2 + $0x8] sm:$0xff]  ;;  %v307_v15 = vld [vmem:[%s1819_s2] sm:$0xff]  ;;  %v1180_v17 = vld [vmem:[%s1819_s2 + $0x78] sm:$0xff]  ;;  %vm922_vm8 = vcmask 1045509   ;;  %vm925_vm9 = vcmask 1046534   ;;  %vm928_vm10 = vcmask 1047559  }
  0x10   : > { %1293 = vmatprep.subr.mxu0 %v1441_v1  ;;  %1311 = vmatpush3.msra.mxu1 %v1188_v5  ;;  %v1183_v14 = vld [vmem:[%s1819_s2 + $0x88] sm:$0xff]  ;;  %v1564_v16 = vld [vmem:[%s285_s12] sm:$0xff]  ;;  %v1179_v19 = vld [vmem:[%s1819_s2 + $0x70] sm:$0xff] }
  0x11   : > { %1294 = vmatpush3.msra.mxu0 %v312_v4  ;;  %1312 = vmatprep.subr.mxu1 %v1441_v1  ;;  %v1182_v18 = vld [vmem:[%s1819_s2 + $0x80] sm:$0xff]  ;;  %v1178_v20 = vld [vmem:[%s1819_s2 + $0x68] sm:$0xff]  ;;  %v1176_v22 = vld [vmem:[%s1819_s2 + $0x58] sm:$0xff] }
  0x12   : > { %1295 = vmatprep.subr.mxu0 %v1441_v1  ;;  %1313 = vmatpush3.msra.mxu1 %v1187_v6  ;;  %v1177_v21 = vld [vmem:[%s1819_s2 + $0x60] sm:$0xff]  ;;  %v1175_v23 = vld [vmem:[%s1819_s2 + $0x50] sm:$0xff]  ;;  %v1174_v24 = vld [vmem:[%s1819_s2 + $0x48] sm:$0xff] }
  0x13   : > { %1296 = vmatpush3.msra.mxu0 %v311_v7  ;;  %1314 = vmatprep.subr.mxu1 %v1441_v1  ;;  %v1173_v25 = vld [vmem:[%s1819_s2 + $0x40] sm:$0xff]  ;;  %v574_v26 = vld [vmem:[%s1821_s4 + $0x38] sm:$0xff]  ;;  %v573_v28 = vld [vmem:[%s1821_s4 + $0x30] sm:$0xff] }
  0x14   : > { %1297 = vmatprep.subr.mxu0 %v1441_v1  ;;  %1315 = vmatpush3.msra.mxu1 %v1186_v8  ;;  %v1209_v27 = vld [vmem:[%s1821_s4 + $0xb8] sm:$0xff]  ;;  %v1208_v29 = vld [vmem:[%s1821_s4 + $0xb0] sm:$0xff]  ;;  %v572_v30 = vld [vmem:[%s1821_s4 + $0x28] sm:$0xff] }
  0x15   : > { %1298 = vmatpush3.msra.mxu0 %v310_v9  ;;  %1316 = vmatprep.subr.mxu1 %v1441_v1  ;;  %v1207_v31 = vld [vmem:[%s1821_s4 + $0xa8] sm:$0xff]  ;;  %v571_v32 = vld [vmem:[%s1821_s4 + $0x20] sm:$0xff]  ;;  %v570_v34 = vld [vmem:[%s1821_s4 + $0x18] sm:$0xff] }
  0x16   : > { %1299 = vmatprep.subr.mxu0 %v1441_v1  ;;  %1317 = vmatpush3.msra.mxu1 %v1185_v10  ;;  %v1206_v33 = vld [vmem:[%s1821_s4 + $0xa0] sm:$0xff]  ;;  %v1205_v35 = vld [vmem:[%s1821_s4 + $0x98] sm:$0xff]  ;;  %v569_v36 = vld [vmem:[%s1821_s4 + $0x10] sm:$0xff] }
  0x17   : > { %1300 = vmatpush3.msra.mxu0 %v309_v11  ;;  %1318 = vmatprep.subr.mxu1 %v1441_v1  ;;  %v1204_v37 = vld [vmem:[%s1821_s4 + $0x90] sm:$0xff]  ;;  %v568_v38 = vld [vmem:[%s1821_s4 + $0x8] sm:$0xff]  ;;  %v567_v40 = vld [vmem:[%s1821_s4] sm:$0xff] }
  0x18   : > { %1301 = vmatprep.subr.mxu0 %v1441_v1  ;;  %1319 = vmatpush3.msra.mxu1 %v1184_v12  ;;  %v1203_v39 = vld [vmem:[%s1821_s4 + $0x88] sm:$0xff]  ;;  %v1202_v41 = vld [vmem:[%s1821_s4 + $0x80] sm:$0xff]  ;;  %v1200_v57 = vld [vmem:[%s1821_s4 + $0x78] sm:$0xff] }
  0x19   : > { %1302 = vmatpush3.msra.mxu0 %v308_v13  ;;  %1320 = vmatprep.subr.mxu1 %v1441_v1  ;;  %v1192_v52 = vld [vmem:[%s1820_s3] ss:$0 sm:$0xff]  ;;  %v820_v58 = vld [vmem:[%s1823_s6 + $0x38] sm:$0xff]  ;;  %v1199_v59 = vld [vmem:[%s1821_s4 + $0x70] sm:$0xff] }
  0x1a   : > { %1303 = vmatprep.subr.mxu0 %v1441_v1  ;;  %1321 = vmatpush3.msra.mxu1 %v1183_v14  ;;  %v819_v60 = vld [vmem:[%s1823_s6 + $0x30] sm:$0xff]  ;;  %v1198_v61 = vld [vmem:[%s1821_s4 + $0x68] sm:$0xff]  ;;  %v1197_v63 = vld [vmem:[%s1821_s4 + $0x60] sm:$0xff] }
  0x1b   : > { %1304 = vmatpush3.msra.mxu0 %v307_v15  ;;  %1322 = vmatprep.subr.mxu1 %v1441_v1  ;;  %v818_v62 = vld [vmem:[%s1823_s6 + $0x28] sm:$0xff]  ;;  %v817_v0 = vld [vmem:[%s1823_s6 + $0x20] sm:$0xff]  ;;  %v1196_v2 = vld [vmem:[%s1821_s4 + $0x58] sm:$0xff] }
  0x1c   : > { %1306 = vmatmul.mubr.msk.f32.vlgmr.msra.gmra.mxu0 %vm315_vm1, %v1564_v16  ;;  %1327 = vmatprep.subr.mxu0 %v1441_v1  ;;  %v816_v3 = vld [vmem:[%s1823_s6 + $0x18] sm:$0xff]  ;;  %v1195_v4 = vld [vmem:[%s1821_s4 + $0x50] sm:$0xff]  ;;  %v1194_v6 = vld [vmem:[%s1821_s4 + $0x48] sm:$0xff] }
  0x1d   : > { %1328 = vmatpush3.msra.mxu0 %v1180_v17  ;;  %1323 = vmatpush3.msra.mxu1 %v1182_v18  ;;  %v815_v5 = vld [vmem:[%s1823_s6 + $0x10] sm:$0xff]  ;;  %v814_v7 = vld [vmem:[%s1823_s6 + $0x8] sm:$0xff]  ;;  %v1193_v8 = vld [vmem:[%s1821_s4 + $0x40] sm:$0xff] }
  0x1e   : > { %1329 = vmatprep.subr.mxu0 %v1441_v1  ;;  %1324 = vmatprep.mubr.msk.f32.mxu1 %vm1442_vm0, %v1441_v1  ;;  %v813_v9 = vld [vmem:[%s1823_s6] sm:$0xff] }
  0x1f   : > { %1330 = vmatpush3.msra.mxu0 %v1179_v19  ;;  %1325 = vmatmul.mubr.msk.f32.vlgmr.msra.gmra.mxu1 %vm315_vm1, %v1564_v16  ;;  %v894_v10 = vld [vmem:[%s1766_s20 + $0x2] sm:$0x1]  ;;  %v895_v15 = vld [vmem:[%s1766_s20 + $0x4] sm:$0x1]  ;;  %v1000_v17 = vld [vmem:[%s1766_s20 + $0x5] sm:$0x1] }
  0x20   : > { %1331 = vmatprep.subr.mxu0 %v1441_v1  ;;  %1343 = vmatprep.mubr.msk.f32.mxu0 %vm1442_vm0, %v1441_v1  ;;  %v893_v19 = vld [vmem:[%s1766_s20] sm:$0x1] }
  0x21   : > { %1332 = vmatpush3.msra.mxu0 %v1178_v20  ;;  %1346 = vmatprep.subr.mxu1 %v1441_v1  ;;  %v998_v20 = vld [vmem:[%s1766_s20 + $0x1] sm:$0x1] }
  0x22   : > { %1333 = vmatprep.subr.mxu0 %v1441_v1  ;;  %1362 = vmatprep.mubr.msk.f32.mxu1 %vm1442_vm0, %v1441_v1 }
  0x23   : > { %1334 = vmatpush3.msra.mxu0 %v1177_v21  ;;  %1347 = vmatpush3.msra.mxu1 %v574_v26  ;;  %v896_v21 = vld [vmem:[%s1766_s20 + $0x6] sm:$0x1] }
  0x24   : > { %1335 = vmatprep.subr.mxu0 %v1441_v1  ;;  %1348 = vmatprep.subr.mxu1 %v1441_v1 }
  0x25   : > { %1336 = vmatpush3.msra.mxu0 %v1176_v22  ;;  %1349 = vmatpush3.msra.mxu1 %v573_v28  ;;  %v912_v22 = vrot.slane %v895_v15, 6  ;;  %v915_v28 = vrot.slane %v896_v21, 5 }
  0x26   : > { %1337 = vmatprep.subr.mxu0 %v1441_v1  ;;  %1350 = vmatprep.subr.mxu1 %v1441_v1 }
  0x27   : > { %1338 = vmatpush3.msra.mxu0 %v1175_v23  ;;  %1351 = vmatpush3.msra.mxu1 %v572_v30  ;;  %v1001_v23 = vld [vmem:[%s1766_s20 + $0x7] sm:$0x1] }
  0x28   : > { %1339 = vmatprep.subr.mxu0 %v1441_v1  ;;  %1352 = vmatprep.subr.mxu1 %v1441_v1  ;;  %v1018_v30 = vrot.slane %v1001_v23, 5 }
  0x29   : > { %1340 = vmatpush3.msra.mxu0 %v1174_v24  ;;  %1353 = vmatpush3.msra.mxu1 %v571_v32  ;;  %v1016_v24 = vrot.slane %v1000_v17, 6 }
  0x2a   : > { %1341 = vmatprep.subr.mxu0 %v1441_v1  ;;  %1354 = vmatprep.subr.mxu1 %v1441_v1 }
  0x2b   : > { %1342 = vmatpush3.msra.mxu0 %v1173_v25  ;;  %1355 = vmatpush3.msra.mxu1 %v570_v34 }
  0x2c   : > { %1344 = vmatmul.mubr.msk.f32.vlgmr.msra.gmra.mxu0 %vm315_vm1, %v1564_v16  ;;  %1365 = vmatprep.subr.mxu0 %v1441_v1 }
  0x2d   : > { %1381 = vmatprep.mubr.msk.f32.mxu0 %vm1442_vm0, %v1441_v1  ;;  %1366 = vmatpush3.msra.mxu0 %v1209_v27  ;;  %v897_v27 = vld [vmem:[%s1766_s20 + $0x8] sm:$0x1] }
  0x2e   : > { %1367 = vmatprep.subr.mxu0 %v1441_v1  ;;  %1356 = vmatprep.subr.mxu1 %v1441_v1  ;;  %v918_v34 = vrot.slane %v897_v27, 4 }
  0x2f   : > { %1368 = vmatpush3.msra.mxu0 %v1208_v29  ;;  %1357 = vmatpush3.msra.mxu1 %v569_v36  ;;  %v1002_v29 = vld [vmem:[%s1766_s20 + $0x9] sm:$0x1] }
  0x30   : > { %1369 = vmatprep.subr.mxu0 %v1441_v1  ;;  %1358 = vmatprep.subr.mxu1 %v1441_v1  ;;  %v1020_v36 = vrot.slane %v1002_v29, 4 }
  0x31   : > { %1370 = vmatpush3.msra.mxu0 %v1207_v31  ;;  %1359 = vmatpush3.msra.mxu1 %v568_v38 }
  0x32   : > { %1371 = vmatprep.subr.mxu0 %v1441_v1  ;;  %1360 = vmatprep.subr.mxu1 %v1441_v1 }
  0x33   : > { %1372 = vmatpush3.msra.mxu0 %v1206_v33  ;;  %1361 = vmatpush3.msra.mxu1 %v567_v40  ;;  %v898_v33 = vld [vmem:[%s1766_s20 + $0xa] sm:$0x1]  ;;  %v899_v40 = vld [vmem:[%s1766_s20 + $0xc] sm:$0x1] }
  0x34   : > { %1373 = vmatprep.subr.mxu0 %v1441_v1  ;;  %1384 = vmatprep.subr.mxu1 %v1441_v1 }
  0x35   : > { %1374 = vmatpush3.msra.mxu0 %v1205_v35  ;;  %v1003_v35 = vld [vmem:[%s1766_s20 + $0xb] sm:$0x1] }
  0x36   : > { %1375 = vmatprep.subr.mxu0 %v1441_v1 }
  0x37   : > { %1376 = vmatpush3.msra.mxu0 %v1204_v37 }
  0x38   : > { %1377 = vmatprep.subr.mxu0 %v1441_v1 }
  0x39   : > { %1378 = vmatpush3.msra.mxu0 %v1203_v39 }
  0x3a   : > { %1379 = vmatprep.subr.mxu0 %v1441_v1 }
  0x3b   : > { %1380 = vmatpush3.msra.mxu0 %v1202_v41 }
  0x3c   : > { %1403 = vmatprep.subr.mxu0 %v1441_v1 }
  0xdc   : > { %v385_v42 = vpop.f32.mrf.mxu0 }
  0xdd   : > { %v469_v46 = vrot.slane %v385_v42, 7  ;;  %v921_v42 = vrot.slane %v898_v33, 3 }
  0xde   : > { %v1307_v43 = vpop.f32.mrf.mxu0 }
  0xdf   : > { %v464_v44 = vpop.f32.mrf.mxu1  ;;  %v472_v49 = vsel %vm471_vm3, 0.0, %v469_v46  ;;  %v1004_v43 = vld [vmem:[%s1766_s20 + $0xd] sm:$0x1] }
  0xe0   : > { %v544_v47 = vrot.slane %v464_v44, 1  ;;  %v1022_v44 = vrot.slane %v1003_v35, 3 }
  0xe1   : > { %v1326_v45 = vpop.f32.mrf.mxu1 }
  0xe2   : > { %v547_v48 = vsel %vm546_vm2, %v544_v47, 0.0 }
  0xec   : > { %v539_v50 = vpop.f32.mrf.mxu0 }
  0xed   : > { %v540_v51 = vadd.f32 %v539_v50, %v472_v49  ;;  %v1443_v49 = vmov 1966171168  }
  0xee   : > { %v1345_v53 = vpop.f32.mrf.mxu0  ;;  %v935_v50 = vunpack.c.l.s4 %v1443_v49 }
  0xef   : > { %v548_v54 = vadd.f32 %v547_v48, %v540_v51  ;;  %v924_v53 = vrot.slane %v899_v40, 2 }
  0xf1   : > { %v555_v55 = vadd.f32 %v1192_v52, %v548_v54  ;;  %v900_v52 = vld [vmem:[%s1766_s20 + $0xe] sm:$0x1]  ;;  %v937_v54 = vlaneseq }
  0xf3   : > { %v556_v56 = vmax.f32 %v555_v55, 0.0  ;;  %v1005_v55 = vld [vmem:[%s1766_s20 + $0xf] sm:$0x1] }
  0xf5   : > { %1363 = vmatmul.mubr.msk.f32.vlgmr.msra.gmra.mxu1 %vm315_vm1, %v556_v56  ;;  %1382 = vmatmul.mubr.msk.f32.vlgmr.msra.gmra.mxu0 %vm315_vm1, %v556_v56 }
  0xf6   : > { %1385 = vmatpush3.msra.mxu1 %v1200_v57  ;;  %1404 = vmatpush3.msra.mxu0 %v820_v58 }
  0xf7   : > { %1386 = vmatprep.subr.mxu1 %v1441_v1  ;;  %1405 = vmatprep.subr.mxu0 %v1441_v1 }
  0xf8   : > { %1387 = vmatpush3.msra.mxu1 %v1199_v59  ;;  %1406 = vmatpush3.msra.mxu0 %v819_v60  ;;  %v1212_v59 = vld [vmem:[%s1822_s5] ss:$0 sm:$0xff] }
  0xf9   : > { %1388 = vmatprep.subr.mxu1 %v1441_v1  ;;  %1407 = vmatprep.subr.mxu0 %v1441_v1 }
  0xfa   : > { %1389 = vmatpush3.msra.mxu1 %v1198_v61  ;;  %1408 = vmatpush3.msra.mxu0 %v818_v62 }
  0xfb   : > { %1390 = vmatprep.subr.mxu1 %v1441_v1  ;;  %1409 = vmatprep.subr.mxu0 %v1441_v1 }
  0xfc   : > { %1391 = vmatpush3.msra.mxu1 %v1197_v63  ;;  %1410 = vmatpush3.msra.mxu0 %v817_v0  ;;  %v927_v0 = vrot.slane %v900_v52, 1 }
  0xfd   : > { %1392 = vmatprep.subr.mxu1 %v1441_v1  ;;  %1411 = vmatprep.subr.mxu0 %v1441_v1 }
  0xfe   : > { %1393 = vmatpush3.msra.mxu1 %v1196_v2  ;;  %1412 = vmatpush3.msra.mxu0 %v816_v3  ;;  %v936_v2 = vunpack.c.0.s8 %v935_v50  ;;  %v1026_v3 = vrot.slane %v1005_v55, 1 }
  0xff   : > { %1394 = vmatprep.subr.mxu1 %v1441_v1  ;;  %1413 = vmatprep.subr.mxu0 %v1441_v1 }
 0x100   : > { %1395 = vmatpush3.msra.mxu1 %v1195_v4  ;;  %1400 = vmatprep.mubr.msk.f32.mxu1 %vm1442_vm0, %v1441_v1 }
 0x101   : > { %1396 = vmatprep.subr.mxu1 %v1441_v1  ;;  %1414 = vmatpush3.msra.mxu0 %v815_v5 }
 0x102   : > { %1397 = vmatpush3.msra.mxu1 %v1194_v6  ;;  %1415 = vmatprep.subr.mxu0 %v1441_v1 }
 0x103   : > { %1398 = vmatprep.subr.mxu1 %v1441_v1  ;;  %1416 = vmatpush3.msra.mxu0 %v814_v7  ;;  %v938_v7 = vshrl.u32 %v937_v54, 7 }
 0x104   : > { %1399 = vmatpush3.msra.mxu1 %v1193_v8  ;;  %1417 = vmatprep.subr.mxu0 %v1441_v1 }
 0x105   : > { %1401 = vmatmul.mubr.msk.f32.vlgmr.msra.gmra.mxu1 %vm315_vm1, %v556_v56  ;;  %1418 = vmatpush3.msra.mxu0 %v813_v9  ;;  %v1024_v56 = vrot.slane %v1004_v43, 2 }
 0x106   : > { %1419 = vmatprep.mubr.msk.f32.mxu0 %vm1442_vm0, %v1441_v1  ;;  %v999_v1 = vld [vmem:[%s1766_s20 + $0x3] sm:$0x1] }
 0x107   : > { %1420 = vmatmul.mubr.msk.f32.vlgmr.msra.gmra.mxu0 %vm315_vm1, %v1564_v16  ;;  %v909_v16 = vrot.slane %v894_v10, 7  ;;  %v1014_v18 = vrot.slane %v999_v1, 7 }
 0x109   : > { %v911_v25 = vsel %vm910_vm4, %v909_v16, %v893_v19  ;;  %v1015_v26 = vsel %vm910_vm4, %v1014_v18, %v998_v20 }
 0x10a   : > { %v914_v31 = vsel %vm913_vm5, %v912_v22, %v911_v25  ;;  %v1017_v32 = vsel %vm913_vm5, %v1016_v24, %v1015_v26 }
 0x10b   : > { %v917_v38 = vsel %vm916_vm6, %v915_v28, %v914_v31  ;;  %v1019_v39 = vsel %vm916_vm6, %v1018_v30, %v1017_v32 }
 0x10c   : > { %v920_v45 = vsel %vm919_vm7, %v918_v34, %v917_v38  ;;  %v1021_v46 = vsel %vm919_vm7, %v1020_v36, %v1019_v39 }
 0x10d   : > { %v923_v61 = vsel %vm922_vm8, %v921_v42, %v920_v45  ;;  %v1023_v62 = vsel %vm922_vm8, %v1022_v44, %v1021_v46 }
 0x10e   : > { %v926_v6 = vsel %vm925_vm9, %v924_v53, %v923_v61  ;;  %v1025_v8 = vsel %vm925_vm9, %v1024_v56, %v1023_v62 }
 0x10f   : > { %v929_v10 = vsel %vm928_vm10, %v927_v0, %v926_v6  ;;  %v1027_v1 = vsel %vm928_vm10, %v1026_v3, %v1025_v8 }
 0x1b5   : > { %v644_v11 = vpop.f32.mrf.mxu1  ;;  %v723_v12 = vpop.f32.mrf.mxu0 }
 0x1b6   : > { %v728_v37 = vrot.slane %v644_v11, 7  ;;  %v802_v41 = vrot.slane %v723_v12, 1  ;;  %v939_v12 = vsub.s32 %v936_v2, %v938_v7 }
 0x1b7   : > { %v1364_v13 = vpop.f32.mrf.mxu1  ;;  %v1383_v14 = vpop.f32.mrf.mxu0 }
 0x1b8   : > { %v730_v47 = vsel %vm471_vm3, 0.0, %v728_v37  ;;  %v804_v57 = vsel %vm546_vm2, %v802_v41, 0.0 }
 0x1c5   : > { %v797_v48 = vpop.f32.mrf.mxu1 }
 0x1c6   : > { %v798_v51 = vadd.f32 %v797_v48, %v730_v47 }
 0x1c7   : > { %v1402_v58 = vpop.f32.mrf.mxu1  ;;  %v887_v60 = vpop.f32.mrf.mxu0 }
 0x1c8   : > { %v805_v63 = vadd.f32 %v804_v57, %v798_v51 }
 0x1c9   : > { %v1421_v4 = vpop.f32.mrf.mxu0 }
 0x1ca   : > { %v812_v5 = vadd.f32 %v1212_v59, %v805_v63 }
 0x1cc   : > { %v891_v9 = vadd.f32 %v887_v60, %v812_v5 }
 0x1ce   : > { %v892_v11 = vmax.f32 %v891_v9, 0.0 }
 0x1d0   : > { %v931_v13 = vadd.f32 %v929_v10, %v892_v11  ;;  %v1029_v14 = vadd.f32 %v1027_v1, %v892_v11 }
 0x1d2   : > { %v933_v15 = vcombine.high %v931_v13, %v931_v13  ;;  %v940_v16 = vrot.slane %v931_v13, %v939_v12  ;;  %v1031_v17 = vcombine.high %v1029_v14, %v1029_v14  ;;  %v1038_v18 = vrot.slane %v1029_v14, %v939_v12 }
 0x1d4   : > { %v947_v19 = vrot.slane %v933_v15, %v939_v12  ;;  %v948_v20 = vcombine.high %v940_v16, %v940_v16  ;;  %v956_v21 = vrot.slane %v940_v16, %v939_v12  ;;  %1214 = vst.sshfl [vmem:[%s1796_s27] sm:$0x1 pattern:$0x73625140] %v940_v16  ;;  %v1045_v22 = vrot.slane %v1031_v17, %v939_v12 }
 0x1d5   : > { %1218 = vst.sshfl [vmem:[%s1796_s27 + $0x1] sm:$0x1 pattern:$0x73625140] %v1038_v18  ;;  %v1046_v23 = vcombine.high %v1038_v18, %v1038_v18  ;;  %v1054_v24 = vrot.slane %v1038_v18, %v939_v12 }
 0x1d6   : > { %v949_v25 = vcombine.high %v947_v19, %v947_v19  ;;  %v963_v26 = vrot.slane %v947_v19, %v939_v12  ;;  %v970_v27 = vrot.slane %v948_v20, %v939_v12  ;;  %v978_v28 = vcombine.high %v956_v21, %v956_v21  ;;  %1215 = vst.sshfl [vmem:[%s1796_s27 + $0x2] sm:$0x1 pattern:$0x73625140] %v948_v20 }
 0x1d7   : > { %1216 = vst.sshfl [vmem:[%s1796_s27 + $0x8] sm:$0x1 pattern:$0x73625140] %v947_v19  ;;  %v1047_v29 = vcombine.high %v1045_v22, %v1045_v22  ;;  %v1061_v30 = vrot.slane %v1045_v22, %v939_v12  ;;  %v1068_v31 = vrot.slane %v1046_v23, %v939_v12  ;;  %v1076_v32 = vcombine.high %v1054_v24, %v1054_v24 }
 0x1d8   : > { %1220 = vst.sshfl [vmem:[%s1796_s27 + $0x9] sm:$0x1 pattern:$0x73625140] %v1045_v22  ;;  %v977_v33 = vrot.slane %v949_v25, %v939_v12  ;;  %v979_v34 = vcombine.high %v963_v26, %v963_v26  ;;  %v980_v35 = vcombine.high %v970_v27, %v970_v27  ;;  %992 = vst [vmem:[%s1796_s27 + $0x4] sm:$0x1] %v978_v28 }
 0x1d9   : > { %1219 = vst.sshfl [vmem:[%s1796_s27 + $0x3] sm:$0x1 pattern:$0x73625140] %v1046_v23  ;;  %v1075_v36 = vrot.slane %v1047_v29, %v939_v12  ;;  %v1077_v37 = vcombine.high %v1061_v30, %v1061_v30  ;;  %v1078_v38 = vcombine.high %v1068_v31, %v1068_v31  ;;  %1090 = vst [vmem:[%s1796_s27 + $0x5] sm:$0x1] %v1076_v32 }
 0x1da   : > { %1217 = vst.sshfl [vmem:[%s1796_s27 + $0xa] sm:$0x1 pattern:$0x73625140] %v949_v25  ;;  %v981_v39 = vcombine.high %v977_v33, %v977_v33  ;;  %993 = vst [vmem:[%s1796_s27 + $0x6] sm:$0x1] %v980_v35 }
 0x1db   : > { %1221 = vst.sshfl [vmem:[%s1796_s27 + $0xb] sm:$0x1 pattern:$0x73625140] %v1047_v29  ;;  %996 = vst [vmem:[%s1796_s27 + $0xc] sm:$0x1] %v979_v34  ;;  %v1079_v40 = vcombine.high %v1075_v36, %v1075_v36 }
 0x1dc   : > { %1091 = vst [vmem:[%s1796_s27 + $0x7] sm:$0x1] %v1078_v38  ;;  %1094 = vst [vmem:[%s1796_s27 + $0xd] sm:$0x1] %v1077_v37 }
 0x1dd   : > { %997 = vst [vmem:[%s1796_s27 + $0xe] sm:$0x1] %v981_v39  ;;  %1095 = vst [vmem:[%s1796_s27 + $0xf] sm:$0x1] %v1079_v40 }
 0x1de PF: > { %s17_s24 = sadd.s32 1, %s1439_s24  }
 0x1df   : > { %p14_p4 = scmp.ge.s32.totalorder %s17_s24, 4  }
 0x1e1   :  { %16 = sbr.rel (!%p14_p4) target bundleno = 1 (0x1), region = 85 }

</bundles_post_ra>
